<compile_context>
chip_gen: v7x
topology: tpu7x:2x2x1
jax: 0.10.0
libtpu: 0.0.40
codegen_flags: <defaults>
</compile_context>

<pallas_src>
import functools

import jax
import jax.numpy as jnp
from jax.experimental import pallas as pl
from jax.experimental.pallas import tpu as pltpu


def _round_up(x, m):
    return ((x + m - 1) // m) * m


@functools.lru_cache(maxsize=1)
def _chip_config():
    """Per-generation knobs: TensorCore count, VMEM working-set budget/limit."""
    kind = ""
    try:
        kind = jax.devices()[0].device_kind.lower()
    except Exception:  # pragma: no cover - be safe on exotic runtimes
        pass
    if "v7" in kind:
        # 2 TensorCores / chip, 64 MiB VMEM per core.
        return {"n_tc": 2, "budget": 40 << 20, "limit": 48 << 20}
    # v5e / v6e: 1 TensorCore, 128 MiB VMEM.
    return {"n_tc": 1, "budget": 96 << 20, "limit": 100 << 20}


def _pick_tile(dim, candidates, max_waste=1.3):
    """Largest candidate tile whose padding waste stays below max_waste."""
    base = _round_up(dim, 128)
    for c in candidates:
        if c <= base and _round_up(dim, c) <= max_waste * base:
            return c
    return min(base, candidates[-1])


def _split_axis(total, cap):
    """Largest multiple of 128 that divides `total` (a multiple of 128) and is
    <= cap (falls back to 128, which always divides `total`)."""
    best = 128
    t = 128
    limit = min(total, cap)
    while t <= limit:
        if total % t == 0:
            best = t
        t += 128
    return best


def _vmem_bytes(tm, tn, tk, multi_k):
    a = 2 * tm * tk * 2            # bf16 A tile, double-buffered
    w = 2 * tk * tn * 2            # bf16 W tile, double-buffered
    sb = 2 * 2 * tn * 4            # scale + bias rows
    o = 2 * tm * tn * 4            # output tile, double-buffered
    acc = tm * tn * 4 if multi_k else 0
    return a + w + sb + o + acc


# ----------------------------------------------------------------------------
# Fused (im2col matmul) conv + BN + ReLU
# ----------------------------------------------------------------------------

def _conv_kernel_single(a_ref, w_ref, s_ref, c_ref, o_ref):
    # Single K step: dot -> BN scale/bias -> ReLU -> store (no scratch).
    y = jnp.dot(a_ref[...], w_ref[...], preferred_element_type=jnp.float32)
    y = y * s_ref[...] + c_ref[...]
    o_ref[...] = jnp.maximum(y, 0.0).astype(o_ref.dtype)


def _conv_kernel_multi(a_ref, w_ref, s_ref, c_ref, o_ref, acc_ref):
    # General K-split path (only used when nk >= 2).
    k = pl.program_id(2)
    nk = pl.num_programs(2)
    part = jnp.dot(a_ref[...], w_ref[...], preferred_element_type=jnp.float32)

    @pl.when(k == 0)
    def _():
        acc_ref[...] = part

    @pl.when(jnp.logical_and(k > 0, k < nk - 1))
    def _():
        acc_ref[...] += part

    @pl.when(k == nk - 1)
    def _():
        tot = acc_ref[...] + part            # epilogue from in-register sum
        y = tot * s_ref[...] + c_ref[...]
        o_ref[...] = jnp.maximum(y, 0.0).astype(o_ref.dtype)


def fused_conv_bn_relu(a, w, scale, bias, out_dtype=jnp.float32):
    """out = relu((a @ w) * scale + bias) as one Pallas matmul.

    a: (M, K) im2col / activation matrix.   w: (K, Nout) packed weights.
    """
    cfg = _chip_config()
    M, K = a.shape
    _, Nout = w.shape
    Np = _round_up(Nout, 128)
    Kp = _round_up(K, 128)

    # ---- tile selection (tiles always divide the padded extents) ----
    tn = Np if Np <= 512 else _split_axis(Np, 512)
    tm = _pick_tile(M, (512, 256, 128))
    tk = Kp                                     # try a single K step first

    # VMEM budget: shrink TM, then split K.
    while _vmem_bytes(tm, tn, tk, Kp // tk > 1) > cfg["budget"] and tm > 128:
        tm = max(128, tm // 2)
    while _vmem_bytes(tm, tn, tk, Kp // tk > 1) > cfg["budget"] and tk > 128:
        tk = _split_axis(Kp, tk - 128)

    Mp = _round_up(M, tm)

    # v7x megacore: keep >= 2 "parallel" grid steps (2 TensorCores).  Single-TC
    # chips (v5e/v6e) keep the full lane-dense tn instead.
    if cfg["n_tc"] >= 2 and (Mp // tm) * (Np // tn) < 2:
        if Np >= 256:
            tn = _split_axis(Np, Np // 2)
        elif tm > 64:
            tm = max(64, tm // 2)
            Mp = _round_up(M, tm)

    nk = Kp // tk

    # Single pad per operand (padded rows/cols are zeros; padded N columns get
    # scale=0/bias=0 -> 0 and are sliced off).
    a_p = jnp.pad(a.astype(jnp.bfloat16), ((0, Mp - M), (0, Kp - K)))
    w_p = jnp.pad(w.astype(jnp.bfloat16), ((0, Kp - K), (0, Np - Nout)))
    s_p = jnp.pad(scale.astype(jnp.float32), (0, Np - Nout)).reshape(1, Np)
    b_p = jnp.pad(bias.astype(jnp.float32), (0, Np - Nout)).reshape(1, Np)

    if nk == 1:
        out = pl.pallas_call(
            _conv_kernel_single,
            out_shape=jax.ShapeDtypeStruct((Mp, Np), out_dtype),
            grid_spec=pltpu.PrefetchScalarGridSpec(
                num_scalar_prefetch=0,
                grid=(Mp // tm, Np // tn),
                in_specs=[pl.BlockSpec((tm, Kp), lambda i, j: (i, 0)),
                          pl.BlockSpec((Kp, tn), lambda i, j: (0, j)),
                          pl.BlockSpec((1, tn), lambda i, j: (0, j)),
                          pl.BlockSpec((1, tn), lambda i, j: (0, j))],
                out_specs=pl.BlockSpec((tm, tn), lambda i, j: (i, j))),
            compiler_params=pltpu.CompilerParams(
                dimension_semantics=("parallel", "parallel"),
                vmem_limit_bytes=cfg["limit"]),
        )(a_p, w_p, s_p, b_p)
    else:
        out = pl.pallas_call(
            _conv_kernel_multi,
            out_shape=jax.ShapeDtypeStruct((Mp, Np), out_dtype),
            grid_spec=pltpu.PrefetchScalarGridSpec(
                num_scalar_prefetch=0,
                grid=(Mp // tm, Np // tn, nk),
                in_specs=[pl.BlockSpec((tm, tk), lambda i, j, k: (i, k)),
                          pl.BlockSpec((tk, tn), lambda i, j, k: (k, j)),
                          pl.BlockSpec((1, tn), lambda i, j, k: (0, j)),
                          pl.BlockSpec((1, tn), lambda i, j, k: (0, j))],
                out_specs=pl.BlockSpec((tm, tn), lambda i, j, k: (i, j)),
                scratch_shapes=[pltpu.VMEM((tm, tn), jnp.float32)]),
            compiler_params=pltpu.CompilerParams(
                dimension_semantics=("parallel", "parallel", "arbitrary"),
                vmem_limit_bytes=cfg["limit"]),
        )(a_p, w_p, s_p, b_p)

    return out[:M, :Nout]


def basic_conv(x, p, stride=1, padding=0, out_dtype=jnp.float32):
    """BasicConv2d: conv (bias=False) -> BatchNorm(eval, eps=1e-3) -> ReLU. NHWC."""
    kh, kw = p["k"]
    sh = sw = stride
    ph = pw = padding
    N, H, W, C = x.shape
    Ho = (H + 2 * ph - kh) // sh + 1
    Wo = (W + 2 * pw - kw) // sw + 1
    M = N * Ho * Wo

    xb = x.astype(jnp.bfloat16)               # MXU operand dtype; acc stays f32
    if kh == 1 and kw == 1 and sh == 1 and ph == 0:
        a = xb.reshape(M, C)                  # 1x1 conv: pure reshape, no pads
    else:
        xp = jnp.pad(xb, ((0, 0), (ph, ph), (pw, pw), (0, 0)))
        # im2col packed along K: column index = (i*kw + j)*C + c (tap-major).
        taps = [xp[:, i:i + sh * (Ho - 1) + 1:sh,
                   j:j + sw * (Wo - 1) + 1:sw, :]
                for i in range(kh) for j in range(kw)]
        a = jnp.concatenate(taps, axis=-1).reshape(M, kh * kw * C)

    out = fused_conv_bn_relu(a, p["w"], p["scale"], p["bias"],
                             out_dtype=out_dtype)
    return out.reshape(N, Ho, Wo, -1)


# ----------------------------------------------------------------------------
# Max pool 3x3, stride 2, no padding
# ----------------------------------------------------------------------------

def _pool_kernel(t_ref, o_ref):
    m = t_ref[0]
    for t in range(1, t_ref.shape[0]):
        m = jnp.maximum(m, t_ref[t])
    o_ref[...] = m


def max_pool_3x3_s2(x):
    cfg = _chip_config()
    N, H, W, C = x.shape
    s = 2
    Ho = (H - 3) // s + 1
    Wo = (W - 3) // s + 1
    M = N * Ho * Wo
    taps = [x[:, i:i + s * (Ho - 1) + 1:s, j:j + s * (Wo - 1) + 1:s, :]
            .reshape(M, C)
            for i in range(3) for j in range(3)]
    stk = jnp.stack(taps, axis=0)                       # (9, M, C)

    Mp = _round_up(M, 128)
    tm = 512 if Mp % 512 == 0 else (256 if Mp % 256 == 0 else 128)
    stk_p = jnp.pad(stk, ((0, 0), (0, Mp - M), (0, 0)))  # no channel padding

    out = pl.pallas_call(
        _pool_kernel,
        out_shape=jax.ShapeDtypeStruct((Mp, C), x.dtype),
        grid_spec=pltpu.PrefetchScalarGridSpec(
            num_scalar_prefetch=0,
            grid=(Mp // tm,),
            in_specs=[pl.BlockSpec((9, tm, C), lambda i: (0, i, 0))],
            out_specs=pl.BlockSpec((tm, C), lambda i: (i, 0))),
        compiler_params=pltpu.CompilerParams(
            dimension_semantics=("parallel",),
            vmem_limit_bytes=cfg["limit"]),
    )(stk_p)
    return out[:M].reshape(N, Ho, Wo, C)


# ----------------------------------------------------------------------------
# Parameters (deterministic; BN eval-mode folded into scale/bias, eps=1e-3)
# ----------------------------------------------------------------------------

class KeyGen:
    def __init__(self, seed):
        self._key = jax.random.PRNGKey(seed)
        self._i = 0

    def __call__(self):
        self._i += 1
        return jax.random.fold_in(self._key, self._i)


def conv_params(kg, cin, cout, ksize):
    kh, kw = (ksize, ksize) if isinstance(ksize, int) else ksize
    w = 0.1 * jax.random.truncated_normal(kg(), -2.0, 2.0,
                                          (cout, cin, kh, kw), jnp.float32)
    gamma = jnp.ones((cout,), jnp.float32)
    beta = jnp.zeros((cout,), jnp.float32)
    r_mean = jnp.zeros((cout,), jnp.float32)
    r_var = jnp.ones((cout,), jnp.float32)
    scale = gamma / jnp.sqrt(r_var + 1e-3)
    bias = beta - r_mean * scale
    # (cout,cin,kh,kw) -> (kh,kw,cin,cout) -> (kh*kw*cin, cout): matches the
    # tap-major / channel-minor im2col column order built in basic_conv.
    w_mat = jnp.transpose(w, (2, 3, 1, 0)).reshape(kh * kw * cin, cout)
    return {"w": w_mat.astype(jnp.bfloat16), "scale": scale, "bias": bias,
            "k": (kh, kw)}


def inception_b_params(in_channels, seed=0):
    kg = KeyGen(seed)
    return {
        "b3": conv_params(kg, in_channels, 384, 3),
        "bd_1": conv_params(kg, in_channels, 64, 1),
        "bd_2": conv_params(kg, 64, 96, 3),
        "bd_3": conv_params(kg, 96, 96, 3),
    }


# ----------------------------------------------------------------------------
# InceptionB forward (NCHW in, NCHW out -- matches the PyTorch module)
# ----------------------------------------------------------------------------

def inception_b_forward(x_nchw, p):
    x = jnp.transpose(x_nchw, (0, 2, 3, 1)).astype(jnp.float32)   # NHWC

    # branch3x3: 3x3 stride 2 -> 384
    b3 = basic_conv(x, p["b3"], stride=2, out_dtype=jnp.float32)

    # branch3x3dbl: 1x1 -> 64, 3x3 pad 1 -> 96, 3x3 stride 2 -> 96
    bd = basic_conv(x, p["bd_1"], out_dtype=jnp.bfloat16)
    bd = basic_conv(bd, p["bd_2"], padding=1, out_dtype=jnp.bfloat16)
    bd = basic_conv(bd, p["bd_3"], stride=2, out_dtype=jnp.float32)

    # branch_pool: max_pool2d(kernel=3, stride=2)
    bp = max_pool_3x3_s2(x)

    out = jnp.concatenate([b3, bd, bp], axis=-1)
    return jnp.transpose(out, (0, 3, 1, 2))                       # NCHW


if __name__ == "__main__":
    in_channels = 16
    params = inception_b_params(in_channels, seed=0)
    x = jax.random.normal(jax.random.PRNGKey(0),
                          (2, in_channels, 17, 17), jnp.float32)

    fwd = jax.jit(lambda inp: inception_b_forward(inp, params))
    out = jax.block_until_ready(fwd(x))

    # output spatial: (17 - 3)//2 + 1 = 8 ; channels: 384 + 96 + in_channels
    assert out.shape == (2, 384 + 96 + in_channels, 8, 8), out.shape
    assert out.dtype == jnp.float32
    assert bool(jnp.all(jnp.isfinite(out)))
    print("KERNEL_OK")
</pallas_src>

<mosaic_0001>
module attributes {stable_mosaic.version = 11 : i64} {
  func.func @_conv_kernel_single(%arg0: i32, %arg1: i32, %arg2: memref<128x256xbf16, #tpu.memory_space<vmem>>, %arg3: memref<256x384xbf16, #tpu.memory_space<vmem>>, %arg4: memref<1x384xf32, #tpu.memory_space<vmem>>, %arg5: memref<1x384xf32, #tpu.memory_space<vmem>>, %arg6: memref<128x384xf32, #tpu.memory_space<vmem>>) attributes {dimension_semantics = [#tpu.dimension_semantics<parallel>, #tpu.dimension_semantics<parallel>], iteration_bounds = array<i64: 1, 1>, scalar_prefetch = 0 : i64, scratch_operands = 0 : i64, tpu.core_type = #tpu.core_type<tc>, window_params = [{transform_indices = @transform_0, window_bounds = array<i64: 128, 256>}, {transform_indices = @transform_1, window_bounds = array<i64: 256, 384>}, {transform_indices = @transform_2, window_bounds = array<i64: 1, 384>}, {transform_indices = @transform_3, window_bounds = array<i64: 1, 384>}, {transform_indices = @transform_4, window_bounds = array<i64: 128, 384>}]} {
    %c0 = arith.constant 0 : index
    %c0_0 = arith.constant 0 : index
    %0 = vector.load %arg2[%c0, %c0_0] : memref<128x256xbf16, #tpu.memory_space<vmem>>, vector<128x256xbf16>
    %c0_1 = arith.constant 0 : index
    %c0_2 = arith.constant 0 : index
    %1 = vector.load %arg3[%c0_1, %c0_2] : memref<256x384xbf16, #tpu.memory_space<vmem>>, vector<256x384xbf16>
    %cst = arith.constant dense<0.000000e+00> : vector<128x384xf32>
    %2 = tpu.matmul %0, %1, %cst {dimension_numbers = #tpu.dot_dimension_numbers<[1], [0], [0], [1], [0, 0, 1, 1], [], []>} : vector<128x256xbf16>, vector<256x384xbf16>, vector<128x384xf32> -> vector<128x384xf32>
    %c0_3 = arith.constant 0 : index
    %c0_4 = arith.constant 0 : index
    %3 = vector.load %arg4[%c0_3, %c0_4] : memref<1x384xf32, #tpu.memory_space<vmem>>, vector<1x384xf32>
    %4 = vector.broadcast %3 : vector<1x384xf32> to vector<128x384xf32>
    %5 = arith.mulf %2, %4 : vector<128x384xf32>
    %c0_5 = arith.constant 0 : index
    %c0_6 = arith.constant 0 : index
    %6 = vector.load %arg5[%c0_5, %c0_6] : memref<1x384xf32, #tpu.memory_space<vmem>>, vector<1x384xf32>
    %7 = vector.broadcast %6 : vector<1x384xf32> to vector<128x384xf32>
    %8 = arith.addf %5, %7 : vector<128x384xf32>
    %cst_7 = arith.constant 0.000000e+00 : f32
    %9 = vector.broadcast %cst_7 : f32 to vector<128x384xf32>
    %10 = arith.maximumf %8, %9 : vector<128x384xf32>
    %c0_8 = arith.constant 0 : index
    %c0_9 = arith.constant 0 : index
    %11 = vector.load %arg6[%c0_8, %c0_9] : memref<128x384xf32, #tpu.memory_space<vmem>>, vector<128x384xf32>
    tpu.vector_store %arg6[%c0_8, %c0_9], %10 {strides = array<i32>} : memref<128x384xf32, #tpu.memory_space<vmem>>, vector<128x384xf32>,
    return
  }
  func.func @transform_0(%arg0: i32, %arg1: i32) -> (i32, i32) {
    %c0_i32 = arith.constant 0 : i32
    %c0_i32_0 = arith.constant 0 : i32
    return %arg0, %c0_i32 : i32, i32
  }
  func.func @transform_1(%arg0: i32, %arg1: i32) -> (i32, i32) {
    %c0_i32 = arith.constant 0 : i32
    %c0_i32_0 = arith.constant 0 : i32
    return %c0_i32, %arg1 : i32, i32
  }
  func.func @transform_2(%arg0: i32, %arg1: i32) -> (i32, i32) {
    %c0_i32 = arith.constant 0 : i32
    %c0_i32_0 = arith.constant 0 : i32
    return %c0_i32, %arg1 : i32, i32
  }
  func.func @transform_3(%arg0: i32, %arg1: i32) -> (i32, i32) {
    %c0_i32 = arith.constant 0 : i32
    %c0_i32_0 = arith.constant 0 : i32
    return %c0_i32, %arg1 : i32, i32
  }
  func.func @transform_4(%arg0: i32, %arg1: i32) -> (i32, i32) {
    %c0_i32 = arith.constant 0 : i32
    return %arg0, %arg1 : i32, i32
  }
}

module attributes {stable_mosaic.version = 11 : i64} {
  func.func @_conv_kernel_single(%arg0: i32, %arg1: i32, %arg2: memref<256x128xbf16, #tpu.memory_space<vmem>>, %arg3: memref<128x128xbf16, #tpu.memory_space<vmem>>, %arg4: memref<1x128xf32, #tpu.memory_space<vmem>>, %arg5: memref<1x128xf32, #tpu.memory_space<vmem>>, %arg6: memref<256x128xbf16, #tpu.memory_space<vmem>>) attributes {dimension_semantics = [#tpu.dimension_semantics<parallel>, #tpu.dimension_semantics<parallel>], iteration_bounds = array<i64: 3, 1>, scalar_prefetch = 0 : i64, scratch_operands = 0 : i64, tpu.core_type = #tpu.core_type<tc>, window_params = [{transform_indices = @transform_0, window_bounds = array<i64: 256, 128>}, {transform_indices = @transform_1, window_bounds = array<i64: 128, 128>}, {transform_indices = @transform_2, window_bounds = array<i64: 1, 128>}, {transform_indices = @transform_3, window_bounds = array<i64: 1, 128>}, {transform_indices = @transform_4, window_bounds = array<i64: 256, 128>}]} {
    %c0 = arith.constant 0 : index
    %c0_0 = arith.constant 0 : index
    %0 = vector.load %arg2[%c0, %c0_0] : memref<256x128xbf16, #tpu.memory_space<vmem>>, vector<256x128xbf16>
    %c0_1 = arith.constant 0 : index
    %c0_2 = arith.constant 0 : index
    %1 = vector.load %arg3[%c0_1, %c0_2] : memref<128x128xbf16, #tpu.memory_space<vmem>>, vector<128x128xbf16>
    %cst = arith.constant dense<0.000000e+00> : vector<256x128xf32>
    %2 = tpu.matmul %0, %1, %cst {dimension_numbers = #tpu.dot_dimension_numbers<[1], [0], [0], [1], [0, 0, 1, 1], [], []>} : vector<256x128xbf16>, vector<128x128xbf16>, vector<256x128xf32> -> vector<256x128xf32>
    %c0_3 = arith.constant 0 : index
    %c0_4 = arith.constant 0 : index
    %3 = vector.load %arg4[%c0_3, %c0_4] : memref<1x128xf32, #tpu.memory_space<vmem>>, vector<1x128xf32>
    %4 = vector.broadcast %3 : vector<1x128xf32> to vector<256x128xf32>
    %5 = arith.mulf %2, %4 : vector<256x128xf32>
    %c0_5 = arith.constant 0 : index
    %c0_6 = arith.constant 0 : index
    %6 = vector.load %arg5[%c0_5, %c0_6] : memref<1x128xf32, #tpu.memory_space<vmem>>, vector<1x128xf32>
    %7 = vector.broadcast %6 : vector<1x128xf32> to vector<256x128xf32>
    %8 = arith.addf %5, %7 : vector<256x128xf32>
    %cst_7 = arith.constant 0.000000e+00 : f32
    %9 = vector.broadcast %cst_7 : f32 to vector<256x128xf32>
    %10 = arith.maximumf %8, %9 : vector<256x128xf32>
    %11 = arith.truncf %10 : vector<256x128xf32> to vector<256x128xbf16>
    %c0_8 = arith.constant 0 : index
    %c0_9 = arith.constant 0 : index
    %12 = vector.load %arg6[%c0_8, %c0_9] : memref<256x128xbf16, #tpu.memory_space<vmem>>, vector<256x128xbf16>
    tpu.vector_store %arg6[%c0_8, %c0_9], %11 {strides = array<i32>} : memref<256x128xbf16, #tpu.memory_space<vmem>>, vector<256x128xbf16>,
    return
  }
  func.func @transform_0(%arg0: i32, %arg1: i32) -> (i32, i32) {
    %c0_i32 = arith.constant 0 : i32
    %c0_i32_0 = arith.constant 0 : i32
    return %arg0, %c0_i32 : i32, i32
  }
  func.func @transform_1(%arg0: i32, %arg1: i32) -> (i32, i32) {
    %c0_i32 = arith.constant 0 : i32
    %c0_i32_0 = arith.constant 0 : i32
    return %c0_i32, %arg1 : i32, i32
  }
  func.func @transform_2(%arg0: i32, %arg1: i32) -> (i32, i32) {
    %c0_i32 = arith.constant 0 : i32
    %c0_i32_0 = arith.constant 0 : i32
    return %c0_i32, %arg1 : i32, i32
  }
  func.func @transform_3(%arg0: i32, %arg1: i32) -> (i32, i32) {
    %c0_i32 = arith.constant 0 : i32
    %c0_i32_0 = arith.constant 0 : i32
    return %c0_i32, %arg1 : i32, i32
  }
  func.func @transform_4(%arg0: i32, %arg1: i32) -> (i32, i32) {
    %c0_i32 = arith.constant 0 : i32
    return %arg0, %arg1 : i32, i32
  }
}

module attributes {stable_mosaic.version = 11 : i64} {
  func.func @_pool_kernel(%arg0: i32, %arg1: memref<9x128x16xf32, #tpu.memory_space<vmem>>, %arg2: memref<128x16xf32, #tpu.memory_space<vmem>>) attributes {dimension_semantics = [#tpu.dimension_semantics<parallel>], iteration_bounds = array<i64: 1>, scalar_prefetch = 0 : i64, scratch_operands = 0 : i64, tpu.core_type = #tpu.core_type<tc>, window_params = [{transform_indices = @transform_0, window_bounds = array<i64: 9, 128, 16>}, {transform_indices = @transform_1, window_bounds = array<i64: 128, 16>}]} {
    %c0 = arith.constant 0 : index
    %c0_0 = arith.constant 0 : index
    %c0_1 = arith.constant 0 : index
    %0 = vector.load %arg1[%c0, %c0_0, %c0_1] : memref<9x128x16xf32, #tpu.memory_space<vmem>>, vector<1x128x16xf32>
    %1 = vector.shape_cast %0 : vector<1x128x16xf32> to vector<128x16xf32>
    %c1 = arith.constant 1 : index
    %c0_2 = arith.constant 0 : index
    %c0_3 = arith.constant 0 : index
    %2 = vector.load %arg1[%c1, %c0_2, %c0_3] : memref<9x128x16xf32, #tpu.memory_space<vmem>>, vector<1x128x16xf32>
    %3 = vector.shape_cast %2 : vector<1x128x16xf32> to vector<128x16xf32>
    %4 = arith.maximumf %1, %3 : vector<128x16xf32>
    %c2 = arith.constant 2 : index
    %c0_4 = arith.constant 0 : index
    %c0_5 = arith.constant 0 : index
    %5 = vector.load %arg1[%c2, %c0_4, %c0_5] : memref<9x128x16xf32, #tpu.memory_space<vmem>>, vector<1x128x16xf32>
    %6 = vector.shape_cast %5 : vector<1x128x16xf32> to vector<128x16xf32>
    %7 = arith.maximumf %4, %6 : vector<128x16xf32>
    %c3 = arith.constant 3 : index
    %c0_6 = arith.constant 0 : index
    %c0_7 = arith.constant 0 : index
    %8 = vector.load %arg1[%c3, %c0_6, %c0_7] : memref<9x128x16xf32, #tpu.memory_space<vmem>>, vector<1x128x16xf32>
    %9 = vector.shape_cast %8 : vector<1x128x16xf32> to vector<128x16xf32>
    %10 = arith.maximumf %7, %9 : vector<128x16xf32>
    %c4 = arith.constant 4 : index
    %c0_8 = arith.constant 0 : index
    %c0_9 = arith.constant 0 : index
    %11 = vector.load %arg1[%c4, %c0_8, %c0_9] : memref<9x128x16xf32, #tpu.memory_space<vmem>>, vector<1x128x16xf32>
    %12 = vector.shape_cast %11 : vector<1x128x16xf32> to vector<128x16xf32>
    %13 = arith.maximumf %10, %12 : vector<128x16xf32>
    %c5 = arith.constant 5 : index
    %c0_10 = arith.constant 0 : index
    %c0_11 = arith.constant 0 : index
    %14 = vector.load %arg1[%c5, %c0_10, %c0_11] : memref<9x128x16xf32, #tpu.memory_space<vmem>>, vector<1x128x16xf32>
    %15 = vector.shape_cast %14 : vector<1x128x16xf32> to vector<128x16xf32>
    %16 = arith.maximumf %13, %15 : vector<128x16xf32>
    %c6 = arith.constant 6 : index
    %c0_12 = arith.constant 0 : index
    %c0_13 = arith.constant 0 : index
    %17 = vector.load %arg1[%c6, %c0_12, %c0_13] : memref<9x128x16xf32, #tpu.memory_space<vmem>>, vector<1x128x16xf32>
    %18 = vector.shape_cast %17 : vector<1x128x16xf32> to vector<128x16xf32>
    %19 = arith.maximumf %16, %18 : vector<128x16xf32>
    %c7 = arith.constant 7 : index
    %c0_14 = arith.constant 0 : index
    %c0_15 = arith.constant 0 : index
    %20 = vector.load %arg1[%c7, %c0_14, %c0_15] : memref<9x128x16xf32, #tpu.memory_space<vmem>>, vector<1x128x16xf32>
    %21 = vector.shape_cast %20 : vector<1x128x16xf32> to vector<128x16xf32>
    %22 = arith.maximumf %19, %21 : vector<128x16xf32>
    %c8 = arith.constant 8 : index
    %c0_16 = arith.constant 0 : index
    %c0_17 = arith.constant 0 : index
    %23 = vector.load %arg1[%c8, %c0_16, %c0_17] : memref<9x128x16xf32, #tpu.memory_space<vmem>>, vector<1x128x16xf32>
    %24 = vector.shape_cast %23 : vector<1x128x16xf32> to vector<128x16xf32>
    %25 = arith.maximumf %22, %24 : vector<128x16xf32>
    %c0_18 = arith.constant 0 : index
    %c0_19 = arith.constant 0 : index
    %26 = vector.load %arg2[%c0_18, %c0_19] : memref<128x16xf32, #tpu.memory_space<vmem>>, vector<128x16xf32>
    tpu.vector_store %arg2[%c0_18, %c0_19], %25 {strides = array<i32>} : memref<128x16xf32, #tpu.memory_space<vmem>>, vector<128x16xf32>,
    return
  }
  func.func @transform_0(%arg0: i32) -> (i32, i32, i32) {
    %c0_i32 = arith.constant 0 : i32
    %c0_i32_0 = arith.constant 0 : i32
    %c0_i32_1 = arith.constant 0 : i32
    return %c0_i32, %arg0, %c0_i32_0 : i32, i32, i32
  }
  func.func @transform_1(%arg0: i32) -> (i32, i32) {
    %c0_i32 = arith.constant 0 : i32
    %c0_i32_0 = arith.constant 0 : i32
    return %arg0, %c0_i32 : i32, i32
  }
}

module attributes {stable_mosaic.version = 11 : i64} {
  func.func @_conv_kernel_single(%arg0: i32, %arg1: i32, %arg2: memref<256x640xbf16, #tpu.memory_space<vmem>>, %arg3: memref<640x128xbf16, #tpu.memory_space<vmem>>, %arg4: memref<1x128xf32, #tpu.memory_space<vmem>>, %arg5: memref<1x128xf32, #tpu.memory_space<vmem>>, %arg6: memref<256x128xbf16, #tpu.memory_space<vmem>>) attributes {dimension_semantics = [#tpu.dimension_semantics<parallel>, #tpu.dimension_semantics<parallel>], iteration_bounds = array<i64: 3, 1>, scalar_prefetch = 0 : i64, scratch_operands = 0 : i64, tpu.core_type = #tpu.core_type<tc>, window_params = [{transform_indices = @transform_0, window_bounds = array<i64: 256, 640>}, {transform_indices = @transform_1, window_bounds = array<i64: 640, 128>}, {transform_indices = @transform_2, window_bounds = array<i64: 1, 128>}, {transform_indices = @transform_3, window_bounds = array<i64: 1, 128>}, {transform_indices = @transform_4, window_bounds = array<i64: 256, 128>}]} {
    %c0 = arith.constant 0 : index
    %c0_0 = arith.constant 0 : index
    %0 = vector.load %arg2[%c0, %c0_0] : memref<256x640xbf16, #tpu.memory_space<vmem>>, vector<256x640xbf16>
    %c0_1 = arith.constant 0 : index
    %c0_2 = arith.constant 0 : index
    %1 = vector.load %arg3[%c0_1, %c0_2] : memref<640x128xbf16, #tpu.memory_space<vmem>>, vector<640x128xbf16>
    %cst = arith.constant dense<0.000000e+00> : vector<256x128xf32>
    %2 = tpu.matmul %0, %1, %cst {dimension_numbers = #tpu.dot_dimension_numbers<[1], [0], [0], [1], [0, 0, 1, 1], [], []>} : vector<256x640xbf16>, vector<640x128xbf16>, vector<256x128xf32> -> vector<256x128xf32>
    %c0_3 = arith.constant 0 : index
    %c0_4 = arith.constant 0 : index
    %3 = vector.load %arg4[%c0_3, %c0_4] : memref<1x128xf32, #tpu.memory_space<vmem>>, vector<1x128xf32>
    %4 = vector.broadcast %3 : vector<1x128xf32> to vector<256x128xf32>
    %5 = arith.mulf %2, %4 : vector<256x128xf32>
    %c0_5 = arith.constant 0 : index
    %c0_6 = arith.constant 0 : index
    %6 = vector.load %arg5[%c0_5, %c0_6] : memref<1x128xf32, #tpu.memory_space<vmem>>, vector<1x128xf32>
    %7 = vector.broadcast %6 : vector<1x128xf32> to vector<256x128xf32>
    %8 = arith.addf %5, %7 : vector<256x128xf32>
    %cst_7 = arith.constant 0.000000e+00 : f32
    %9 = vector.broadcast %cst_7 : f32 to vector<256x128xf32>
    %10 = arith.maximumf %8, %9 : vector<256x128xf32>
    %11 = arith.truncf %10 : vector<256x128xf32> to vector<256x128xbf16>
    %c0_8 = arith.constant 0 : index
    %c0_9 = arith.constant 0 : index
    %12 = vector.load %arg6[%c0_8, %c0_9] : memref<256x128xbf16, #tpu.memory_space<vmem>>, vector<256x128xbf16>
    tpu.vector_store %arg6[%c0_8, %c0_9], %11 {strides = array<i32>} : memref<256x128xbf16, #tpu.memory_space<vmem>>, vector<256x128xbf16>,
    return
  }
  func.func @transform_0(%arg0: i32, %arg1: i32) -> (i32, i32) {
    %c0_i32 = arith.constant 0 : i32
    %c0_i32_0 = arith.constant 0 : i32
    return %arg0, %c0_i32 : i32, i32
  }
  func.func @transform_1(%arg0: i32, %arg1: i32) -> (i32, i32) {
    %c0_i32 = arith.constant 0 : i32
    %c0_i32_0 = arith.constant 0 : i32
    return %c0_i32, %arg1 : i32, i32
  }
  func.func @transform_2(%arg0: i32, %arg1: i32) -> (i32, i32) {
    %c0_i32 = arith.constant 0 : i32
    %c0_i32_0 = arith.constant 0 : i32
    return %c0_i32, %arg1 : i32, i32
  }
  func.func @transform_3(%arg0: i32, %arg1: i32) -> (i32, i32) {
    %c0_i32 = arith.constant 0 : i32
    %c0_i32_0 = arith.constant 0 : i32
    return %c0_i32, %arg1 : i32, i32
  }
  func.func @transform_4(%arg0: i32, %arg1: i32) -> (i32, i32) {
    %c0_i32 = arith.constant 0 : i32
    return %arg0, %arg1 : i32, i32
  }
}

module attributes {stable_mosaic.version = 11 : i64} {
  func.func @_conv_kernel_single(%arg0: i32, %arg1: i32, %arg2: memref<128x896xbf16, #tpu.memory_space<vmem>>, %arg3: memref<896x128xbf16, #tpu.memory_space<vmem>>, %arg4: memref<1x128xf32, #tpu.memory_space<vmem>>, %arg5: memref<1x128xf32, #tpu.memory_space<vmem>>, %arg6: memref<128x128xf32, #tpu.memory_space<vmem>>) attributes {dimension_semantics = [#tpu.dimension_semantics<parallel>, #tpu.dimension_semantics<parallel>], iteration_bounds = array<i64: 1, 1>, scalar_prefetch = 0 : i64, scratch_operands = 0 : i64, tpu.core_type = #tpu.core_type<tc>, window_params = [{transform_indices = @transform_0, window_bounds = array<i64: 128, 896>}, {transform_indices = @transform_1, window_bounds = array<i64: 896, 128>}, {transform_indices = @transform_2, window_bounds = array<i64: 1, 128>}, {transform_indices = @transform_3, window_bounds = array<i64: 1, 128>}, {transform_indices = @transform_4, window_bounds = array<i64: 128, 128>}]} {
    %c0 = arith.constant 0 : index
    %c0_0 = arith.constant 0 : index
    %0 = vector.load %arg2[%c0, %c0_0] : memref<128x896xbf16, #tpu.memory_space<vmem>>, vector<128x896xbf16>
    %c0_1 = arith.constant 0 : index
    %c0_2 = arith.constant 0 : index
    %1 = vector.load %arg3[%c0_1, %c0_2] : memref<896x128xbf16, #tpu.memory_space<vmem>>, vector<896x128xbf16>
    %cst = arith.constant dense<0.000000e+00> : vector<128x128xf32>
    %2 = tpu.matmul %0, %1, %cst {dimension_numbers = #tpu.dot_dimension_numbers<[1], [0], [0], [1], [0, 0, 1, 1], [], []>} : vector<128x896xbf16>, vector<896x128xbf16>, vector<128x128xf32> -> vector<128x128xf32>
    %c0_3 = arith.constant 0 : index
    %c0_4 = arith.constant 0 : index
    %3 = vector.load %arg4[%c0_3, %c0_4] : memref<1x128xf32, #tpu.memory_space<vmem>>, vector<1x128xf32>
    %4 = vector.broadcast %3 : vector<1x128xf32> to vector<128x128xf32>
    %5 = arith.mulf %2, %4 : vector<128x128xf32>
    %c0_5 = arith.constant 0 : index
    %c0_6 = arith.constant 0 : index
    %6 = vector.load %arg5[%c0_5, %c0_6] : memref<1x128xf32, #tpu.memory_space<vmem>>, vector<1x128xf32>
    %7 = vector.broadcast %6 : vector<1x128xf32> to vector<128x128xf32>
    %8 = arith.addf %5, %7 : vector<128x128xf32>
    %cst_7 = arith.constant 0.000000e+00 : f32
    %9 = vector.broadcast %cst_7 : f32 to vector<128x128xf32>
    %10 = arith.maximumf %8, %9 : vector<128x128xf32>
    %c0_8 = arith.constant 0 : index
    %c0_9 = arith.constant 0 : index
    %11 = vector.load %arg6[%c0_8, %c0_9] : memref<128x128xf32, #tpu.memory_space<vmem>>, vector<128x128xf32>
    tpu.vector_store %arg6[%c0_8, %c0_9], %10 {strides = array<i32>} : memref<128x128xf32, #tpu.memory_space<vmem>>, vector<128x128xf32>,
    return
  }
  func.func @transform_0(%arg0: i32, %arg1: i32) -> (i32, i32) {
    %c0_i32 = arith.constant 0 : i32
    %c0_i32_0 = arith.constant 0 : i32
    return %arg0, %c0_i32 : i32, i32
  }
  func.func @transform_1(%arg0: i32, %arg1: i32) -> (i32, i32) {
    %c0_i32 = arith.constant 0 : i32
    %c0_i32_0 = arith.constant 0 : i32
    return %c0_i32, %arg1 : i32, i32
  }
  func.func @transform_2(%arg0: i32, %arg1: i32) -> (i32, i32) {
    %c0_i32 = arith.constant 0 : i32
    %c0_i32_0 = arith.constant 0 : i32
    return %c0_i32, %arg1 : i32, i32
  }
  func.func @transform_3(%arg0: i32, %arg1: i32) -> (i32, i32) {
    %c0_i32 = arith.constant 0 : i32
    %c0_i32_0 = arith.constant 0 : i32
    return %c0_i32, %arg1 : i32, i32
  }
  func.func @transform_4(%arg0: i32, %arg1: i32) -> (i32, i32) {
    %c0_i32 = arith.constant 0 : i32
    return %arg0, %arg1 : i32, i32
  }
}

</mosaic_0001>

<bundles_post_ra>
// kernel: _lambda_.5
= control target key start
LH: loop header
LB: loop body
LE: loop exit
PB: predicated region body
PF: predicated region fallthrough
CT: control target
= control target key end

     0   :  { %9 = vsyncpa [#allocation3], 0  ;;  %s1490_s0 = inlined_call_operand.hbm [shape: bf16[128,256], index: 0, kind: input, shape index: {}]   ;;  %s1491_s1 = inlined_call_operand.hbm [shape: bf16[256,384], index: 1, kind: input, shape index: {}]   ;;  %s1492_s2 = inlined_call_operand.hbm [shape: f32[1,384], index: 2, kind: input, shape index: {}]   ;;  %s1493_s3 = inlined_call_operand.hbm [shape: f32[1,384], index: 3, kind: input, shape index: {}]   ;;  %s1494_s4 = inlined_call_operand.hbm [shape: f32[128,384], index: 4, kind: output, shape index: {}]  }
   0x1   :  { %10 = vsyncpa [#allocation6], 0 }
   0x2   :  { %11 = vsyncpa [#allocation9], 0 }
   0x3   :  { %12 = vsyncpa [#allocation4], 0  ;;  %s1286_s15 = smov [#allocation5]   ;;  %s1168_s19 = scalar_lea.hbm %s1491_s1, 6144 }
   0x4   :  { %s30_s16 = sshll.u32 %s1286_s15, 4  ;;  %p1169_p0 = scmp.ne.s32.totalorder %s1491_s1, %s1168_s19  ;;  %s31_s16 = int_to_ptr.vmem [resolvable:$true] %s30_s16 }
   0x5   :  { %p1172_p1 = scmp.lt.u32.totalorder %s1168_s19, %s1491_s1 }
   0x7   :  { %p1174_p2 = pnand %p1172_p1, %p1169_p0 }
   0x9   :  { %1177 = shalt.err (!%p1174_p2)
}
   0xa   :  { %s1178_s24 = scalar_lea.vmem %s31_s16, 6144  ;;  %p1183_p4 = scmp.lt.s32.totalorder %s31_s16, %s31_s16 }
   0xb   :  { %p1179_p3 = scmp.ne.s32.totalorder %s31_s16, %s1178_s24  ;;  %p1184_p5 = scmp.lt.s32.totalorder %s1178_s24, %s1178_s24 }
   0xd   :  { %p1185_p6 = por %p1184_p5, %p1183_p4 }
   0xf   :  { %p1186_p7 = pnand %p1185_p6, %p1179_p3 }
  0x11   :  { %1189 = shalt.err (!%p1186_p7)
}
  0x12   :  { %s1287_s25 = smov 192   ;;  %s1288_s26 = smov 12  }
  0x13   :  { %36 = dma.hbm_to_vmem [thread:$0]  %s1491_s1, 6144, %s31_s16, [#allocation6], %s1287_s25, %s1287_s25, %s1288_s26  }
  0x14   :  { %s1289_s29 = smov [#allocation2]   ;;  %s1190_s7 = scalar_lea.hbm %s1490_s0, 2048 }
  0x15   :  { %s18_s30 = sshll.u32 %s1289_s29, 4  ;;  %p1191_p8 = scmp.ne.s32.totalorder %s1490_s0, %s1190_s7  ;;  %s19_s30 = int_to_ptr.vmem [resolvable:$true] %s18_s30 }
  0x16   :  { %p1194_p9 = scmp.lt.u32.totalorder %s1190_s7, %s1490_s0 }
  0x18   :  { %p1196_p10 = pnand %p1194_p9, %p1191_p8 }
  0x1a   :  { %1199 = shalt.err (!%p1196_p10)
}
  0x1b   :  { %s1200_s12 = scalar_lea.vmem %s19_s30, 2048  ;;  %p1205_p12 = scmp.lt.s32.totalorder %s19_s30, %s19_s30 }
  0x1c   :  { %p1201_p11 = scmp.ne.s32.totalorder %s19_s30, %s1200_s12  ;;  %p1206_p13 = scmp.lt.s32.totalorder %s1200_s12, %s1200_s12 }
  0x1e   :  { %p1207_p0 = por %p1206_p13, %p1205_p12 }
  0x20   :  { %p1208_p1 = pnand %p1207_p0, %p1201_p11 }
  0x22   :  { %1211 = shalt.err (!%p1208_p1)
}
  0x23   :  { %s1290_s1 = smov 128   ;;  %s1291_s13 = smov 8  }
  0x24   :  { %24 = dma.hbm_to_vmem [thread:$0]  %s1490_s0, 2048, %s19_s30, [#allocation3], %s1290_s1, %s1290_s1, %s1291_s13  }
  0x25   :  { %s1292_s16 = smov [#allocation7]   ;;  %s1293_s18 = smov [#allocation8]  }
  0x26   :  { %s43_s17 = sshll.u32 %s1292_s16, 4  ;;  %s53_s19 = sshll.u32 %s1293_s18, 4  ;;  %s44_s17 = int_to_ptr.vmem [resolvable:$true] %s43_s17  ;;  %s54_s19 = int_to_ptr.vmem [resolvable:$true] %s53_s19 }
  0x27   :  { %s1212_s22 = scalar_lea.hbm %s1492_s2, 48 }
  0x28   :  { %p1213_p2 = scmp.ne.s32.totalorder %s1492_s2, %s1212_s22  ;;  %p1216_p3 = scmp.lt.u32.totalorder %s1212_s22, %s1492_s2 }
  0x2a   :  { %p1218_p4 = pnand %p1216_p3, %p1213_p2 }
  0x2c   :  { %1221 = shalt.err (!%p1218_p4)
}
  0x2d   :  { %s1222_s0 = scalar_lea.vmem %s44_s17, 48  ;;  %s1226_s27 = scalar_lea.vmem %s44_s17, 64 }
  0x2e   :  { %p1223_p5 = scmp.ne.s32.totalorder %s44_s17, %s1222_s0  ;;  %p1227_p6 = scmp.lt.s32.totalorder %s44_s17, %s44_s17 }
  0x2f   :  { %p1228_p7 = scmp.lt.s32.totalorder %s1226_s27, %s1222_s0 }
  0x31   :  { %p1229_p8 = por %p1228_p7, %p1227_p6 }
  0x33   :  { %p1230_p9 = pnand %p1229_p8, %p1223_p5 }
  0x35   :  { %1233 = shalt.err (!%p1230_p9)
}
  0x36   :  { %46 = dma.hbm_to_vmem [thread:$0]  %s1492_s2, 48, %s44_s17, [#allocation6]  }
  0x37   :  { %s1234_s6 = scalar_lea.hbm %s1493_s3, 48 }
  0x38   :  { %p1235_p10 = scmp.ne.s32.totalorder %s1493_s3, %s1234_s6  ;;  %p1238_p11 = scmp.lt.u32.totalorder %s1234_s6, %s1493_s3 }
  0x3a   :  { %p1240_p12 = pnand %p1238_p11, %p1235_p10 }
  0x3c   :  { %1243 = shalt.err (!%p1240_p12)
}
  0x3d   :  { %s1244_s11 = scalar_lea.vmem %s54_s19, 48  ;;  %s1248_s12 = scalar_lea.vmem %s54_s19, 64 }
  0x3e   :  { %p1245_p13 = scmp.ne.s32.totalorder %s54_s19, %s1244_s11  ;;  %p1249_p0 = scmp.lt.s32.totalorder %s54_s19, %s54_s19 }
  0x3f   :  { %p1250_p1 = scmp.lt.s32.totalorder %s1248_s12, %s1244_s11 }
  0x41   :  { %p1251_p2 = por %p1250_p1, %p1249_p0 }
  0x43   :  { %p1252_p3 = pnand %p1251_p2, %p1245_p13 }
  0x45   :  { %1255 = shalt.err (!%p1252_p3)
}
  0x46   :  { %56 = dma.hbm_to_vmem [thread:$0]  %s1493_s3, 48, %s54_s19, [#allocation9]  }
  0x47   :  { %1278 = dma.done.wait [#allocation3], 2048  }
  0x48   :  { %1279 = vsyncadd [#allocation3], 4294965248 }
  0x49   :  { %1280 = dma.done.wait [#allocation6], 6192  }
  0x4a   :  { %1281 = vsyncadd [#allocation6], 4294961104 }
  0x4b   :  { %1282 = dma.done.wait [#allocation9], 48  }
  0x4c   :  { %1283 = vsyncadd [#allocation9], 4294967248  ;;  %v1080_v0 = vld [vmem:[#allocation5 + $0x4] ss:$12 sps:$4 sm:$0xff]   ;;  %v1082_v1 = vld [vmem:[#allocation5] ss:$12 sps:$4 sm:$0xff]  }
  0x4d   :  { %486 = vmatprep.subr.bf16.mxu0 %v1080_v0  ;;  %v1083_v2 = vld [vmem:[#allocation5 + $0x1c] ss:$12 sps:$4 sm:$0xff]   ;;  %v1085_v3 = vld [vmem:[#allocation5 + $0x18] ss:$12 sps:$4 sm:$0xff]   ;;  %v1086_v4 = vld [vmem:[#allocation5 + $0x34] ss:$12 sps:$4 sm:$0xff]   ;;  %v698_v0 = vlaneseq }
  0x4e   :  { %487 = vmatpush1.bf16.msra.mxu0 %v1082_v1  ;;  %v1088_v5 = vld [vmem:[#allocation5 + $0x30] ss:$12 sps:$4 sm:$0xff]   ;;  %v1089_v6 = vld [vmem:[#allocation5 + $0x4c] ss:$12 sps:$4 sm:$0xff]   ;;  %v1101_v7 = vld [vmem:[#allocation5 + $0xc8] ss:$12 sps:$4 sm:$0xff]  }
  0x4f   :  { %488 = vmatprep.subr.bf16.mxu0 %v1083_v2  ;;  %v1091_v8 = vld [vmem:[#allocation5 + $0x48] ss:$12 sps:$4 sm:$0xff]   ;;  %v1092_v9 = vld [vmem:[#allocation5 + $0x64] ss:$12 sps:$4 sm:$0xff]   ;;  %1005 = vmatprep.subr.bf16.mxu1 %v1101_v7  ;;  %v1106_v11 = vld [vmem:[#allocation5 + $0xe0] ss:$12 sps:$4 sm:$0xff]  }
  0x50   :  { %v1104_v10 = vld [vmem:[#allocation5 + $0x8] ss:$12 sps:$4 sm:$0xff]   ;;  %v1094_v12 = vld [vmem:[#allocation5 + $0x60] ss:$12 sps:$4 sm:$0xff]   ;;  %v1111_v15 = vld [vmem:[#allocation5 + $0xf8] ss:$12 sps:$4 sm:$0xff]  }
  0x51   :  { %1006 = vmatpush3.bf16.msra.mxu1 %v1104_v10  ;;  %v1095_v13 = vld [vmem:[#allocation5 + $0x7c] ss:$12 sps:$4 sm:$0xff]   ;;  %v1109_v14 = vld [vmem:[#allocation5 + $0x20] ss:$12 sps:$4 sm:$0xff]   ;;  %v1097_v16 = vld [vmem:[#allocation5 + $0x78] ss:$12 sps:$4 sm:$0xff]  }
  0x52   :  { %489 = vmatpush1.bf16.msra.mxu0 %v1085_v3  ;;  %1007 = vmatprep.subr.bf16.mxu1 %v1106_v11  ;;  %v1114_v17 = vld [vmem:[#allocation5 + $0x38] ss:$12 sps:$4 sm:$0xff]   ;;  %v1098_v18 = vld [vmem:[#allocation5 + $0x94] ss:$12 sps:$4 sm:$0xff]   ;;  %v1116_v19 = vld [vmem:[#allocation5 + $0x110] ss:$12 sps:$4 sm:$0xff]  }
  0x53   :  { %490 = vmatprep.subr.bf16.mxu0 %v1086_v4  ;;  %v1100_v20 = vld [vmem:[#allocation5 + $0x90] ss:$12 sps:$4 sm:$0xff]   ;;  %v1121_v22 = vld [vmem:[#allocation5 + $0x128] ss:$12 sps:$4 sm:$0xff]   ;;  %v1102_v23 = vld [vmem:[#allocation5 + $0xac] ss:$12 sps:$4 sm:$0xff]  }
  0x54   :  { %v1119_v21 = vld [vmem:[#allocation5 + $0x50] ss:$12 sps:$4 sm:$0xff]   ;;  %v1105_v24 = vld [vmem:[#allocation5 + $0xa8] ss:$12 sps:$4 sm:$0xff]   ;;  %v1126_v26 = vld [vmem:[#allocation5 + $0x140] ss:$12 sps:$4 sm:$0xff]  }
  0x55   :  { %1008 = vmatpush3.bf16.msra.mxu1 %v1109_v14  ;;  %v1124_v25 = vld [vmem:[#allocation5 + $0x68] ss:$12 sps:$4 sm:$0xff]   ;;  %v1107_v27 = vld [vmem:[#allocation5 + $0xc4] ss:$12 sps:$4 sm:$0xff]   ;;  %v1110_v28 = vld [vmem:[#allocation5 + $0xc0] ss:$12 sps:$4 sm:$0xff]  }
  0x56   :  { %491 = vmatpush1.bf16.msra.mxu0 %v1088_v5  ;;  %1009 = vmatprep.subr.bf16.mxu1 %v1111_v15  ;;  %v1129_v29 = vld [vmem:[#allocation5 + $0x80] ss:$12 sps:$4 sm:$0xff]   ;;  %v1131_v30 = vld [vmem:[#allocation5 + $0x158] ss:$12 sps:$4 sm:$0xff]   ;;  %v1112_v31 = vld [vmem:[#allocation5 + $0xdc] ss:$12 sps:$4 sm:$0xff]  }
  0x57   :  { %492 = vmatprep.subr.bf16.mxu0 %v1089_v6  ;;  %v1134_v32 = vld [vmem:[#allocation5 + $0x98] ss:$12 sps:$4 sm:$0xff]   ;;  %v1136_v34 = vld [vmem:[#allocation5 + $0x170] ss:$12 sps:$4 sm:$0xff]   ;;  %v1117_v35 = vld [vmem:[#allocation5 + $0xf4] ss:$12 sps:$4 sm:$0xff]  }
  0x58   :  { %v1115_v33 = vld [vmem:[#allocation5 + $0xd8] ss:$12 sps:$4 sm:$0xff]   ;;  %v1139_v37 = vld [vmem:[#allocation5 + $0xb0] ss:$12 sps:$4 sm:$0xff]   ;;  %v1141_v40 = vld [vmem:[#allocation2] ss:$8 sps:$4 sm:$0xff]  }
  0x59   :  { %1010 = vmatpush3.bf16.msra.mxu1 %v1114_v17  ;;  %v1143_v36 = vld [vmem:[#allocation2 + $0x4] ss:$8 sps:$4 sm:$0xff]   ;;  %v1120_v38 = vld [vmem:[#allocation5 + $0xf0] ss:$12 sps:$4 sm:$0xff]   ;;  %v1125_v42 = vld [vmem:[#allocation5 + $0x108] ss:$12 sps:$4 sm:$0xff]  }
  0x5a   :  { %493 = vmatpush1.bf16.msra.mxu0 %v1091_v8  ;;  %1011 = vmatprep.subr.bf16.mxu1 %v1116_v19  ;;  %v1122_v39 = vld [vmem:[#allocation5 + $0x10c] ss:$12 sps:$4 sm:$0xff]   ;;  %v1147_v41 = vld [vmem:[#allocation2 + $0x14] ss:$8 sps:$4 sm:$0xff]   ;;  %v1127_v43 = vld [vmem:[#allocation5 + $0x124] ss:$12 sps:$4 sm:$0xff]  }
  0x5b   :  { %494 = vmatprep.subr.bf16.mxu0 %v1092_v9  ;;  %631 = vmatprep.mubr.bf16.mxu1 %v1143_v36  ;;  %v1130_v44 = vld [vmem:[#allocation5 + $0x120] ss:$12 sps:$4 sm:$0xff]   ;;  %v1132_v45 = vld [vmem:[#allocation5 + $0x13c] ss:$12 sps:$4 sm:$0xff]   ;;  %v1149_v46 = vld [vmem:[#allocation2 + $0x10] ss:$8 sps:$4 sm:$0xff]  }
  0x5c   :  { %518 = vmatprep.mubr.bf16.mxu0 %v1143_v36  ;;  %v1150_v47 = vld [vmem:[#allocation2 + $0x24] ss:$8 sps:$4 sm:$0xff]   ;;  %v1137_v49 = vld [vmem:[#allocation5 + $0x154] ss:$12 sps:$4 sm:$0xff]   ;;  %v1140_v50 = vld [vmem:[#allocation5 + $0x150] ss:$12 sps:$4 sm:$0xff]  }
  0x5d   :  { %1012 = vmatpush3.bf16.msra.mxu1 %v1119_v21  ;;  %v1135_v48 = vld [vmem:[#allocation5 + $0x138] ss:$12 sps:$4 sm:$0xff]   ;;  %v1152_v52 = vld [vmem:[#allocation2 + $0x20] ss:$8 sps:$4 sm:$0xff]   ;;  %v1153_v53 = vld [vmem:[#allocation2 + $0x34] ss:$8 sps:$4 sm:$0xff]  }
  0x5e   :  { %495 = vmatpush1.bf16.msra.mxu0 %v1094_v12  ;;  %1013 = vmatprep.subr.bf16.mxu1 %v1121_v22  ;;  %v1144_v51 = vld [vmem:[#allocation5 + $0x16c] ss:$12 sps:$4 sm:$0xff]   ;;  %v1146_v54 = vld [vmem:[#allocation5 + $0x168] ss:$12 sps:$4 sm:$0xff]   ;;  %v699_v1 = vshrl.u32 %v698_v0, 7  ;;  %s1294_s3 = smov [#allocation10]  }
  0x5f   :  { %496 = vmatprep.subr.bf16.mxu0 %v1095_v13  ;;  %v1155_v55 = vld [vmem:[#allocation2 + $0x30] ss:$8 sps:$4 sm:$0xff]   ;;  %v1156_v56 = vld [vmem:[#allocation2 + $0x44] ss:$8 sps:$4 sm:$0xff]   ;;  %v1158_v57 = vld [vmem:[#allocation2 + $0x40] ss:$8 sps:$4 sm:$0xff]  }
  0x60   :  { %v1159_v58 = vld [vmem:[#allocation2 + $0x54] ss:$8 sps:$4 sm:$0xff]   ;;  %v1161_v59 = vld [vmem:[#allocation2 + $0x50] ss:$8 sps:$4 sm:$0xff]   ;;  %v1162_v60 = vld [vmem:[#allocation2 + $0x64] ss:$8 sps:$4 sm:$0xff]  }
  0x61   :  { %1014 = vmatpush3.bf16.msra.mxu1 %v1124_v25  ;;  %v1164_v61 = vld [vmem:[#allocation2 + $0x60] ss:$8 sps:$4 sm:$0xff]   ;;  %v1165_v62 = vld [vmem:[#allocation2 + $0x74] ss:$8 sps:$4 sm:$0xff]   ;;  %v1167_v63 = vld [vmem:[#allocation2 + $0x70] ss:$8 sps:$4 sm:$0xff]  }
  0x62   :  { %497 = vmatpush1.bf16.msra.mxu0 %v1097_v16  ;;  %1015 = vmatprep.subr.bf16.mxu1 %v1126_v26  ;;  %v708_v2 = vsub.s32 2, %v699_v1  ;;  %v696_v3 = vld [vmem:[#allocation7] sm:$0x7]  ;;  %v761_v4 = vld [vmem:[#allocation8] sm:$0x7]  ;;  %v700_v26 = vsub.s32 0, %v699_v1 }
  0x63   :  { %498 = vmatprep.subr.bf16.mxu0 %v1098_v18  ;;  %s927_s13 = sshll.u32 %s1294_s3, 4  ;;  %s928_s13 = int_to_ptr.vmem [resolvable:$true] %s927_s13 }
  0x64   :  { %v1370_v6 = vrot.slane %v696_v3, %v708_v2  ;;  %v1372_v9 = vrot.slane %v761_v4, %v708_v2  ;;  %s1256_s14 = scalar_lea.vmem %s928_s13, 6144  ;;  %p1261_p5 = scmp.lt.s32.totalorder %s928_s13, %s928_s13 }
  0x65   :  { %1016 = vmatpush3.bf16.msra.mxu1 %v1129_v29  ;;  %v704_v29 = vsub.s32 1, %v699_v1  ;;  %p1257_p4 = scmp.ne.s32.totalorder %s928_s13, %s1256_s14  ;;  %p1262_p6 = scmp.lt.s32.totalorder %s1256_s14, %s1256_s14 }
  0x66   :  { %499 = vmatpush1.bf16.msra.mxu0 %v1100_v20  ;;  %1017 = vmatprep.subr.bf16.mxu1 %v1131_v30 }
  0x67   :  { %500 = vmatprep.subr.bf16.mxu0 %v1102_v23  ;;  %p1263_p7 = por %p1262_p6, %p1261_p5 }
  0x69   :  { %1018 = vmatpush3.bf16.msra.mxu1 %v1134_v32  ;;  %p1264_p8 = pnand %p1263_p7, %p1257_p4 }
  0x6a   :  { %501 = vmatpush1.bf16.msra.mxu0 %v1105_v24  ;;  %1019 = vmatprep.subr.bf16.mxu1 %v1136_v34  ;;  %v1382_v34 = vrot.slane %v696_v3, %v700_v26 }
  0x6b   :  { %502 = vmatprep.subr.bf16.mxu0 %v1107_v27 }
  0x6d   :  { %1020 = vmatpush3.bf16.msra.mxu1 %v1139_v37 }
  0x6e   :  { %503 = vmatpush1.bf16.msra.mxu0 %v1110_v28 }
  0x6f   :  { %504 = vmatprep.subr.bf16.mxu0 %v1112_v31 }
  0x70   :  { %632 = vmatmul.mubr.bf16.vlgmr.msra.gmra.mrb[0].mxu1 %v1141_v40 }
  0x71   :  { %639 = vmatprep.mubr.bf16.mxu1 %v1147_v41 }
  0x72   :  { %505 = vmatpush1.bf16.msra.mxu0 %v1115_v33 }
  0x73   :  { %506 = vmatprep.subr.bf16.mxu0 %v1117_v35 }
  0x76   :  { %507 = vmatpush1.bf16.msra.mxu0 %v1120_v38  ;;  %v1384_v38 = vrot.slane %v696_v3, %v704_v29 }
  0x77   :  { %508 = vmatprep.subr.bf16.mxu0 %v1122_v39 }
  0x78   :  { %640 = vmatmul.mubr.bf16.gmra.mrb[4].mxu1 %v1149_v46 }
  0x79   :  { %647 = vmatprep.mubr.bf16.mxu1 %v1150_v47 }
  0x7a   :  { %509 = vmatpush1.bf16.msra.mxu0 %v1125_v42 }
  0x7b   :  { %510 = vmatprep.subr.bf16.mxu0 %v1127_v43 }
  0x7e   :  { %511 = vmatpush1.bf16.msra.mxu0 %v1130_v44  ;;  %v1389_v44 = vrot.slane %v761_v4, %v704_v29 }
  0x7f   :  { %512 = vmatprep.subr.bf16.mxu0 %v1132_v45 }
  0x80   :  { %648 = vmatmul.mubr.bf16.gmra.mrb[8].mxu1 %v1152_v52 }
  0x81   :  { %655 = vmatprep.mubr.bf16.mxu1 %v1153_v53 }
  0x82   :  { %513 = vmatpush1.bf16.msra.mxu0 %v1135_v48 }
  0x83   :  { %514 = vmatprep.subr.bf16.mxu0 %v1137_v49 }
  0x86   :  { %515 = vmatpush1.bf16.msra.mxu0 %v1140_v50 }
  0x87   :  { %516 = vmatprep.subr.bf16.mxu0 %v1144_v51 }
  0x88   :  { %656 = vmatmul.mubr.bf16.gmra.mrb[12].mxu1 %v1155_v55 }
  0x89   :  { %663 = vmatprep.mubr.bf16.mxu1 %v1156_v56 }
  0x8a   :  { %517 = vmatpush1.bf16.msra.mxu0 %v1146_v54 }
  0x8d   :  { %519 = vmatmul.mubr.bf16.vlgmr.msra.gmra.mrb[0].mxu0 %v1141_v40  ;;  %v1386_v40 = vrot.slane %v761_v4, %v700_v26 }
  0x8e   :  { %528 = vmatprep.mubr.bf16.mxu0 %v1147_v41 }
  0x90   :  { %664 = vmatmul.mubr.bf16.gmra.mrb[16].mxu1 %v1158_v57 }
  0x91   :  { %671 = vmatprep.mubr.bf16.mxu1 %v1159_v58 }
  0x95   :  { %529 = vmatmul.mubr.bf16.gmra.mrb[4].mxu0 %v1149_v46 }
  0x96   :  { %538 = vmatprep.mubr.bf16.mxu0 %v1150_v47 }
  0x98   :  { %672 = vmatmul.mubr.bf16.gmra.mrb[20].mxu1 %v1161_v59 }
  0x99   :  { %679 = vmatprep.mubr.bf16.mxu1 %v1162_v60 }
  0x9d   :  { %539 = vmatmul.mubr.bf16.gmra.mrb[8].mxu0 %v1152_v52 }
  0x9e   :  { %548 = vmatprep.mubr.bf16.mxu0 %v1153_v53 }
  0xa0   :  { %680 = vmatmul.mubr.bf16.gmra.mrb[24].mxu1 %v1164_v61 }
  0xa1   :  { %687 = vmatprep.mubr.bf16.mxu1 %v1165_v62 }
  0xa5   :  { %549 = vmatmul.mubr.bf16.gmra.mrb[12].mxu0 %v1155_v55 }
  0xa6   :  { %558 = vmatprep.mubr.bf16.mxu0 %v1156_v56 }
  0xa8   :  { %688 = vmatmul.mubr.bf16.gmra.mrb[28].mxu1 %v1167_v63 }
  0xad   :  { %559 = vmatmul.mubr.bf16.gmra.mrb[16].mxu0 %v1158_v57 }
  0xae   :  { %568 = vmatprep.mubr.bf16.mxu0 %v1159_v58 }
  0xb5   :  { %569 = vmatmul.mubr.bf16.gmra.mrb[20].mxu0 %v1161_v59 }
  0xb6   :  { %578 = vmatprep.mubr.bf16.mxu0 %v1162_v60 }
  0xbd   :  { %579 = vmatmul.mubr.bf16.gmra.mrb[24].mxu0 %v1164_v61 }
  0xbe   :  { %588 = vmatprep.mubr.bf16.mxu0 %v1165_v62 }
  0xc5   :  { %589 = vmatmul.mubr.bf16.gmra.mrb[28].mxu0 %v1167_v63 }
 0x143   :  { %v1021_v5 = vpop.f32.mrb[0].mxu1 }
 0x144   :  { %v1022_v7 = vpop.f32.mrb[1].mxu1 }
 0x145   :  { %v1023_v8 = vadd.f32 %v1022_v7, %v1021_v5  ;;  %v1024_v10 = vpop.f32.mrb[2].mxu1 }
 0x146   :  { %v1025_v11 = vpop.f32.mrb[3].mxu1 }
 0x147   :  { %v715_v12 = vmul.f32 %v1023_v8, %v1370_v6  ;;  %v1026_v13 = vadd.f32 %v1025_v11, %v1024_v10 }
 0x149   :  { %v780_v14 = vadd.f32 %v1372_v9, %v715_v12  ;;  %v718_v15 = vmul.f32 %v1026_v13, %v1370_v6 }
 0x14b   :  { %v828_v16 = vmax.f32 %v780_v14, 0.0  ;;  %v783_v17 = vadd.f32 %v1372_v9, %v718_v15  ;;  %v1027_v18 = vpop.f32.mrb[4].mxu1 }
 0x14c   :  { %v1028_v19 = vpop.f32.mrb[5].mxu1 }
 0x14d   :  { %876 = vst [vmem:[#allocation10 + $0x10] sm:$0xff] %v828_v16  ;;  %v831_v20 = vmax.f32 %v783_v17, 0.0  ;;  %v1029_v21 = vadd.f32 %v1028_v19, %v1027_v18  ;;  %v1030_v22 = vpop.f32.mrb[6].mxu1 }
 0x14e   :  { %v1031_v23 = vpop.f32.mrb[7].mxu1 }
 0x14f   :  { %879 = vst [vmem:[#allocation10 + $0x28] sm:$0xff] %v831_v20  ;;  %v721_v24 = vmul.f32 %v1029_v21, %v1370_v6  ;;  %v1032_v25 = vadd.f32 %v1031_v23, %v1030_v22 }
 0x151   :  { %v786_v27 = vadd.f32 %v1372_v9, %v721_v24  ;;  %v724_v28 = vmul.f32 %v1032_v25, %v1370_v6 }
 0x153   :  { %v834_v30 = vmax.f32 %v786_v27, 0.0  ;;  %v789_v31 = vadd.f32 %v1372_v9, %v724_v28  ;;  %v1033_v32 = vpop.f32.mrb[8].mxu1 }
 0x154   :  { %v1034_v33 = vpop.f32.mrb[9].mxu1 }
 0x155   :  { %882 = vst [vmem:[#allocation10 + $0x40] sm:$0xff] %v834_v30  ;;  %v837_v35 = vmax.f32 %v789_v31, 0.0  ;;  %v1035_v36 = vadd.f32 %v1034_v33, %v1033_v32  ;;  %v1036_v37 = vpop.f32.mrb[10].mxu1 }
 0x156   :  { %v1037_v39 = vpop.f32.mrb[11].mxu1 }
 0x157   :  { %885 = vst [vmem:[#allocation10 + $0x58] sm:$0xff] %v837_v35  ;;  %v727_v41 = vmul.f32 %v1035_v36, %v1370_v6  ;;  %v1038_v42 = vadd.f32 %v1037_v39, %v1036_v37 }
 0x159   :  { %v792_v47 = vadd.f32 %v1372_v9, %v727_v41  ;;  %v730_v48 = vmul.f32 %v1038_v42, %v1370_v6 }
 0x15b   :  { %v840_v54 = vmax.f32 %v792_v47, 0.0  ;;  %v795_v55 = vadd.f32 %v1372_v9, %v730_v48  ;;  %v1039_v56 = vpop.f32.mrb[12].mxu1 }
 0x15c   :  { %v1040_v59 = vpop.f32.mrb[13].mxu1 }
 0x15d   :  { %888 = vst [vmem:[#allocation10 + $0x70] sm:$0xff] %v840_v54  ;;  %v843_v62 = vmax.f32 %v795_v55, 0.0  ;;  %v1041_v63 = vadd.f32 %v1040_v59, %v1039_v56  ;;  %v1042_v0 = vpop.f32.mrb[14].mxu1 }
 0x15e   :  { %v1043_v3 = vpop.f32.mrb[15].mxu1 }
 0x15f   :  { %891 = vst [vmem:[#allocation10 + $0x88] sm:$0xff] %v843_v62  ;;  %v733_v5 = vmul.f32 %v1041_v63, %v1370_v6  ;;  %v1044_v7 = vadd.f32 %v1043_v3, %v1042_v0 }
 0x160   :  { %v520_v43 = vpop.f32.mrb[0].mxu0 }
 0x161   :  { %v713_v45 = vmul.f32 %v1382_v34, %v520_v43  ;;  %v522_v46 = vpop.f32.mrb[1].mxu0  ;;  %v798_v13 = vadd.f32 %v1372_v9, %v733_v5  ;;  %v736_v14 = vmul.f32 %v1044_v7, %v1370_v6 }
 0x162   :  { %v714_v49 = vmul.f32 %v1384_v38, %v522_v46  ;;  %v524_v50 = vpop.f32.mrb[2].mxu0 }
 0x163   :  { %v778_v51 = vadd.f32 %v1386_v40, %v713_v45  ;;  %v716_v52 = vmul.f32 %v1382_v34, %v524_v50  ;;  %v526_v53 = vpop.f32.mrb[3].mxu0  ;;  %v846_v20 = vmax.f32 %v798_v13, 0.0  ;;  %v801_v21 = vadd.f32 %v1372_v9, %v736_v14  ;;  %v1045_v22 = vpop.f32.mrb[16].mxu1 }
 0x164   :  { %v779_v57 = vadd.f32 %v1389_v44, %v714_v49  ;;  %v717_v58 = vmul.f32 %v1384_v38, %v526_v53  ;;  %v1046_v25 = vpop.f32.mrb[17].mxu1 }
 0x165   :  { %v826_v60 = vmax.f32 %v778_v51, 0.0  ;;  %v781_v61 = vadd.f32 %v1386_v40, %v716_v52  ;;  %894 = vst [vmem:[#allocation10 + $0xa0] sm:$0xff] %v846_v20  ;;  %v849_v28 = vmax.f32 %v801_v21, 0.0  ;;  %v1047_v29 = vadd.f32 %v1046_v25, %v1045_v22  ;;  %v1048_v30 = vpop.f32.mrb[18].mxu1 }
 0x166   :  { %v827_v1 = vmax.f32 %v779_v57, 0.0  ;;  %v782_v2 = vadd.f32 %v1389_v44, %v717_v58  ;;  %v1049_v33 = vpop.f32.mrb[19].mxu1 }
 0x167   :  { %874 = vst [vmem:[#allocation10] sm:$0xff] %v826_v60  ;;  %v829_v4 = vmax.f32 %v781_v61, 0.0  ;;  %897 = vst [vmem:[#allocation10 + $0xb8] sm:$0xff] %v849_v28  ;;  %v739_v36 = vmul.f32 %v1047_v29, %v1370_v6  ;;  %v1050_v37 = vadd.f32 %v1049_v33, %v1048_v30 }
 0x168   :  { %875 = vst [vmem:[#allocation10 + $0x8] sm:$0xff] %v827_v1  ;;  %v830_v8 = vmax.f32 %v782_v2, 0.0  ;;  %v530_v10 = vpop.f32.mrb[4].mxu0 }
 0x169   :  { %877 = vst [vmem:[#allocation10 + $0x18] sm:$0xff] %v829_v4  ;;  %v719_v11 = vmul.f32 %v1382_v34, %v530_v10  ;;  %v532_v12 = vpop.f32.mrb[5].mxu0  ;;  %v804_v45 = vadd.f32 %v1372_v9, %v739_v36  ;;  %v742_v46 = vmul.f32 %v1050_v37, %v1370_v6 }
 0x16a   :  { %878 = vst [vmem:[#allocation10 + $0x20] sm:$0xff] %v830_v8  ;;  %v720_v15 = vmul.f32 %v1384_v38, %v532_v12  ;;  %v534_v16 = vpop.f32.mrb[6].mxu0 }
 0x16b   :  { %v784_v17 = vadd.f32 %v1386_v40, %v719_v11  ;;  %v722_v18 = vmul.f32 %v1382_v34, %v534_v16  ;;  %v536_v19 = vpop.f32.mrb[7].mxu0  ;;  %v852_v52 = vmax.f32 %v804_v45, 0.0  ;;  %v807_v53 = vadd.f32 %v1372_v9, %v742_v46  ;;  %v1051_v54 = vpop.f32.mrb[20].mxu1 }
 0x16c   :  { %v785_v23 = vadd.f32 %v1389_v44, %v720_v15  ;;  %v723_v24 = vmul.f32 %v1384_v38, %v536_v19  ;;  %v1052_v57 = vpop.f32.mrb[21].mxu1 }
 0x16d   :  { %v832_v26 = vmax.f32 %v784_v17, 0.0  ;;  %v787_v27 = vadd.f32 %v1386_v40, %v722_v18  ;;  %900 = vst [vmem:[#allocation10 + $0xd0] sm:$0xff] %v852_v52  ;;  %v855_v60 = vmax.f32 %v807_v53, 0.0  ;;  %v1053_v61 = vadd.f32 %v1052_v57, %v1051_v54  ;;  %v1054_v62 = vpop.f32.mrb[22].mxu1 }
 0x16e   :  { %v833_v31 = vmax.f32 %v785_v23, 0.0  ;;  %v788_v32 = vadd.f32 %v1389_v44, %v723_v24  ;;  %v1055_v1 = vpop.f32.mrb[23].mxu1 }
 0x16f   :  { %880 = vst [vmem:[#allocation10 + $0x30] sm:$0xff] %v832_v26  ;;  %v835_v35 = vmax.f32 %v787_v27, 0.0  ;;  %903 = vst [vmem:[#allocation10 + $0xe8] sm:$0xff] %v855_v60  ;;  %v745_v3 = vmul.f32 %v1053_v61, %v1370_v6  ;;  %v1056_v4 = vadd.f32 %v1055_v1, %v1054_v62 }
 0x170   :  { %881 = vst [vmem:[#allocation10 + $0x38] sm:$0xff] %v833_v31  ;;  %v836_v39 = vmax.f32 %v788_v32, 0.0  ;;  %v540_v41 = vpop.f32.mrb[8].mxu0 }
 0x171   :  { %883 = vst [vmem:[#allocation10 + $0x48] sm:$0xff] %v835_v35  ;;  %v725_v42 = vmul.f32 %v1382_v34, %v540_v41  ;;  %v542_v43 = vpop.f32.mrb[9].mxu0  ;;  %v810_v11 = vadd.f32 %v1372_v9, %v745_v3  ;;  %v748_v12 = vmul.f32 %v1056_v4, %v1370_v6 }
 0x172   :  { %884 = vst [vmem:[#allocation10 + $0x50] sm:$0xff] %v836_v39  ;;  %v726_v47 = vmul.f32 %v1384_v38, %v542_v43  ;;  %v544_v48 = vpop.f32.mrb[10].mxu0 }
 0x173   :  { %v790_v49 = vadd.f32 %v1386_v40, %v725_v42  ;;  %v728_v50 = vmul.f32 %v1382_v34, %v544_v48  ;;  %v546_v51 = vpop.f32.mrb[11].mxu0  ;;  %v858_v18 = vmax.f32 %v810_v11, 0.0  ;;  %v813_v19 = vadd.f32 %v1372_v9, %v748_v12  ;;  %v1057_v20 = vpop.f32.mrb[24].mxu1 }
 0x174   :  { %v791_v55 = vadd.f32 %v1389_v44, %v726_v47  ;;  %v729_v56 = vmul.f32 %v1384_v38, %v546_v51  ;;  %v1058_v23 = vpop.f32.mrb[25].mxu1 }
 0x175   :  { %v838_v58 = vmax.f32 %v790_v49, 0.0  ;;  %v793_v59 = vadd.f32 %v1386_v40, %v728_v50  ;;  %906 = vst [vmem:[#allocation10 + $0x100] sm:$0xff] %v858_v18  ;;  %v861_v26 = vmax.f32 %v813_v19, 0.0  ;;  %v1059_v27 = vadd.f32 %v1058_v23, %v1057_v20  ;;  %v1060_v28 = vpop.f32.mrb[26].mxu1 }
 0x176   :  { %v839_v63 = vmax.f32 %v791_v55, 0.0  ;;  %v794_v0 = vadd.f32 %v1389_v44, %v729_v56  ;;  %v1061_v31 = vpop.f32.mrb[27].mxu1 }
 0x177   :  { %886 = vst [vmem:[#allocation10 + $0x60] sm:$0xff] %v838_v58  ;;  %v841_v2 = vmax.f32 %v793_v59, 0.0  ;;  %909 = vst [vmem:[#allocation10 + $0x118] sm:$0xff] %v861_v26  ;;  %v751_v33 = vmul.f32 %v1059_v27, %v1370_v6  ;;  %v1062_v35 = vadd.f32 %v1061_v31, %v1060_v28 }
 0x178   :  { %887 = vst [vmem:[#allocation10 + $0x68] sm:$0xff] %v839_v63  ;;  %v842_v5 = vmax.f32 %v794_v0, 0.0  ;;  %v550_v7 = vpop.f32.mrb[12].mxu0 }
 0x179   :  { %889 = vst [vmem:[#allocation10 + $0x78] sm:$0xff] %v841_v2  ;;  %v731_v8 = vmul.f32 %v1382_v34, %v550_v7  ;;  %v552_v10 = vpop.f32.mrb[13].mxu0  ;;  %v816_v42 = vadd.f32 %v1372_v9, %v751_v33  ;;  %v754_v43 = vmul.f32 %v1062_v35, %v1370_v6 }
 0x17a   :  { %890 = vst [vmem:[#allocation10 + $0x80] sm:$0xff] %v842_v5  ;;  %v732_v13 = vmul.f32 %v1384_v38, %v552_v10  ;;  %v554_v14 = vpop.f32.mrb[14].mxu0 }
 0x17b   :  { %v796_v15 = vadd.f32 %v1386_v40, %v731_v8  ;;  %v734_v16 = vmul.f32 %v1382_v34, %v554_v14  ;;  %v556_v17 = vpop.f32.mrb[15].mxu0  ;;  %v864_v50 = vmax.f32 %v816_v42, 0.0  ;;  %v819_v51 = vadd.f32 %v1372_v9, %v754_v43  ;;  %v1063_v52 = vpop.f32.mrb[28].mxu1 }
 0x17c   :  { %v797_v21 = vadd.f32 %v1389_v44, %v732_v13  ;;  %v735_v22 = vmul.f32 %v1384_v38, %v556_v17  ;;  %v1064_v55 = vpop.f32.mrb[29].mxu1 }
 0x17d   :  { %v844_v24 = vmax.f32 %v796_v15, 0.0  ;;  %v799_v25 = vadd.f32 %v1386_v40, %v734_v16  ;;  %912 = vst [vmem:[#allocation10 + $0x130] sm:$0xff] %v864_v50  ;;  %v867_v58 = vmax.f32 %v819_v51, 0.0  ;;  %v1065_v59 = vadd.f32 %v1064_v55, %v1063_v52  ;;  %v1066_v60 = vpop.f32.mrb[30].mxu1 }
 0x17e   :  { %v845_v29 = vmax.f32 %v797_v21, 0.0  ;;  %v800_v30 = vadd.f32 %v1389_v44, %v735_v22  ;;  %v1067_v63 = vpop.f32.mrb[31].mxu1 }
 0x17f   :  { %892 = vst [vmem:[#allocation10 + $0x90] sm:$0xff] %v844_v24  ;;  %v847_v32 = vmax.f32 %v799_v25, 0.0  ;;  %915 = vst [vmem:[#allocation10 + $0x148] sm:$0xff] %v867_v58  ;;  %v757_v1 = vmul.f32 %v1065_v59, %v1370_v6  ;;  %v1068_v2 = vadd.f32 %v1067_v63, %v1066_v60 }
 0x180   :  { %893 = vst [vmem:[#allocation10 + $0x98] sm:$0xff] %v845_v29  ;;  %v848_v36 = vmax.f32 %v800_v30, 0.0  ;;  %v560_v37 = vpop.f32.mrb[16].mxu0 }
 0x181   :  { %895 = vst [vmem:[#allocation10 + $0xa8] sm:$0xff] %v847_v32  ;;  %v737_v39 = vmul.f32 %v1382_v34, %v560_v37  ;;  %v562_v41 = vpop.f32.mrb[17].mxu0  ;;  %v822_v8 = vadd.f32 %v1372_v9, %v757_v1  ;;  %v760_v10 = vmul.f32 %v1068_v2, %v1370_v6 }
 0x182   :  { %896 = vst [vmem:[#allocation10 + $0xb0] sm:$0xff] %v848_v36  ;;  %v738_v45 = vmul.f32 %v1384_v38, %v562_v41  ;;  %v564_v46 = vpop.f32.mrb[18].mxu0 }
 0x183   :  { %v802_v47 = vadd.f32 %v1386_v40, %v737_v39  ;;  %v740_v48 = vmul.f32 %v1382_v34, %v564_v46  ;;  %v566_v49 = vpop.f32.mrb[19].mxu0  ;;  %v870_v16 = vmax.f32 %v822_v8, 0.0  ;;  %v825_v17 = vadd.f32 %v1372_v9, %v760_v10 }
 0x184   :  { %v803_v53 = vadd.f32 %v1389_v44, %v738_v45  ;;  %v741_v54 = vmul.f32 %v1384_v38, %v566_v49 }
 0x185   :  { %v850_v56 = vmax.f32 %v802_v47, 0.0  ;;  %v805_v57 = vadd.f32 %v1386_v40, %v740_v48  ;;  %918 = vst [vmem:[#allocation10 + $0x160] sm:$0xff] %v870_v16  ;;  %v873_v6 = vmax.f32 %v825_v17, 0.0 }
 0x186   :  { %v851_v61 = vmax.f32 %v803_v53, 0.0  ;;  %v806_v62 = vadd.f32 %v1389_v44, %v741_v54 }
 0x187   :  { %898 = vst [vmem:[#allocation10 + $0xc0] sm:$0xff] %v850_v56  ;;  %v853_v0 = vmax.f32 %v805_v57, 0.0  ;;  %921 = vst [vmem:[#allocation10 + $0x178] sm:$0xff] %v873_v6 }
 0x188   :  { %899 = vst [vmem:[#allocation10 + $0xc8] sm:$0xff] %v851_v61  ;;  %v854_v3 = vmax.f32 %v806_v62, 0.0  ;;  %v570_v4 = vpop.f32.mrb[20].mxu0 }
 0x189   :  { %901 = vst [vmem:[#allocation10 + $0xd8] sm:$0xff] %v853_v0  ;;  %v743_v5 = vmul.f32 %v1382_v34, %v570_v4  ;;  %v572_v7 = vpop.f32.mrb[21].mxu0 }
 0x18a   :  { %902 = vst [vmem:[#allocation10 + $0xe0] sm:$0xff] %v854_v3  ;;  %v744_v11 = vmul.f32 %v1384_v38, %v572_v7  ;;  %v574_v12 = vpop.f32.mrb[22].mxu0 }
 0x18b   :  { %v808_v13 = vadd.f32 %v1386_v40, %v743_v5  ;;  %v746_v14 = vmul.f32 %v1382_v34, %v574_v12  ;;  %v576_v15 = vpop.f32.mrb[23].mxu0 }
 0x18c   :  { %v809_v18 = vadd.f32 %v1389_v44, %v744_v11  ;;  %v747_v19 = vmul.f32 %v1384_v38, %v576_v15 }
 0x18d   :  { %v856_v20 = vmax.f32 %v808_v13, 0.0  ;;  %v811_v21 = vadd.f32 %v1386_v40, %v746_v14 }
 0x18e   :  { %v857_v22 = vmax.f32 %v809_v18, 0.0  ;;  %v812_v23 = vadd.f32 %v1389_v44, %v747_v19 }
 0x18f   :  { %904 = vst [vmem:[#allocation10 + $0xf0] sm:$0xff] %v856_v20  ;;  %v859_v24 = vmax.f32 %v811_v21, 0.0 }
 0x190   :  { %905 = vst [vmem:[#allocation10 + $0xf8] sm:$0xff] %v857_v22  ;;  %v860_v25 = vmax.f32 %v812_v23, 0.0  ;;  %v580_v26 = vpop.f32.mrb[24].mxu0 }
 0x191   :  { %907 = vst [vmem:[#allocation10 + $0x108] sm:$0xff] %v859_v24  ;;  %v749_v9 = vmul.f32 %v1382_v34, %v580_v26  ;;  %v582_v27 = vpop.f32.mrb[25].mxu0 }
 0x192   :  { %908 = vst [vmem:[#allocation10 + $0x110] sm:$0xff] %v860_v25  ;;  %v750_v28 = vmul.f32 %v1384_v38, %v582_v27  ;;  %v584_v29 = vpop.f32.mrb[26].mxu0 }
 0x193   :  { %v814_v30 = vadd.f32 %v1386_v40, %v749_v9  ;;  %v752_v31 = vmul.f32 %v1382_v34, %v584_v29  ;;  %v586_v32 = vpop.f32.mrb[27].mxu0 }
 0x194   :  { %v815_v33 = vadd.f32 %v1389_v44, %v750_v28  ;;  %v753_v35 = vmul.f32 %v1384_v38, %v586_v32 }
 0x195   :  { %v862_v36 = vmax.f32 %v814_v30, 0.0  ;;  %v817_v37 = vadd.f32 %v1386_v40, %v752_v31 }
 0x196   :  { %v863_v39 = vmax.f32 %v815_v33, 0.0  ;;  %v818_v41 = vadd.f32 %v1389_v44, %v753_v35 }
 0x197   :  { %910 = vst [vmem:[#allocation10 + $0x120] sm:$0xff] %v862_v36  ;;  %v865_v42 = vmax.f32 %v817_v37, 0.0 }
 0x198   :  { %911 = vst [vmem:[#allocation10 + $0x128] sm:$0xff] %v863_v39  ;;  %v866_v43 = vmax.f32 %v818_v41, 0.0  ;;  %v590_v45 = vpop.f32.mrb[28].mxu0 }
 0x199   :  { %913 = vst [vmem:[#allocation10 + $0x138] sm:$0xff] %v865_v42  ;;  %v755_v46 = vmul.f32 %v1382_v34, %v590_v45  ;;  %v592_v47 = vpop.f32.mrb[29].mxu0 }
 0x19a   :  { %914 = vst [vmem:[#allocation10 + $0x140] sm:$0xff] %v866_v43  ;;  %v756_v48 = vmul.f32 %v1384_v38, %v592_v47  ;;  %v594_v49 = vpop.f32.mrb[30].mxu0 }
 0x19b   :  { %v820_v50 = vadd.f32 %v1386_v40, %v755_v46  ;;  %v758_v51 = vmul.f32 %v1382_v34, %v594_v49  ;;  %v596_v52 = vpop.f32.mrb[31].mxu0 }
 0x19c   :  { %v821_v53 = vadd.f32 %v1389_v44, %v756_v48  ;;  %v759_v54 = vmul.f32 %v1384_v38, %v596_v52 }
 0x19d   :  { %v868_v55 = vmax.f32 %v820_v50, 0.0  ;;  %v823_v56 = vadd.f32 %v1386_v40, %v758_v51 }
 0x19e   :  { %v869_v57 = vmax.f32 %v821_v53, 0.0  ;;  %v824_v58 = vadd.f32 %v1389_v44, %v759_v54 }
 0x19f   :  { %916 = vst [vmem:[#allocation10 + $0x150] sm:$0xff] %v868_v55  ;;  %v871_v59 = vmax.f32 %v823_v56, 0.0 }
 0x1a0   :  { %917 = vst [vmem:[#allocation10 + $0x158] sm:$0xff] %v869_v57  ;;  %v872_v60 = vmax.f32 %v824_v58, 0.0 }
 0x1a1   :  { %919 = vst [vmem:[#allocation10 + $0x168] sm:$0xff] %v871_v59 }
 0x1a2   :  { %920 = vst [vmem:[#allocation10 + $0x170] sm:$0xff] %v872_v60 }
 0x1a3   :  { %1267 = shalt.err (!%p1264_p8)
}
 0x1a4   :  { %s1268_s17 = scalar_lea.hbm %s1494_s4, 6144 }
 0x1a5   :  { %p1269_p9 = scmp.ne.s32.totalorder %s1494_s4, %s1268_s17  ;;  %p1272_p10 = scmp.lt.u32.totalorder %s1268_s17, %s1494_s4 }
 0x1a7   :  { %p1274_p11 = pnand %p1272_p10, %p1269_p9 }
 0x1a9   :  { %1277 = shalt.err (!%p1274_p11)
}
 0x1aa   :  { %s1295_s22 = smov 384   ;;  %s1296_s23 = smov 24  }
 0x1ab   :  { %933 = dma.vmem_to_hbm [thread:$0]  %s928_s13, 6144, %s1494_s4, [#allocation4], %s1295_s22, %s1295_s22, %s1296_s23  }
 0x1ac   :  { %1284 = dma.done.wait [#allocation4], 6144  }
 0x1ad   :  { %1285 = vsyncadd [#allocation4], 4294961152 }
 0x1ae   :  { %937 = vsyncpa [#allocation3], 1 }
 0x1af   :  { %938 = vsyncpa [#allocation6], 1 }
 0x1b0   :  { %939 = vsyncpa [#allocation9], 1 }
 0x1b1   :  { %940 = vsyncpa [#allocation4], 1 }

// kernel: _lambda_.6
= control target key start
LH: loop header
LB: loop body
LE: loop exit
PB: predicated region body
PF: predicated region fallthrough
CT: control target
= control target key end

     0   :  { %9 = vsyncpa [#allocation3], 0  ;;  %s2101_s0 = inlined_call_operand.hbm [shape: bf16[768,128], index: 0, kind: input, shape index: {}]   ;;  %s2102_s1 = inlined_call_operand.hbm [shape: bf16[128,128], index: 1, kind: input, shape index: {}]   ;;  %s2103_s2 = inlined_call_operand.hbm [shape: f32[1,128], index: 2, kind: input, shape index: {}]   ;;  %s2104_s3 = inlined_call_operand.hbm [shape: f32[1,128], index: 3, kind: input, shape index: {}]   ;;  %s2105_s4 = inlined_call_operand.hbm [shape: bf16[768,128], index: 4, kind: output, shape index: {}]  }
   0x1   :  { %11 = vsyncpa [#allocation3 + $0x1], 0 }
   0x2   :  { %12 = vsyncpa [#allocation6], 0 }
   0x3   :  { %13 = vsyncpa [#allocation9], 0 }
   0x4   :  { %14 = vsyncpa [#allocation4], 0 }
   0x5   :  { %16 = vsyncpa [#allocation4 + $0x1], 0  ;;  %s1707_s15 = smov 0   ;;  %s1709_s16 = smov 0  }
   0x6   :  { %s1711_s17 = smov 0   ;;  %s1713_s18 = smov 0  }
   0x7   :  { %s1715_s19 = smov 0   ;;  %s1717_s20 = smov 0  }
   0x8 LB: > { %s1050_s21 = sadd.s32 4294967295, %s1671_s20   ;;  %s1051_s22 = sadd.s32 4294967294, %s1671_s20   ;;  %s1671_s20 = sphi %s1717_s20, %s22_s20   ;;  %s1667_s19 = sphi %s1715_s19, %s2131_s19   ;;  %s1663_s18 = sphi %s1713_s18, %s2130_s18   ;;  %s1659_s17 = sphi %s1711_s17, %s2129_s17   ;;  %s1655_s16 = sphi %s1709_s16, %s2128_s16   ;;  %s1651_s15 = sphi %s1707_s15, %s2127_s15  }
   0x9   : > { %p54_p0 = scmp.ne.s32.totalorder %s1655_s16, %s1651_s15  ;;  %p1741_p1 = scmp.eq.s32.totalorder %s1050_s21, 0 }
   0xa   : > { %p1745_p2 = scmp.eq.s32.totalorder %s1050_s21, 2  ;;  %p164_p3 = scmp.eq.s32.totalorder %s1051_s22, 2 }
   0xb   : > { %s2111_s23 = scalar_select %p1741_p1, 1, 0 }
   0xc   : > { %s2112_s24 = scalar_select %p1745_p2, 1, 0 }
   0xd   : > { %p1751_p4 = por %p1741_p1, %p54_p0  ;;  %p1052_p5 = scmp.ge.s32.totalorder %s1671_s20, 1 }
   0xe   : > { %p1756_p6 = por %p164_p3, %p54_p0  ;;  %p171_p7 = scmp.lt.s32.totalorder %s1671_s20, 4 }
   0xf   : > { %s2113_s25 = scalar_select %p1751_p4, 1, 0 }
  0x10   : > { %s2114_s26 = scalar_select %p1756_p6, 1, 0 }
  0x11   : > { %p1761_p8 = pnand %p1052_p5, %p171_p7  ;;  %s1673_s28 = smov [#allocation5]  }
  0x12   : > { %2115 = sst [smem:[#allocation15_spill]] %s2114_s26  ;;  %s185_s29 = sshll.u32 %s1673_s28, 4  ;;  %s1765_s29 = int_to_ptr.vmem [resolvable:$true] %s185_s29 }
  0x13   : > { %s2116_s27 = scalar_select %p1761_p8, 1, 0 }
  0x14   : > { %p1362_p9 = pneg %p1761_p8  ;;  %s1674_s5 = smov [#allocation7]  }
  0x15   : > { %s201_s6 = sshll.u32 %s1674_s5, 4  ;;  %s1675_s7 = smov [#allocation8]   ;;  %s1775_s6 = int_to_ptr.vmem [resolvable:$true] %s201_s6 }
  0x16   : > { %p1771_p10 = pnand %p1362_p9, %p1741_p1  ;;  %s1777_s8 = sshll.u32 %s1675_s7, 4  ;;  %s215_s8 = int_to_ptr.vmem [resolvable:$true] %s1777_s8 }
  0x17   : > { %s1467_s11 = scalar_lea.hbm %s2102_s1, 1024 }
  0x18   : > { %p1468_p11 = scmp.ne.s32.totalorder %s2102_s1, %s1467_s11  ;;  %p1787_p12 = pneg %p1771_p10 }
  0x19   : > { %p1474_p3 = scmp.lt.u32.totalorder %s1467_s11, %s2102_s1 }
  0x1a   : > { %p1470_p13 = pnand %p1787_p12, %p1468_p11 }
  0x1c   : > { %p1471_p0 = pneg %p1470_p13 }
  0x1e   : > { %p1476_p5 = pnand %p1474_p3, %p1471_p0 }
  0x20   : > { %1479 = shalt.err (!%p1476_p5)
}
  0x21   : > { %s1480_s28 = scalar_lea.vmem %s1765_s29, 1024  ;;  %p1488_p1 = scmp.lt.s32.totalorder %s1765_s29, %s1765_s29 }
  0x22   : > { %p1481_p7 = scmp.ne.s32.totalorder %s1765_s29, %s1480_s28  ;;  %p1489_p4 = scmp.lt.s32.totalorder %s1480_s28, %s1480_s28 }
  0x24   : > { %p1483_p9 = pnand %p1481_p7, %p1787_p12  ;;  %p1490_p11 = por %p1489_p4, %p1488_p1 }
  0x26   : > { %p1484_p6 = pneg %p1483_p9 }
  0x28   : > { %p1491_p13 = pnand %p1490_p11, %p1484_p6 }
  0x2a   : > { %1494 = shalt.err (!%p1491_p13)
}
  0x2b   : > { %s1676_s5 = smov 64   ;;  %s1677_s7 = smov 4  }
  0x2c   : > { %1365 = dma.hbm_to_vmem [thread:$0]  (!%p1771_p10), %s2102_s1, 1024, %s1765_s29, [#allocation6], %s1676_s5, %s1676_s5, %s1677_s7  }
  0x2d   : > { %s1495_s13 = scalar_lea.hbm %s2103_s2, 16 }
  0x2e   : > { %p1496_p1 = scmp.ne.s32.totalorder %s2103_s2, %s1495_s13  ;;  %p1502_p0 = scmp.lt.u32.totalorder %s1495_s13, %s2103_s2 }
  0x30   : > { %p1498_p4 = pnand %p1496_p1, %p1787_p12 }
  0x32   : > { %p1499_p6 = pneg %p1498_p4 }
  0x34   : > { %p1504_p3 = pnand %p1502_p0, %p1499_p6 }
  0x36   : > { %1507 = shalt.err (!%p1504_p3)
}
  0x37   : > { %s1508_s29 = scalar_lea.vmem %s1775_s6, 16  ;;  %s1515_s9 = scalar_lea.vmem %s1775_s6, 32 }
  0x38   : > { %p1509_p5 = scmp.ne.s32.totalorder %s1775_s6, %s1508_s29  ;;  %p1516_p11 = scmp.lt.s32.totalorder %s1775_s6, %s1775_s6 }
  0x39   : > { %p1517_p13 = scmp.lt.s32.totalorder %s1515_s9, %s1508_s29 }
  0x3a   : > { %p1511_p7 = pnand %p1509_p5, %p1787_p12 }
  0x3b   : > { %p1518_p1 = por %p1517_p13, %p1516_p11 }
  0x3c   : > { %p1512_p9 = pneg %p1511_p7 }
  0x3e   : > { %p1519_p4 = pnand %p1518_p1, %p1512_p9 }
  0x40   : > { %1522 = shalt.err (!%p1519_p4)
}
  0x41   : > { %1368 = dma.hbm_to_vmem [thread:$0]  (!%p1771_p10), %s2103_s2, 16, %s1775_s6, [#allocation6]  }
  0x42   : > { %s1523_s13 = scalar_lea.hbm %s2104_s3, 16 }
  0x43   : > { %p1524_p6 = scmp.ne.s32.totalorder %s2104_s3, %s1523_s13  ;;  %p1530_p5 = scmp.lt.u32.totalorder %s1523_s13, %s2104_s3 }
  0x45   : > { %p1526_p0 = pnand %p1524_p6, %p1787_p12 }
  0x47   : > { %p1527_p3 = pneg %p1526_p0 }
  0x49   : > { %p1532_p7 = pnand %p1530_p5, %p1527_p3 }
  0x4b   : > { %1535 = shalt.err (!%p1532_p7)
}
  0x4c   : > { %s1536_s9 = scalar_lea.vmem %s215_s8, 16  ;;  %s1543_s6 = scalar_lea.vmem %s215_s8, 32 }
  0x4d   : > { %p1537_p9 = scmp.ne.s32.totalorder %s215_s8, %s1536_s9  ;;  %p1544_p1 = scmp.lt.s32.totalorder %s215_s8, %s215_s8 }
  0x4e   : > { %p1545_p4 = scmp.lt.s32.totalorder %s1543_s6, %s1536_s9 }
  0x4f   : > { %p1539_p11 = pnand %p1537_p9, %p1787_p12 }
  0x50   : > { %p1546_p8 = por %p1545_p4, %p1544_p1 }
  0x51   : > { %p1540_p13 = pneg %p1539_p11 }
  0x53   : > { %p1547_p2 = pnand %p1546_p8, %p1540_p13 }
  0x55   : > { %1550 = shalt.err (!%p1547_p2)
}
  0x56   : > { %1371 = dma.hbm_to_vmem [thread:$0]  (!%p1771_p10), %s2104_s3, 16, %s215_s8, [#allocation9]  }
  0x57   : > { %s41_s14 = sadd.s32 1, %s1659_s17  ;;  %s34_s11 = sadd.s32 1, %s1667_s19 }
  0x58   : > { %p48_p2 = scmp.ne.s32.totalorder %s1659_s17, %s1655_s16  ;;  %p36_p8 = scmp.ge.s32.totalorder %s34_s11, 3 }
  0x59   : > { %p49_p12 = scmp.eq.s32.totalorder %s1671_s20, 0  ;;  %p2119_p6 = scmp.ne.s32.totalorder %s2112_s24, 0 }
  0x5a   : > { %p1383_p3 = scmp.lt.s32.totalorder %s1671_s20, 3  ;;  %s2133_s11 = smov (%p36_p8, %s34_s11), 0 }
  0x5b   : > { %p1861_p0 = por %p2119_p6, %p48_p2  ;;  %p50_p5 = por %p49_p12, %p48_p2 }
  0x5c   : > { %s225_s12 = sand.u32 1, %s1659_s17   ;;  %s38_s13 = ssub.s32 %s1667_s19, %s2133_s11 }
  0x5d   : > { %p39_p7 = scmp.eq.s32.totalorder %s38_s13, 0  ;;  %s1057_s8 = sshll.u32 %s225_s12, 7 }
  0x5e   : > { %s1129_s21 = sshll.u32 %s1667_s19, 11  ;;  %s229_s9 = scalar_lea.vmem [#allocation2], %s1057_s8 }
  0x5f   : > { %s1873_s22 = scalar_select %p39_p7, %s1659_s17, %s41_s14  }
  0x60   : > { %s1878_s24 = scalar_lea.hbm %s2101_s0, %s1129_s21  ;;  %s236_s6 = sshll.u32 %s229_s9, 4  ;;  %s1880_s6 = int_to_ptr.vmem [resolvable:$true] %s236_s6 }
  0x61   : > { %p1884_p10 = pnand %p1383_p3, %p50_p5  ;;  %s1888_s10 = scalar_lea.sflag [#allocation3], %s225_s12 }
  0x62   : > { %s1551_s14 = scalar_lea.hbm %s1878_s24, 2048  ;;  %s1556_s21 = scalar_lea.hbm %s2101_s0, 6144 }
  0x63   : > { %p1552_p9 = scmp.ne.s32.totalorder %s1878_s24, %s1551_s14  ;;  %p1553_p11 = pneg %p1884_p10 }
  0x64   : > { %p1557_p4 = scmp.lt.u32.totalorder %s1878_s24, %s2101_s0  ;;  %p1558_p2 = scmp.lt.u32.totalorder %s1556_s21, %s1551_s14 }
  0x65   : > { %p1554_p13 = pnand %p1553_p11, %p1552_p9  ;;  %p1560_p12 = scmp.lt.u32.totalorder %s1551_s14, %s1878_s24 }
  0x66   : > { %p1559_p8 = por %p1558_p2, %p1557_p4 }
  0x67   : > { %p1555_p1 = pneg %p1554_p13 }
  0x68   : > { %p1561_p6 = por %p1560_p12, %p1559_p8 }
  0x6a   : > { %p1562_p3 = pnand %p1561_p6, %p1555_p1 }
  0x6c   : > { %1565 = shalt.err (!%p1562_p3)
}
  0x6d   : > { %s1566_s12 = scalar_lea.vmem %s1880_s6, 2048  ;;  %s1678_s9 = smov [#allocation2]  }
  0x6e   : > { %p1567_p5 = scmp.ne.s32.totalorder %s1880_s6, %s1566_s12  ;;  %s1571_s13 = sshll.u32 %s1678_s9, 4  ;;  %s1572_s13 = int_to_ptr.vmem [resolvable:$false] %s1571_s13 }
  0x6f   : > { %s1573_s8 = scalar_lea.vmem %s1572_s13, 4096  ;;  %p1574_p13 = scmp.lt.s32.totalorder %s1880_s6, %s1572_s13 }
  0x70   : > { %p1569_p7 = pnand %p1567_p5, %p1553_p11  ;;  %p1575_p4 = scmp.lt.s32.totalorder %s1573_s8, %s1566_s12 }
  0x72   : > { %p1570_p9 = pneg %p1569_p7  ;;  %p1576_p2 = por %p1575_p4, %p1574_p13 }
  0x74   : > { %p1577_p8 = pnand %p1576_p2, %p1570_p9 }
  0x76   : > { %1580 = shalt.err (!%p1577_p8)
}
  0x77   : > { %1375 = dma.hbm_to_vmem [thread:$0]  (!%p1884_p10), %s1878_s24, 2048, %s1880_s6, %s1888_s10, %s1676_s5, %s1676_s5, %s1677_s7  }
  0x78   : > { %p2122_p11 = scmp.ne.s32.totalorder %s2116_s27, 0 }
  0x79   : > { %s1922_s14 = sand.u32 (!%p2122_p11), 1, %s1655_s16   ;;  %p2123_p1 = scmp.ne.s32.totalorder (!%p2122_p11), %s2113_s25, 0 }
  0x7a   : > { %248 = sbr.rel (%p2122_p11) target bundleno = 431 (0x1af), region = 36  ;;  %s1061_s21 = sshll.u32 (!%p2122_p11), %s1922_s14, 7 }
  0x7b   : > { %s251_s28 = scalar_lea.sflag (!%p2122_p11), [#allocation3], %s1922_s14  ;;  %s1928_s26 = scalar_lea.vmem (!%p2122_p11), [#allocation2], %s1061_s21 }
  0x81   : > { %1634 = dma.done.wait (%p2123_p1), %s251_s28, 2048  }
  0x82   : > { %1636 = vsyncadd (%p2123_p1), %s251_s28, 4294965248  ;;  %p2124_p10 = scmp.ne.s32.totalorder %s2111_s23, 0 }
  0x84   : > { %1638 = dma.done.wait (%p2124_p10), [#allocation6], 1040  }
  0x85   : > { %1640 = vsyncadd (%p2124_p10), [#allocation6], 4294966256 }
  0x86   : > { %1642 = dma.done.wait (%p2124_p10), [#allocation9], 16  }
  0x87   : > { %1644 = vsyncadd (%p2124_p10), [#allocation9], 4294967280  ;;  %v1443_v0 = vld [vmem:[#allocation5] sm:$0xff]   ;;  %v1444_v1 = vld [vmem:[#allocation5 + $0x8] sm:$0xff]   ;;  %s1984_s23 = scalar_lea.vmem [#allocation10], %s1061_s21  ;;  %s1162_s25 = sshll.u32 %s1663_s18, 11 }
  0x88   : > { %1282 = vmatprep.subr.bf16.mxu0 %v1443_v0  ;;  %1330 = vmatprep.subr.bf16.mxu1 %v1443_v0  ;;  %v1445_v2 = vld [vmem:[#allocation5 + $0x10] sm:$0xff]   ;;  %v1446_v3 = vld [vmem:[#allocation5 + $0x18] sm:$0xff]   ;;  %v1451_v4 = vld [vmem:[%s1928_s26] sm:$0xff]   ;;  %s932_s27 = sshll.u32 %s1984_s23, 4  ;;  %s2047_s18 = scalar_lea.hbm %s2105_s4, %s1162_s25  ;;  %s2049_s27 = int_to_ptr.vmem [resolvable:$true] %s932_s27 }
  0x89   : > { %1283 = vmatpush3.bf16.msra.mxu0 %v1443_v0  ;;  %1338 = vmatpush3.bf16.msra.mxu1 %v1443_v0  ;;  %v1452_v5 = vld [vmem:[%s1928_s26 + $0x40] sm:$0xff]   ;;  %v1448_v7 = vld [vmem:[#allocation5 + $0x28] sm:$0xff]   ;;  %v1449_v8 = vld [vmem:[#allocation5 + $0x30] sm:$0xff]   ;;  %s918_s24 = scalar_lea.sflag [#allocation4], %s1922_s14  ;;  %s1581_s6 = scalar_lea.vmem %s2049_s27, 2048 }
  0x8a   : > { %1284 = vmatprep.subr.bf16.mxu0 %v1444_v1  ;;  %1331 = vmatprep.subr.bf16.mxu1 %v1444_v1  ;;  %v1447_v6 = vld [vmem:[#allocation5 + $0x20] sm:$0xff]   ;;  %v1450_v9 = vld [vmem:[#allocation5 + $0x38] sm:$0xff]   ;;  %v1453_v10 = vld [vmem:[%s1928_s26 + $0x8] sm:$0xff]   ;;  %p1582_p12 = scmp.ne.s32.totalorder %s2049_s27, %s1581_s6  ;;  %s1679_s10 = smov [#allocation10]  }
  0x8b   : > { %1298 = vmatprep.mubr.bf16.mxu0 %v1451_v4  ;;  %1314 = vmatprep.mubr.bf16.mxu1 %v1452_v5  ;;  %v1454_v11 = vld [vmem:[%s1928_s26 + $0x48] sm:$0xff]   ;;  %v1455_v12 = vld [vmem:[%s1928_s26 + $0x10] sm:$0xff]   ;;  %v1457_v14 = vld [vmem:[%s1928_s26 + $0x18] sm:$0xff]   ;;  %s1585_s29 = sshll.u32 %s1679_s10, 4  ;;  %s1586_s29 = int_to_ptr.vmem [resolvable:$false] %s1585_s29 }
  0x8c   : > { %v1456_v13 = vld [vmem:[%s1928_s26 + $0x50] sm:$0xff]   ;;  %v1458_v15 = vld [vmem:[%s1928_s26 + $0x58] sm:$0xff]   ;;  %v1459_v16 = vld [vmem:[%s1928_s26 + $0x20] sm:$0xff]   ;;  %p1583_p6 = pnand %p1582_p12, %p1861_p0  ;;  %s1587_s12 = scalar_lea.vmem %s1586_s29, 4096 }
  0x8d   : > { %1285 = vmatpush3.bf16.msra.mxu0 %v1444_v1  ;;  %1339 = vmatpush3.bf16.msra.mxu1 %v1444_v1  ;;  %v1460_v17 = vld [vmem:[%s1928_s26 + $0x60] sm:$0xff]   ;;  %v1461_v18 = vld [vmem:[%s1928_s26 + $0x28] sm:$0xff]   ;;  %v1463_v20 = vld [vmem:[%s1928_s26 + $0x30] sm:$0xff]   ;;  %p1588_p5 = scmp.lt.s32.totalorder %s2049_s27, %s1586_s29  ;;  %p1589_p7 = scmp.lt.s32.totalorder %s1587_s12, %s1581_s6 }
  0x8e   : > { %1286 = vmatprep.subr.bf16.mxu0 %v1445_v2  ;;  %1332 = vmatprep.subr.bf16.mxu1 %v1445_v2  ;;  %v1462_v19 = vld [vmem:[%s1928_s26 + $0x68] sm:$0xff]   ;;  %v1464_v21 = vld [vmem:[%s1928_s26 + $0x70] sm:$0xff]   ;;  %v1465_v22 = vld [vmem:[%s1928_s26 + $0x38] sm:$0xff]   ;;  %p1584_p3 = pneg %p1583_p6 }
  0x8f   : > { %v1466_v23 = vld [vmem:[%s1928_s26 + $0x78] sm:$0xff]   ;;  %v1958_v24 = vld [vmem:[#allocation7] ss:$0 sm:$0xff]  ;;  %v1960_v26 = vld [vmem:[#allocation8] ss:$0 sm:$0xff]  ;;  %p1590_p9 = por %p1589_p7, %p1588_p5 }
  0x91   : > { %1287 = vmatpush3.bf16.msra.mxu0 %v1445_v2  ;;  %1340 = vmatpush3.bf16.msra.mxu1 %v1445_v2  ;;  %p1591_p13 = pnand %p1590_p9, %p1584_p3 }
  0x92   : > { %1288 = vmatprep.subr.bf16.mxu0 %v1446_v3  ;;  %1333 = vmatprep.subr.bf16.mxu1 %v1446_v3 }
  0x95   : > { %1289 = vmatpush3.bf16.msra.mxu0 %v1446_v3  ;;  %1341 = vmatpush3.bf16.msra.mxu1 %v1446_v3 }
  0x96   : > { %1290 = vmatprep.subr.bf16.mxu0 %v1447_v6  ;;  %1334 = vmatprep.subr.bf16.mxu1 %v1447_v6 }
  0x99   : > { %1291 = vmatpush3.bf16.msra.mxu0 %v1447_v6  ;;  %1342 = vmatpush3.bf16.msra.mxu1 %v1447_v6 }
  0x9a   : > { %1292 = vmatprep.subr.bf16.mxu0 %v1448_v7  ;;  %1335 = vmatprep.subr.bf16.mxu1 %v1448_v7 }
  0x9d   : > { %1293 = vmatpush3.bf16.msra.mxu0 %v1448_v7  ;;  %1343 = vmatpush3.bf16.msra.mxu1 %v1448_v7 }
  0x9e   : > { %1294 = vmatprep.subr.bf16.mxu0 %v1449_v8  ;;  %1336 = vmatprep.subr.bf16.mxu1 %v1449_v8 }
  0xa1   : > { %1295 = vmatpush3.bf16.msra.mxu0 %v1449_v8  ;;  %1344 = vmatpush3.bf16.msra.mxu1 %v1449_v8 }
  0xa2   : > { %1296 = vmatprep.subr.bf16.mxu0 %v1450_v9  ;;  %1337 = vmatprep.subr.bf16.mxu1 %v1450_v9 }
  0xa5   : > { %1297 = vmatpush3.bf16.msra.mxu0 %v1450_v9  ;;  %1345 = vmatpush3.bf16.msra.mxu1 %v1450_v9 }
  0xa8   : > { %1299 = vmatmul.mubr.bf16.vlgmr.msra.gmra.mrb[0].mxu0 %v1453_v10  ;;  %1315 = vmatmul.mubr.bf16.vlgmr.msra.gmra.mrb[0].mxu1 %v1454_v11 }
  0xa9   : > { %1302 = vmatprep.mubr.bf16.mxu0 %v1455_v12  ;;  %1318 = vmatprep.mubr.bf16.mxu1 %v1456_v13 }
  0xb0   : > { %1303 = vmatmul.mubr.bf16.gmra.mrb[4].mxu0 %v1457_v14  ;;  %1319 = vmatmul.mubr.bf16.gmra.mrb[4].mxu1 %v1458_v15 }
  0xb1   : > { %1306 = vmatprep.mubr.bf16.mxu0 %v1459_v16  ;;  %1322 = vmatprep.mubr.bf16.mxu1 %v1460_v17 }
  0xb8   : > { %1307 = vmatmul.mubr.bf16.gmra.mrb[8].mxu0 %v1461_v18  ;;  %1323 = vmatmul.mubr.bf16.gmra.mrb[8].mxu1 %v1462_v19 }
  0xb9   : > { %1310 = vmatprep.mubr.bf16.mxu0 %v1463_v20  ;;  %1326 = vmatprep.mubr.bf16.mxu1 %v1464_v21 }
  0xc0   : > { %1311 = vmatmul.mubr.bf16.gmra.mrb[12].mxu0 %v1465_v22  ;;  %1327 = vmatmul.mubr.bf16.gmra.mrb[12].mxu1 %v1466_v23 }
 0x17b   : > { %v1300_v25 = vpop.f32.mrb[0].mxu0  ;;  %v1316_v27 = vpop.f32.mrb[0].mxu1 }
 0x17c   : > { %v656_v28 = vmul.f32 %v1300_v25, %v1958_v24  ;;  %v672_v29 = vmul.f32 %v1316_v27, %v1958_v24  ;;  %v520_v30 = vpop.f32.mrb[1].mxu0  ;;  %v584_v31 = vpop.f32.mrb[1].mxu1 }
 0x17d   : > { %v654_v32 = vmul.f32 %v1958_v24, %v520_v30  ;;  %v670_v33 = vmul.f32 %v1958_v24, %v584_v31  ;;  %v1301_v34 = vpop.f32.mrb[2].mxu0  ;;  %v1317_v35 = vpop.f32.mrb[2].mxu1 }
 0x17e   : > { %v695_v36 = vadd.f32 %v1960_v26, %v656_v28  ;;  %v711_v37 = vadd.f32 %v1960_v26, %v672_v29  ;;  %v657_v38 = vmul.f32 %v1301_v34, %v1958_v24  ;;  %v673_v39 = vmul.f32 %v1317_v35, %v1958_v24  ;;  %v523_v40 = vpop.f32.mrb[3].mxu0  ;;  %v587_v41 = vpop.f32.mrb[3].mxu1 }
 0x17f   : > { %v693_v42 = vadd.f32 %v1960_v26, %v654_v32  ;;  %v709_v43 = vadd.f32 %v1960_v26, %v670_v33  ;;  %v655_v44 = vmul.f32 %v1958_v24, %v523_v40  ;;  %v671_v45 = vmul.f32 %v1958_v24, %v587_v41 }
 0x180   : > { %v696_v46 = vadd.f32 %v1960_v26, %v657_v38  ;;  %v712_v47 = vadd.f32 %v1960_v26, %v673_v39  ;;  %v727_v50 = vmax.f32 %v695_v36, 0.0  ;;  %v743_v51 = vmax.f32 %v711_v37, 0.0 }
 0x181   : > { %v694_v48 = vadd.f32 %v1960_v26, %v655_v44  ;;  %v710_v49 = vadd.f32 %v1960_v26, %v671_v45  ;;  %v725_v54 = vmax.f32 %v693_v42, 0.0  ;;  %v741_v55 = vmax.f32 %v709_v43, 0.0 }
 0x182   : > { %v728_v52 = vmax.f32 %v696_v46, 0.0  ;;  %v744_v53 = vmax.f32 %v712_v47, 0.0 }
 0x183   : > { %v726_v56 = vmax.f32 %v694_v48, 0.0  ;;  %v742_v57 = vmax.f32 %v710_v49, 0.0  ;;  %v1304_v58 = vpop.f32.mrb[4].mxu0  ;;  %v1320_v59 = vpop.f32.mrb[4].mxu1 }
 0x184   : > { %v1171_v60 = vpack.c.bf16 %v728_v52, %v727_v50  ;;  %v1211_v61 = vpack.c.bf16 %v744_v53, %v743_v51  ;;  %v660_v62 = vmul.f32 %v1304_v58, %v1958_v24  ;;  %v676_v63 = vmul.f32 %v1320_v59, %v1958_v24  ;;  %v536_v0 = vpop.f32.mrb[5].mxu0  ;;  %v600_v1 = vpop.f32.mrb[5].mxu1 }
 0x185   : > { %v1166_v2 = vpack.c.bf16 %v726_v56, %v725_v54  ;;  %v1206_v3 = vpack.c.bf16 %v742_v57, %v741_v55  ;;  %v658_v4 = vmul.f32 %v1958_v24, %v536_v0  ;;  %v674_v5 = vmul.f32 %v1958_v24, %v600_v1  ;;  %v1305_v6 = vpop.f32.mrb[6].mxu0  ;;  %v1321_v7 = vpop.f32.mrb[6].mxu1 }
 0x186   : > { %1243 = vst [vmem:[%s1984_s23 + $0x8] sm:$0xff] %v1171_v60   ;;  %1251 = vst [vmem:[%s1984_s23 + $0x48] sm:$0xff] %v1211_v61   ;;  %v699_v8 = vadd.f32 %v1960_v26, %v660_v62  ;;  %v715_v9 = vadd.f32 %v1960_v26, %v676_v63  ;;  %v661_v10 = vmul.f32 %v1305_v6, %v1958_v24  ;;  %v539_v12 = vpop.f32.mrb[7].mxu0  ;;  %v603_v13 = vpop.f32.mrb[7].mxu1 }
 0x187   : > { %v677_v11 = vmul.f32 %v1321_v7, %v1958_v24  ;;  %1167 = vst [vmem:[%s1984_s23] sm:$0xff] %v1166_v2   ;;  %1250 = vst [vmem:[%s1984_s23 + $0x40] sm:$0xff] %v1206_v3   ;;  %v697_v14 = vadd.f32 %v1960_v26, %v658_v4  ;;  %v713_v15 = vadd.f32 %v1960_v26, %v674_v5 }
 0x188   : > { %v659_v16 = vmul.f32 %v1958_v24, %v539_v12  ;;  %v675_v17 = vmul.f32 %v1958_v24, %v603_v13  ;;  %v700_v18 = vadd.f32 %v1960_v26, %v661_v10  ;;  %v731_v22 = vmax.f32 %v699_v8, 0.0 }
 0x189   : > { %v716_v19 = vadd.f32 %v1960_v26, %v677_v11  ;;  %v747_v23 = vmax.f32 %v715_v9, 0.0  ;;  %v729_v28 = vmax.f32 %v697_v14, 0.0  ;;  %v745_v29 = vmax.f32 %v713_v15, 0.0 }
 0x18a   : > { %v698_v20 = vadd.f32 %v1960_v26, %v659_v16  ;;  %v714_v21 = vadd.f32 %v1960_v26, %v675_v17  ;;  %v732_v25 = vmax.f32 %v700_v18, 0.0 }
 0x18b   : > { %v748_v27 = vmax.f32 %v716_v19, 0.0  ;;  %v1308_v32 = vpop.f32.mrb[8].mxu0  ;;  %v1324_v33 = vpop.f32.mrb[8].mxu1 }
 0x18c   : > { %v730_v30 = vmax.f32 %v698_v20, 0.0  ;;  %v746_v31 = vmax.f32 %v714_v21, 0.0  ;;  %v1181_v34 = vpack.c.bf16 %v732_v25, %v731_v22  ;;  %v664_v36 = vmul.f32 %v1308_v32, %v1958_v24  ;;  %v552_v38 = vpop.f32.mrb[9].mxu0  ;;  %v616_v39 = vpop.f32.mrb[9].mxu1 }
 0x18d   : > { %v1221_v35 = vpack.c.bf16 %v748_v27, %v747_v23  ;;  %v680_v37 = vmul.f32 %v1324_v33, %v1958_v24  ;;  %v662_v42 = vmul.f32 %v1958_v24, %v552_v38  ;;  %v678_v43 = vmul.f32 %v1958_v24, %v616_v39  ;;  %v1309_v44 = vpop.f32.mrb[10].mxu0  ;;  %v1325_v45 = vpop.f32.mrb[10].mxu1 }
 0x18e   : > { %v1176_v40 = vpack.c.bf16 %v730_v30, %v729_v28  ;;  %v1216_v41 = vpack.c.bf16 %v746_v31, %v745_v29  ;;  %1245 = vst [vmem:[%s1984_s23 + $0x18] sm:$0xff] %v1181_v34   ;;  %v703_v46 = vadd.f32 %v1960_v26, %v664_v36  ;;  %v665_v48 = vmul.f32 %v1309_v44, %v1958_v24  ;;  %v555_v50 = vpop.f32.mrb[11].mxu0  ;;  %v619_v51 = vpop.f32.mrb[11].mxu1 }
 0x18f   : > { %1253 = vst [vmem:[%s1984_s23 + $0x58] sm:$0xff] %v1221_v35   ;;  %v719_v47 = vadd.f32 %v1960_v26, %v680_v37  ;;  %v681_v49 = vmul.f32 %v1325_v45, %v1958_v24  ;;  %v701_v52 = vadd.f32 %v1960_v26, %v662_v42  ;;  %v717_v53 = vadd.f32 %v1960_v26, %v678_v43 }
 0x190   : > { %1244 = vst [vmem:[%s1984_s23 + $0x10] sm:$0xff] %v1176_v40   ;;  %1252 = vst [vmem:[%s1984_s23 + $0x50] sm:$0xff] %v1216_v41   ;;  %v663_v54 = vmul.f32 %v1958_v24, %v555_v50  ;;  %v679_v55 = vmul.f32 %v1958_v24, %v619_v51  ;;  %v704_v56 = vadd.f32 %v1960_v26, %v665_v48  ;;  %v735_v60 = vmax.f32 %v703_v46, 0.0 }
 0x191   : > { %v720_v57 = vadd.f32 %v1960_v26, %v681_v49  ;;  %v751_v61 = vmax.f32 %v719_v47, 0.0  ;;  %v733_v0 = vmax.f32 %v701_v52, 0.0  ;;  %v749_v1 = vmax.f32 %v717_v53, 0.0 }
 0x192   : > { %v702_v58 = vadd.f32 %v1960_v26, %v663_v54  ;;  %v718_v59 = vadd.f32 %v1960_v26, %v679_v55  ;;  %v736_v62 = vmax.f32 %v704_v56, 0.0 }
 0x193   : > { %v752_v63 = vmax.f32 %v720_v57, 0.0  ;;  %v1312_v4 = vpop.f32.mrb[12].mxu0  ;;  %v1328_v5 = vpop.f32.mrb[12].mxu1 }
 0x194   : > { %v734_v2 = vmax.f32 %v702_v58, 0.0  ;;  %v750_v3 = vmax.f32 %v718_v59, 0.0  ;;  %v1191_v6 = vpack.c.bf16 %v736_v62, %v735_v60  ;;  %v668_v8 = vmul.f32 %v1312_v4, %v1958_v24  ;;  %v568_v10 = vpop.f32.mrb[13].mxu0  ;;  %v632_v11 = vpop.f32.mrb[13].mxu1 }
 0x195   : > { %v1231_v7 = vpack.c.bf16 %v752_v63, %v751_v61  ;;  %v684_v9 = vmul.f32 %v1328_v5, %v1958_v24  ;;  %v666_v14 = vmul.f32 %v1958_v24, %v568_v10  ;;  %v682_v15 = vmul.f32 %v1958_v24, %v632_v11  ;;  %v1313_v16 = vpop.f32.mrb[14].mxu0  ;;  %v1329_v17 = vpop.f32.mrb[14].mxu1 }
 0x196   : > { %v1186_v12 = vpack.c.bf16 %v734_v2, %v733_v0  ;;  %v1226_v13 = vpack.c.bf16 %v750_v3, %v749_v1  ;;  %1247 = vst [vmem:[%s1984_s23 + $0x28] sm:$0xff] %v1191_v6   ;;  %v707_v18 = vadd.f32 %v1960_v26, %v668_v8  ;;  %v669_v20 = vmul.f32 %v1313_v16, %v1958_v24  ;;  %v571_v22 = vpop.f32.mrb[15].mxu0  ;;  %v635_v23 = vpop.f32.mrb[15].mxu1 }
 0x197   : > { %1255 = vst [vmem:[%s1984_s23 + $0x68] sm:$0xff] %v1231_v7   ;;  %v723_v19 = vadd.f32 %v1960_v26, %v684_v9  ;;  %v685_v21 = vmul.f32 %v1329_v17, %v1958_v24  ;;  %v705_v25 = vadd.f32 %v1960_v26, %v666_v14  ;;  %v721_v27 = vadd.f32 %v1960_v26, %v682_v15 }
 0x198   : > { %1246 = vst [vmem:[%s1984_s23 + $0x20] sm:$0xff] %v1186_v12   ;;  %1254 = vst [vmem:[%s1984_s23 + $0x60] sm:$0xff] %v1226_v13   ;;  %v667_v28 = vmul.f32 %v1958_v24, %v571_v22  ;;  %v683_v29 = vmul.f32 %v1958_v24, %v635_v23  ;;  %v708_v30 = vadd.f32 %v1960_v26, %v669_v20  ;;  %v739_v34 = vmax.f32 %v707_v18, 0.0 }
 0x199   : > { %v724_v31 = vadd.f32 %v1960_v26, %v685_v21  ;;  %v755_v35 = vmax.f32 %v723_v19, 0.0  ;;  %v737_v24 = vmax.f32 %v705_v25, 0.0  ;;  %v753_v38 = vmax.f32 %v721_v27, 0.0 }
 0x19a   : > { %v706_v32 = vadd.f32 %v1960_v26, %v667_v28  ;;  %v722_v33 = vadd.f32 %v1960_v26, %v683_v29  ;;  %v740_v36 = vmax.f32 %v708_v30, 0.0 }
 0x19b   : > { %v756_v37 = vmax.f32 %v724_v31, 0.0 }
 0x19c   : > { %v738_v39 = vmax.f32 %v706_v32, 0.0  ;;  %v754_v40 = vmax.f32 %v722_v33, 0.0  ;;  %v1201_v41 = vpack.c.bf16 %v740_v36, %v739_v34 }
 0x19d   : > { %v1241_v42 = vpack.c.bf16 %v756_v37, %v755_v35 }
 0x19e   : > { %v1196_v26 = vpack.c.bf16 %v738_v39, %v737_v24  ;;  %v1236_v43 = vpack.c.bf16 %v754_v40, %v753_v38  ;;  %1249 = vst [vmem:[%s1984_s23 + $0x38] sm:$0xff] %v1201_v41  }
 0x19f   : > { %1257 = vst [vmem:[%s1984_s23 + $0x78] sm:$0xff] %v1241_v42  }
 0x1a0   : > { %1248 = vst [vmem:[%s1984_s23 + $0x30] sm:$0xff] %v1196_v26   ;;  %1256 = vst [vmem:[%s1984_s23 + $0x70] sm:$0xff] %v1236_v43  }
 0x1a1   : > { %1594 = shalt.err (!%p1591_p13)
}
 0x1a2   : > { %s1595_s9 = scalar_lea.hbm %s2047_s18, 2048  ;;  %s1599_s21 = scalar_lea.hbm %s2105_s4, 6144 }
 0x1a3   : > { %p1596_p4 = scmp.ne.s32.totalorder %s2047_s18, %s1595_s9  ;;  %p1600_p11 = scmp.lt.u32.totalorder %s2047_s18, %s2105_s4 }
 0x1a4   : > { %p1601_p1 = scmp.lt.u32.totalorder %s1599_s21, %s1595_s9  ;;  %p1603_p12 = scmp.lt.u32.totalorder %s1595_s9, %s2047_s18 }
 0x1a5   : > { %p1597_p2 = pnand %p1596_p4, %p1861_p0 }
 0x1a6   : > { %p1602_p10 = por %p1601_p1, %p1600_p11 }
 0x1a7   : > { %p1598_p8 = pneg %p1597_p2 }
 0x1a8   : > { %p1604_p6 = por %p1603_p12, %p1602_p10 }
 0x1aa   : > { %p1605_p3 = pnand %p1604_p6, %p1598_p8 }
 0x1ac   : > { %1608 = shalt.err (!%p1605_p3)
}
 0x1ad   : > { %s1680_s23 = smov 64   ;;  %s1681_s25 = smov 4  }
 0x1ae   : > { %1360 = dma.vmem_to_hbm [thread:$0]  (%p1861_p0), %s2049_s27, 2048, %s2047_s18, %s918_s24, %s1680_s23, %s1680_s23, %s1681_s25  }
 0x1af PF: > { %s2125_s5 = sld [smem:[#allocation15_spill]]  ;;  %p1387_p5 = scmp.ge.s32.totalorder %s1671_s20, 2 }
 0x1b0   : > { %s947_s7 = sand.u32 1, %s1651_s15  }
 0x1b1   : > { %s948_s6 = scalar_lea.sflag [#allocation4], %s947_s7 }
 0x1b5   : > { %p2126_p7 = scmp.ne.s32.totalorder %s2125_s5, 0 }
 0x1b7   : > { %p1377_p9 = pnand %p1387_p5, %p2126_p7 }
 0x1b9   : > { %1646 = dma.done.wait (!%p1377_p9), %s948_s6, 2048  }
 0x1ba   : > { %1648 = vsyncadd (!%p1377_p9), %s948_s6, 4294965248  ;;  %s22_s20 = sadd.s32 1, %s1671_s20   ;;  %s2127_s15 = smov %s1655_s16 }
 0x1bb   : > { %p19_p13 = scmp.ge.s32.totalorder %s22_s20, 5   ;;  %s2128_s16 = smov %s1659_s17 }
 0x1bc   : > { %s2129_s17 = smov %s1873_s22  ;;  %s2130_s18 = smov %s1667_s19 }
 0x1bd   : > { %s2131_s19 = smov %s2133_s11  ;;  %21 = sbr.rel (!%p19_p13) target bundleno = 8 (0x8), region = 96 }
 0x1c4   :  { %953 = vsyncpa [#allocation3], 1 }
 0x1c5   :  { %955 = vsyncpa [#allocation3 + $0x1], 1 }
 0x1c6   :  { %956 = vsyncpa [#allocation6], 1 }
 0x1c7   :  { %957 = vsyncpa [#allocation9], 1 }
 0x1c8   :  { %958 = vsyncpa [#allocation4], 1 }
 0x1c9   :  { %960 = vsyncpa [#allocation4 + $0x1], 1 }

// kernel: _lambda_.9
= control target key start
LH: loop header
LB: loop body
LE: loop exit
PB: predicated region body
PF: predicated region fallthrough
CT: control target
= control target key end

     0   :  { %6 = vsyncpa [#allocation3], 0  ;;  %s449_s0 = inlined_call_operand.hbm [shape: f32[9,128,16], index: 0, kind: input, shape index: {}]   ;;  %s450_s1 = inlined_call_operand.hbm [shape: f32[128,16], index: 1, kind: output, shape index: {}]  }
   0x1   :  { %7 = vsyncpa [#allocation4], 0  ;;  %s389_s6 = smov [#allocation2]   ;;  %s341_s10 = scalar_lea.hbm %s449_s0, 18432 }
   0x2   :  { %s13_s7 = sshll.u32 %s389_s6, 4  ;;  %p342_p0 = scmp.ne.s32.totalorder %s449_s0, %s341_s10  ;;  %s14_s7 = int_to_ptr.vmem [resolvable:$true] %s13_s7 }
   0x3   :  { %p345_p1 = scmp.lt.u32.totalorder %s341_s10, %s449_s0 }
   0x5   :  { %p347_p2 = pnand %p345_p1, %p342_p0 }
   0x7   :  { %350 = shalt.err (!%p347_p2)
}
   0x8   :  { %s351_s15 = scalar_lea.vmem %s14_s7, 18432  ;;  %p356_p4 = scmp.lt.s32.totalorder %s14_s7, %s14_s7 }
   0x9   :  { %p352_p3 = scmp.ne.s32.totalorder %s14_s7, %s351_s15  ;;  %p357_p5 = scmp.lt.s32.totalorder %s351_s15, %s351_s15 }
   0xb   :  { %p358_p6 = por %p357_p5, %p356_p4 }
   0xd   :  { %p359_p7 = pnand %p358_p6, %p352_p3 }
   0xf   :  { %362 = shalt.err (!%p359_p7)
}
  0x10   :  { %s390_s16 = smov 128   ;;  %s391_s17 = smov 8  }
  0x11   :  { %19 = dma.hbm_to_vmem [thread:$0]  %s449_s0, 18432, %s14_s7, [#allocation3], %s390_s16, %s390_s16, %s391_s17  }
  0x12   :  { %385 = dma.done.wait [#allocation3], 18432  }
  0x13   :  { %386 = vsyncadd [#allocation3], 4294948864  ;;  %v23_v0 = vld [vmem:[#allocation2] sm:$0xff]  ;;  %v24_v6 = vld [vmem:[#allocation2 + $0x8] sm:$0xff]  ;;  %vm303_vm0 = vcmask 130048   ;;  %s392_s0 = smov [#allocation5]  }
  0x14   :  { %v40_v1 = vld [vmem:[#allocation2 + $0x80] sm:$0xff]  ;;  %v41_v7 = vld [vmem:[#allocation2 + $0x88] sm:$0xff]  ;;  %v25_v15 = vld [vmem:[#allocation2 + $0x10] sm:$0xff]  ;;  %s325_s20 = sshll.u32 %s392_s0, 4  ;;  %s326_s20 = int_to_ptr.vmem [resolvable:$true] %s325_s20 }
  0x15   :  { %v73_v2 = vld [vmem:[#allocation2 + $0x100] sm:$0xff]  ;;  %v56_v3 = vmax.f32 %v23_v0, %v40_v1  ;;  %v74_v8 = vld [vmem:[#allocation2 + $0x108] sm:$0xff]  ;;  %v57_v10 = vmax.f32 %v24_v6, %v41_v7  ;;  %v42_v16 = vld [vmem:[#allocation2 + $0x90] sm:$0xff]  ;;  %s363_s21 = scalar_lea.vmem %s326_s20, 2048  ;;  %p368_p9 = scmp.lt.s32.totalorder %s326_s20, %s326_s20 }
  0x16   :  { %v106_v4 = vld [vmem:[#allocation2 + $0x180] sm:$0xff]  ;;  %v107_v13 = vld [vmem:[#allocation2 + $0x188] sm:$0xff]  ;;  %v75_v17 = vld [vmem:[#allocation2 + $0x110] sm:$0xff]  ;;  %v58_v20 = vmax.f32 %v25_v15, %v42_v16  ;;  %p364_p8 = scmp.ne.s32.totalorder %s326_s20, %s363_s21  ;;  %p369_p10 = scmp.lt.s32.totalorder %s363_s21, %s363_s21 }
  0x17   :  { %v89_v5 = vmax.f32 %v56_v3, %v73_v2  ;;  %v139_v9 = vld [vmem:[#allocation2 + $0x200] sm:$0xff]  ;;  %v90_v14 = vmax.f32 %v57_v10, %v74_v8  ;;  %v140_v19 = vld [vmem:[#allocation2 + $0x208] sm:$0xff]  ;;  %v108_v24 = vld [vmem:[#allocation2 + $0x190] sm:$0xff] }
  0x18   :  { %v172_v12 = vld [vmem:[#allocation2 + $0x280] sm:$0xff]  ;;  %v173_v23 = vld [vmem:[#allocation2 + $0x288] sm:$0xff]  ;;  %v91_v26 = vmax.f32 %v58_v20, %v75_v17  ;;  %v26_v27 = vld [vmem:[#allocation2 + $0x18] sm:$0xff]  ;;  %p370_p11 = por %p369_p10, %p368_p9 }
  0x19   :  { %v122_v11 = vmax.f32 %v89_v5, %v106_v4  ;;  %v205_v21 = vld [vmem:[#allocation2 + $0x300] sm:$0xff]  ;;  %v123_v22 = vmax.f32 %v90_v14, %v107_v13  ;;  %v43_v28 = vld [vmem:[#allocation2 + $0x98] sm:$0xff]  ;;  %v141_v33 = vld [vmem:[#allocation2 + $0x210] sm:$0xff] }
  0x1a   :  { %v76_v29 = vld [vmem:[#allocation2 + $0x118] sm:$0xff]  ;;  %v238_v30 = vld [vmem:[#allocation2 + $0x380] sm:$0xff]  ;;  %v59_v34 = vmax.f32 %v26_v27, %v43_v28  ;;  %v206_v36 = vld [vmem:[#allocation2 + $0x308] sm:$0xff]  ;;  %v124_v37 = vmax.f32 %v91_v26, %v108_v24  ;;  %p371_p12 = pnand %p370_p11, %p364_p8 }
  0x1b   :  { %v155_v18 = vmax.f32 %v122_v11, %v139_v9  ;;  %v271_v31 = vld [vmem:[#allocation2 + $0x400] sm:$0xff]  ;;  %v156_v32 = vmax.f32 %v123_v22, %v140_v19  ;;  %v174_v38 = vld [vmem:[#allocation2 + $0x290] sm:$0xff]  ;;  %v109_v39 = vld [vmem:[#allocation2 + $0x198] sm:$0xff] }
  0x1c   :  { %v92_v41 = vmax.f32 %v59_v34, %v76_v29  ;;  %v27_v42 = vld [vmem:[#allocation2 + $0x20] sm:$0xff]  ;;  %v239_v46 = vld [vmem:[#allocation2 + $0x388] sm:$0xff]  ;;  %v157_v48 = vmax.f32 %v124_v37, %v141_v33  ;;  %v142_v49 = vld [vmem:[#allocation2 + $0x218] sm:$0xff] }
  0x1d   :  { %v188_v25 = vmax.f32 %v155_v18, %v172_v12  ;;  %v189_v40 = vmax.f32 %v156_v32, %v173_v23  ;;  %v44_v43 = vld [vmem:[#allocation2 + $0xa0] sm:$0xff]  ;;  %v272_v47 = vld [vmem:[#allocation2 + $0x408] sm:$0xff]  ;;  %v207_v52 = vld [vmem:[#allocation2 + $0x310] sm:$0xff] }
  0x1e   :  { %v77_v44 = vld [vmem:[#allocation2 + $0x120] sm:$0xff]  ;;  %v60_v50 = vmax.f32 %v27_v42, %v44_v43  ;;  %v125_v53 = vmax.f32 %v92_v41, %v109_v39  ;;  %v175_v54 = vld [vmem:[#allocation2 + $0x298] sm:$0xff]  ;;  %v190_v57 = vmax.f32 %v157_v48, %v174_v38  ;;  %v28_v59 = vld [vmem:[#allocation2 + $0x28] sm:$0xff] }
  0x1f   :  { %v221_v35 = vmax.f32 %v188_v25, %v205_v21  ;;  %v222_v51 = vmax.f32 %v189_v40, %v206_v36  ;;  %v110_v55 = vld [vmem:[#allocation2 + $0x1a0] sm:$0xff]  ;;  %v45_v60 = vld [vmem:[#allocation2 + $0xa8] sm:$0xff]  ;;  %v240_v63 = vld [vmem:[#allocation2 + $0x390] sm:$0xff] }
  0x20   :  { %v93_v58 = vmax.f32 %v60_v50, %v77_v44  ;;  %v78_v61 = vld [vmem:[#allocation2 + $0x128] sm:$0xff]  ;;  %v273_v0 = vld [vmem:[#allocation2 + $0x410] sm:$0xff]  ;;  %v158_v1 = vmax.f32 %v125_v53, %v142_v49  ;;  %v143_v2 = vld [vmem:[#allocation2 + $0x220] sm:$0xff]  ;;  %v61_v3 = vmax.f32 %v28_v59, %v45_v60  ;;  %v223_v4 = vmax.f32 %v190_v57, %v207_v52 }
  0x21   :  { %v254_v45 = vmax.f32 %v221_v35, %v238_v30  ;;  %v255_v62 = vmax.f32 %v222_v51, %v239_v46  ;;  %v208_v5 = vld [vmem:[#allocation2 + $0x318] sm:$0xff]  ;;  %v176_v7 = vld [vmem:[#allocation2 + $0x2a0] sm:$0xff]  ;;  %v111_v8 = vld [vmem:[#allocation2 + $0x1a8] sm:$0xff] }
  0x22   :  { %v126_v6 = vmax.f32 %v93_v58, %v110_v55  ;;  %v191_v10 = vmax.f32 %v158_v1, %v175_v54  ;;  %v94_v11 = vmax.f32 %v61_v3, %v78_v61  ;;  %v29_v12 = vld [vmem:[#allocation2 + $0x30] sm:$0xff]  ;;  %v256_v15 = vmax.f32 %v223_v4, %v240_v63  ;;  %v241_v16 = vld [vmem:[#allocation2 + $0x398] sm:$0xff]  ;;  %v144_v19 = vld [vmem:[#allocation2 + $0x228] sm:$0xff] }
  0x23   :  { %v287_v56 = vmax.f32 %v254_v45, %v271_v31  ;;  %v288_v9 = vmax.f32 %v255_v62, %v272_v47  ;;  %v46_v13 = vld [vmem:[#allocation2 + $0xb0] sm:$0xff]  ;;  %v274_v17 = vld [vmem:[#allocation2 + $0x418] sm:$0xff]  ;;  %v209_v22 = vld [vmem:[#allocation2 + $0x320] sm:$0xff] }
  0x24   :  { %v79_v14 = vld [vmem:[#allocation2 + $0x130] sm:$0xff]  ;;  %v159_v18 = vmax.f32 %v126_v6, %v143_v2  ;;  %v62_v20 = vmax.f32 %v29_v12, %v46_v13  ;;  %v224_v21 = vmax.f32 %v191_v10, %v208_v5  ;;  %v127_v23 = vmax.f32 %v94_v11, %v111_v8  ;;  %v177_v24 = vld [vmem:[#allocation2 + $0x2a8] sm:$0xff]  ;;  %v30_v29 = vld [vmem:[#allocation2 + $0x38] sm:$0xff] }
  0x25   :  { %304 = vst.msk [vmem:[#allocation5] sm:$0xff] %vm303_vm0, %v287_v56  ;;  %305 = vst.msk [vmem:[#allocation5 + $0x8] sm:$0xff] %vm303_vm0, %v288_v9  ;;  %v112_v25 = vld [vmem:[#allocation2 + $0x1b0] sm:$0xff]  ;;  %v289_v26 = vmax.f32 %v256_v15, %v273_v0  ;;  %v47_v30 = vld [vmem:[#allocation2 + $0xb8] sm:$0xff] }
  0x26   :  { %v192_v27 = vmax.f32 %v159_v18, %v176_v7  ;;  %v95_v28 = vmax.f32 %v62_v20, %v79_v14  ;;  %v80_v31 = vld [vmem:[#allocation2 + $0x138] sm:$0xff]  ;;  %v257_v32 = vmax.f32 %v224_v21, %v241_v16  ;;  %v242_v33 = vld [vmem:[#allocation2 + $0x3a0] sm:$0xff]  ;;  %v160_v35 = vmax.f32 %v127_v23, %v144_v19  ;;  %v145_v36 = vld [vmem:[#allocation2 + $0x230] sm:$0xff] }
  0x27   :  { %v275_v34 = vld [vmem:[#allocation2 + $0x420] sm:$0xff]  ;;  %v63_v37 = vmax.f32 %v30_v29, %v47_v30  ;;  %306 = vst.msk [vmem:[#allocation5 + $0x10] sm:$0xff] %vm303_vm0, %v289_v26  ;;  %v210_v39 = vld [vmem:[#allocation2 + $0x328] sm:$0xff]  ;;  %v178_v41 = vld [vmem:[#allocation2 + $0x2b0] sm:$0xff] }
  0x28   :  { %v225_v38 = vmax.f32 %v192_v27, %v209_v22  ;;  %v128_v40 = vmax.f32 %v95_v28, %v112_v25  ;;  %v113_v42 = vld [vmem:[#allocation2 + $0x1b8] sm:$0xff]  ;;  %v290_v43 = vmax.f32 %v257_v32, %v274_v17  ;;  %v193_v44 = vmax.f32 %v160_v35, %v177_v24  ;;  %v31_v46 = vld [vmem:[#allocation2 + $0x40] sm:$0xff]  ;;  %v243_v50 = vld [vmem:[#allocation2 + $0x3a8] sm:$0xff] }
  0x29   :  { %v96_v45 = vmax.f32 %v63_v37, %v80_v31  ;;  %v48_v47 = vld [vmem:[#allocation2 + $0xc0] sm:$0xff]  ;;  %v276_v51 = vld [vmem:[#allocation2 + $0x428] sm:$0xff]  ;;  %v146_v53 = vld [vmem:[#allocation2 + $0x238] sm:$0xff] }
  0x2a   :  { %v81_v48 = vld [vmem:[#allocation2 + $0x140] sm:$0xff]  ;;  %v258_v49 = vmax.f32 %v225_v38, %v242_v33  ;;  %v161_v52 = vmax.f32 %v128_v40, %v145_v36  ;;  %v64_v54 = vmax.f32 %v31_v46, %v48_v47  ;;  %307 = vst.msk [vmem:[#allocation5 + $0x18] sm:$0xff] %vm303_vm0, %v290_v43  ;;  %v226_v55 = vmax.f32 %v193_v44, %v210_v39  ;;  %v211_v56 = vld [vmem:[#allocation2 + $0x330] sm:$0xff]  ;;  %v179_v58 = vld [vmem:[#allocation2 + $0x2b8] sm:$0xff] }
  0x2b   :  { %v129_v57 = vmax.f32 %v96_v45, %v113_v42  ;;  %v114_v59 = vld [vmem:[#allocation2 + $0x1c0] sm:$0xff]  ;;  %v32_v63 = vld [vmem:[#allocation2 + $0x48] sm:$0xff]  ;;  %v244_v3 = vld [vmem:[#allocation2 + $0x3b0] sm:$0xff] }
  0x2c   :  { %v291_v60 = vmax.f32 %v258_v49, %v275_v34  ;;  %v194_v61 = vmax.f32 %v161_v52, %v178_v41  ;;  %v97_v62 = vmax.f32 %v64_v54, %v81_v48  ;;  %v49_v0 = vld [vmem:[#allocation2 + $0xc8] sm:$0xff]  ;;  %v259_v2 = vmax.f32 %v226_v55, %v243_v50  ;;  %v277_v4 = vld [vmem:[#allocation2 + $0x430] sm:$0xff]  ;;  %v147_v6 = vld [vmem:[#allocation2 + $0x240] sm:$0xff] }
  0x2d   :  { %v82_v1 = vld [vmem:[#allocation2 + $0x148] sm:$0xff]  ;;  %v162_v5 = vmax.f32 %v129_v57, %v146_v53  ;;  %v65_v7 = vmax.f32 %v32_v63, %v49_v0  ;;  %v212_v9 = vld [vmem:[#allocation2 + $0x338] sm:$0xff]  ;;  %v180_v11 = vld [vmem:[#allocation2 + $0x2c0] sm:$0xff] }
  0x2e   :  { %308 = vst.msk [vmem:[#allocation5 + $0x20] sm:$0xff] %vm303_vm0, %v291_v60  ;;  %v227_v8 = vmax.f32 %v194_v61, %v211_v56  ;;  %v130_v10 = vmax.f32 %v97_v62, %v114_v59  ;;  %v115_v12 = vld [vmem:[#allocation2 + $0x1c8] sm:$0xff]  ;;  %v292_v13 = vmax.f32 %v259_v2, %v276_v51  ;;  %v33_v16 = vld [vmem:[#allocation2 + $0x50] sm:$0xff]  ;;  %v245_v20 = vld [vmem:[#allocation2 + $0x3b8] sm:$0xff] }
  0x2f   :  { %v195_v14 = vmax.f32 %v162_v5, %v179_v58  ;;  %v98_v15 = vmax.f32 %v65_v7, %v82_v1  ;;  %v50_v17 = vld [vmem:[#allocation2 + $0xd0] sm:$0xff]  ;;  %v278_v21 = vld [vmem:[#allocation2 + $0x438] sm:$0xff]  ;;  %v148_v23 = vld [vmem:[#allocation2 + $0x248] sm:$0xff] }
  0x30   :  { %v83_v18 = vld [vmem:[#allocation2 + $0x150] sm:$0xff]  ;;  %v260_v19 = vmax.f32 %v227_v8, %v244_v3  ;;  %v163_v22 = vmax.f32 %v130_v10, %v147_v6  ;;  %v66_v24 = vmax.f32 %v33_v16, %v50_v17  ;;  %309 = vst.msk [vmem:[#allocation5 + $0x28] sm:$0xff] %vm303_vm0, %v292_v13  ;;  %v213_v26 = vld [vmem:[#allocation2 + $0x340] sm:$0xff]  ;;  %v181_v28 = vld [vmem:[#allocation2 + $0x2c8] sm:$0xff] }
  0x31   :  { %v228_v25 = vmax.f32 %v195_v14, %v212_v9  ;;  %v131_v27 = vmax.f32 %v98_v15, %v115_v12  ;;  %v116_v29 = vld [vmem:[#allocation2 + $0x1d0] sm:$0xff]  ;;  %v34_v33 = vld [vmem:[#allocation2 + $0x58] sm:$0xff]  ;;  %v246_v37 = vld [vmem:[#allocation2 + $0x3c0] sm:$0xff] }
  0x32   :  { %v293_v30 = vmax.f32 %v260_v19, %v277_v4  ;;  %v196_v31 = vmax.f32 %v163_v22, %v180_v11  ;;  %v99_v32 = vmax.f32 %v66_v24, %v83_v18  ;;  %v51_v34 = vld [vmem:[#allocation2 + $0xd8] sm:$0xff]  ;;  %v279_v38 = vld [vmem:[#allocation2 + $0x440] sm:$0xff]  ;;  %v149_v40 = vld [vmem:[#allocation2 + $0x250] sm:$0xff] }
  0x33   :  { %v84_v35 = vld [vmem:[#allocation2 + $0x158] sm:$0xff]  ;;  %v261_v36 = vmax.f32 %v228_v25, %v245_v20  ;;  %v164_v39 = vmax.f32 %v131_v27, %v148_v23  ;;  %v67_v41 = vmax.f32 %v34_v33, %v51_v34  ;;  %v214_v43 = vld [vmem:[#allocation2 + $0x348] sm:$0xff]  ;;  %v182_v45 = vld [vmem:[#allocation2 + $0x2d0] sm:$0xff] }
  0x34   :  { %310 = vst.msk [vmem:[#allocation5 + $0x30] sm:$0xff] %vm303_vm0, %v293_v30  ;;  %v229_v42 = vmax.f32 %v196_v31, %v213_v26  ;;  %v132_v44 = vmax.f32 %v99_v32, %v116_v29  ;;  %v117_v46 = vld [vmem:[#allocation2 + $0x1d8] sm:$0xff]  ;;  %v35_v50 = vld [vmem:[#allocation2 + $0x60] sm:$0xff]  ;;  %v247_v54 = vld [vmem:[#allocation2 + $0x3c8] sm:$0xff] }
  0x35   :  { %v294_v47 = vmax.f32 %v261_v36, %v278_v21  ;;  %v197_v48 = vmax.f32 %v164_v39, %v181_v28  ;;  %v100_v49 = vmax.f32 %v67_v41, %v84_v35  ;;  %v52_v51 = vld [vmem:[#allocation2 + $0xe0] sm:$0xff]  ;;  %v280_v55 = vld [vmem:[#allocation2 + $0x448] sm:$0xff]  ;;  %v150_v57 = vld [vmem:[#allocation2 + $0x258] sm:$0xff] }
  0x36   :  { %v85_v52 = vld [vmem:[#allocation2 + $0x160] sm:$0xff]  ;;  %v262_v53 = vmax.f32 %v229_v42, %v246_v37  ;;  %v165_v56 = vmax.f32 %v132_v44, %v149_v40  ;;  %v68_v58 = vmax.f32 %v35_v50, %v52_v51  ;;  %v215_v60 = vld [vmem:[#allocation2 + $0x350] sm:$0xff]  ;;  %v183_v62 = vld [vmem:[#allocation2 + $0x2d8] sm:$0xff] }
  0x37   :  { %311 = vst.msk [vmem:[#allocation5 + $0x38] sm:$0xff] %vm303_vm0, %v294_v47  ;;  %v230_v59 = vmax.f32 %v197_v48, %v214_v43  ;;  %v133_v61 = vmax.f32 %v100_v49, %v117_v46  ;;  %v118_v63 = vld [vmem:[#allocation2 + $0x1e0] sm:$0xff]  ;;  %v36_v3 = vld [vmem:[#allocation2 + $0x68] sm:$0xff]  ;;  %v248_v7 = vld [vmem:[#allocation2 + $0x3d0] sm:$0xff] }
  0x38   :  { %v295_v0 = vmax.f32 %v262_v53, %v279_v38  ;;  %v198_v1 = vmax.f32 %v165_v56, %v182_v45  ;;  %v101_v2 = vmax.f32 %v68_v58, %v85_v52  ;;  %v53_v4 = vld [vmem:[#allocation2 + $0xe8] sm:$0xff]  ;;  %v281_v8 = vld [vmem:[#allocation2 + $0x450] sm:$0xff]  ;;  %v151_v10 = vld [vmem:[#allocation2 + $0x260] sm:$0xff] }
  0x39   :  { %v86_v5 = vld [vmem:[#allocation2 + $0x168] sm:$0xff]  ;;  %v263_v6 = vmax.f32 %v230_v59, %v247_v54  ;;  %v166_v9 = vmax.f32 %v133_v61, %v150_v57  ;;  %v69_v11 = vmax.f32 %v36_v3, %v53_v4  ;;  %v216_v13 = vld [vmem:[#allocation2 + $0x358] sm:$0xff]  ;;  %v184_v15 = vld [vmem:[#allocation2 + $0x2e0] sm:$0xff] }
  0x3a   :  { %312 = vst.msk [vmem:[#allocation5 + $0x40] sm:$0xff] %vm303_vm0, %v295_v0  ;;  %v231_v12 = vmax.f32 %v198_v1, %v215_v60  ;;  %v134_v14 = vmax.f32 %v101_v2, %v118_v63  ;;  %v119_v16 = vld [vmem:[#allocation2 + $0x1e8] sm:$0xff]  ;;  %v37_v20 = vld [vmem:[#allocation2 + $0x70] sm:$0xff]  ;;  %v249_v24 = vld [vmem:[#allocation2 + $0x3d8] sm:$0xff] }
  0x3b   :  { %v296_v17 = vmax.f32 %v263_v6, %v280_v55  ;;  %v199_v18 = vmax.f32 %v166_v9, %v183_v62  ;;  %v102_v19 = vmax.f32 %v69_v11, %v86_v5  ;;  %v54_v21 = vld [vmem:[#allocation2 + $0xf0] sm:$0xff]  ;;  %v282_v25 = vld [vmem:[#allocation2 + $0x458] sm:$0xff]  ;;  %v152_v27 = vld [vmem:[#allocation2 + $0x268] sm:$0xff] }
  0x3c   :  { %v87_v22 = vld [vmem:[#allocation2 + $0x170] sm:$0xff]  ;;  %v264_v23 = vmax.f32 %v231_v12, %v248_v7  ;;  %v167_v26 = vmax.f32 %v134_v14, %v151_v10  ;;  %v70_v28 = vmax.f32 %v37_v20, %v54_v21  ;;  %v217_v30 = vld [vmem:[#allocation2 + $0x360] sm:$0xff]  ;;  %v185_v32 = vld [vmem:[#allocation2 + $0x2e8] sm:$0xff] }
  0x3d   :  { %313 = vst.msk [vmem:[#allocation5 + $0x48] sm:$0xff] %vm303_vm0, %v296_v17  ;;  %v232_v29 = vmax.f32 %v199_v18, %v216_v13  ;;  %v135_v31 = vmax.f32 %v102_v19, %v119_v16  ;;  %v120_v33 = vld [vmem:[#allocation2 + $0x1f0] sm:$0xff]  ;;  %v38_v37 = vld [vmem:[#allocation2 + $0x78] sm:$0xff]  ;;  %v250_v41 = vld [vmem:[#allocation2 + $0x3e0] sm:$0xff] }
  0x3e   :  { %v297_v34 = vmax.f32 %v264_v23, %v281_v8  ;;  %v200_v35 = vmax.f32 %v167_v26, %v184_v15  ;;  %v103_v36 = vmax.f32 %v70_v28, %v87_v22  ;;  %v55_v38 = vld [vmem:[#allocation2 + $0xf8] sm:$0xff]  ;;  %v153_v43 = vld [vmem:[#allocation2 + $0x270] sm:$0xff]  ;;  %v218_v46 = vld [vmem:[#allocation2 + $0x368] sm:$0xff] }
  0x3f   :  { %v88_v39 = vld [vmem:[#allocation2 + $0x178] sm:$0xff]  ;;  %v265_v40 = vmax.f32 %v232_v29, %v249_v24  ;;  %v168_v42 = vmax.f32 %v135_v31, %v152_v27  ;;  %v71_v44 = vmax.f32 %v38_v37, %v55_v38  ;;  %v283_v50 = vld [vmem:[#allocation2 + $0x460] sm:$0xff]  ;;  %v186_v52 = vld [vmem:[#allocation2 + $0x2f0] sm:$0xff] }
  0x40   :  { %314 = vst.msk [vmem:[#allocation5 + $0x50] sm:$0xff] %vm303_vm0, %v297_v34  ;;  %v233_v45 = vmax.f32 %v200_v35, %v217_v30  ;;  %v136_v47 = vmax.f32 %v103_v36, %v120_v33  ;;  %v121_v48 = vld [vmem:[#allocation2 + $0x1f8] sm:$0xff]  ;;  %v251_v55 = vld [vmem:[#allocation2 + $0x3e8] sm:$0xff]  ;;  %v219_v59 = vld [vmem:[#allocation2 + $0x370] sm:$0xff] }
  0x41   :  { %v298_v49 = vmax.f32 %v265_v40, %v282_v25  ;;  %v201_v51 = vmax.f32 %v168_v42, %v185_v32  ;;  %v104_v53 = vmax.f32 %v71_v44, %v88_v39  ;;  %v154_v57 = vld [vmem:[#allocation2 + $0x278] sm:$0xff]  ;;  %v284_v62 = vld [vmem:[#allocation2 + $0x468] sm:$0xff]  ;;  %v252_v2 = vld [vmem:[#allocation2 + $0x3f0] sm:$0xff] }
  0x42   :  { %v266_v54 = vmax.f32 %v233_v45, %v250_v41  ;;  %v169_v56 = vmax.f32 %v136_v47, %v153_v43  ;;  %v187_v0 = vld [vmem:[#allocation2 + $0x2f8] sm:$0xff]  ;;  %v285_v7 = vld [vmem:[#allocation2 + $0x470] sm:$0xff] }
  0x43   :  { %315 = vst.msk [vmem:[#allocation5 + $0x58] sm:$0xff] %vm303_vm0, %v298_v49  ;;  %v234_v58 = vmax.f32 %v201_v51, %v218_v46  ;;  %v137_v60 = vmax.f32 %v104_v53, %v121_v48  ;;  %v220_v5 = vld [vmem:[#allocation2 + $0x378] sm:$0xff] }
  0x44   :  { %v299_v61 = vmax.f32 %v266_v54, %v283_v50  ;;  %v202_v63 = vmax.f32 %v169_v56, %v186_v52  ;;  %v253_v10 = vld [vmem:[#allocation2 + $0x3f8] sm:$0xff] }
  0x45   :  { %v267_v1 = vmax.f32 %v234_v58, %v251_v55  ;;  %v170_v3 = vmax.f32 %v137_v60, %v154_v57  ;;  %v286_v13 = vld [vmem:[#allocation2 + $0x478] sm:$0xff] }
  0x46   :  { %316 = vst.msk [vmem:[#allocation5 + $0x60] sm:$0xff] %vm303_vm0, %v299_v61  ;;  %v235_v4 = vmax.f32 %v202_v63, %v219_v59 }
  0x47   :  { %v300_v6 = vmax.f32 %v267_v1, %v284_v62  ;;  %v203_v8 = vmax.f32 %v170_v3, %v187_v0 }
  0x48   :  { %v268_v9 = vmax.f32 %v235_v4, %v252_v2 }
  0x49   :  { %317 = vst.msk [vmem:[#allocation5 + $0x68] sm:$0xff] %vm303_vm0, %v300_v6  ;;  %v236_v11 = vmax.f32 %v203_v8, %v220_v5 }
  0x4a   :  { %v301_v12 = vmax.f32 %v268_v9, %v285_v7 }
  0x4b   :  { %v269_v14 = vmax.f32 %v236_v11, %v253_v10 }
  0x4c   :  { %318 = vst.msk [vmem:[#allocation5 + $0x70] sm:$0xff] %vm303_vm0, %v301_v12 }
  0x4d   :  { %v302_v15 = vmax.f32 %v269_v14, %v286_v13 }
  0x4f   :  { %319 = vst.msk [vmem:[#allocation5 + $0x78] sm:$0xff] %vm303_vm0, %v302_v15 }
  0x50   :  { %374 = shalt.err (!%p371_p12)
}
  0x51   :  { %s375_s24 = scalar_lea.hbm %s450_s1, 2048 }
  0x52   :  { %p376_p13 = scmp.ne.s32.totalorder %s450_s1, %s375_s24  ;;  %p379_p0 = scmp.lt.u32.totalorder %s375_s24, %s450_s1 }
  0x54   :  { %p381_p1 = pnand %p379_p0, %p376_p13 }
  0x56   :  { %384 = shalt.err (!%p381_p1)
}
  0x57   :  { %331 = dma.vmem_to_hbm [thread:$0]  %s326_s20, 2048, %s450_s1, [#allocation4], %s390_s16, %s390_s16, %s391_s17  }
  0x58   :  { %387 = dma.done.wait [#allocation4], 2048  }
  0x59   :  { %388 = vsyncadd [#allocation4], 4294965248 }
  0x5a   :  { %335 = vsyncpa [#allocation3], 1 }
  0x5b   :  { %336 = vsyncpa [#allocation4], 1 }

// kernel: _lambda_.7
= control target key start
LH: loop header
LB: loop body
LE: loop exit
PB: predicated region body
PF: predicated region fallthrough
CT: control target
= control target key end

     0   :  { %9 = vsyncpa [#allocation3], 0  ;;  %s3684_s0 = inlined_call_operand.hbm [shape: bf16[768,640], index: 0, kind: input, shape index: {}]   ;;  %s3685_s1 = inlined_call_operand.hbm [shape: bf16[640,128], index: 1, kind: input, shape index: {}]   ;;  %s3686_s2 = inlined_call_operand.hbm [shape: f32[1,128], index: 2, kind: input, shape index: {}]   ;;  %s3687_s3 = inlined_call_operand.hbm [shape: f32[1,128], index: 3, kind: input, shape index: {}]   ;;  %s3688_s4 = inlined_call_operand.hbm [shape: bf16[768,128], index: 4, kind: output, shape index: {}]  }
   0x1   :  { %11 = vsyncpa [#allocation3 + $0x1], 0 }
   0x2   :  { %12 = vsyncpa [#allocation6], 0 }
   0x3   :  { %13 = vsyncpa [#allocation9], 0 }
   0x4   :  { %14 = vsyncpa [#allocation4], 0 }
   0x5   :  { %16 = vsyncpa [#allocation4 + $0x1], 0  ;;  %s3123_s15 = smov 0   ;;  %s3125_s16 = smov 0  }
   0x6   :  { %s3127_s17 = smov 0   ;;  %s3129_s18 = smov 0  }
   0x7   :  { %s3131_s19 = smov 0   ;;  %s3133_s20 = smov 0  }
   0x8 LB: > { %s2013_s21 = sadd.s32 4294967295, %s3085_s20   ;;  %s2014_s22 = sadd.s32 4294967294, %s3085_s20   ;;  %s3085_s20 = sphi %s3133_s20, %s22_s20   ;;  %s3081_s19 = sphi %s3131_s19, %s3714_s19   ;;  %s3077_s18 = sphi %s3129_s18, %s3713_s18   ;;  %s3073_s17 = sphi %s3127_s17, %s3712_s17   ;;  %s3069_s16 = sphi %s3125_s16, %s3711_s16   ;;  %s3065_s15 = sphi %s3123_s15, %s3710_s15  }
   0x9   : > { %p54_p0 = scmp.ne.s32.totalorder %s3069_s16, %s3065_s15  ;;  %p3157_p1 = scmp.eq.s32.totalorder %s2013_s21, 0 }
   0xa   : > { %p3161_p2 = scmp.eq.s32.totalorder %s2013_s21, 2  ;;  %p164_p3 = scmp.eq.s32.totalorder %s2014_s22, 2 }
   0xb   : > { %s3694_s23 = scalar_select %p3157_p1, 1, 0 }
   0xc   : > { %s3695_s24 = scalar_select %p3161_p2, 1, 0 }
   0xd   : > { %p3167_p4 = por %p3157_p1, %p54_p0  ;;  %p2015_p5 = scmp.ge.s32.totalorder %s3085_s20, 1 }
   0xe   : > { %p3172_p6 = por %p164_p3, %p54_p0  ;;  %p171_p7 = scmp.lt.s32.totalorder %s3085_s20, 4 }
   0xf   : > { %s3696_s25 = scalar_select %p3167_p4, 1, 0 }
  0x10   : > { %s3697_s26 = scalar_select %p3172_p6, 1, 0 }
  0x11   : > { %p3177_p8 = pnand %p2015_p5, %p171_p7  ;;  %s3087_s28 = smov [#allocation5]  }
  0x12   : > { %3698 = sst [smem:[#allocation15_spill]] %s3697_s26  ;;  %s185_s29 = sshll.u32 %s3087_s28, 4  ;;  %s3181_s29 = int_to_ptr.vmem [resolvable:$true] %s185_s29 }
  0x13   : > { %s3699_s27 = scalar_select %p3177_p8, 1, 0 }
  0x14   : > { %p2646_p9 = pneg %p3177_p8  ;;  %s3088_s5 = smov [#allocation7]  }
  0x15   : > { %s201_s6 = sshll.u32 %s3088_s5, 4  ;;  %s3089_s7 = smov [#allocation8]   ;;  %s3191_s6 = int_to_ptr.vmem [resolvable:$true] %s201_s6 }
  0x16   : > { %p3187_p10 = pnand %p2646_p9, %p3157_p1  ;;  %s3193_s8 = sshll.u32 %s3089_s7, 4  ;;  %s215_s8 = int_to_ptr.vmem [resolvable:$true] %s3193_s8 }
  0x17   : > { %s2881_s11 = scalar_lea.hbm %s3685_s1, 5120 }
  0x18   : > { %p2882_p11 = scmp.ne.s32.totalorder %s3685_s1, %s2881_s11  ;;  %p3203_p12 = pneg %p3187_p10 }
  0x19   : > { %p2888_p3 = scmp.lt.u32.totalorder %s2881_s11, %s3685_s1 }
  0x1a   : > { %p2884_p13 = pnand %p3203_p12, %p2882_p11 }
  0x1c   : > { %p2885_p0 = pneg %p2884_p13 }
  0x1e   : > { %p2890_p5 = pnand %p2888_p3, %p2885_p0 }
  0x20   : > { %2893 = shalt.err (!%p2890_p5)
}
  0x21   : > { %s2894_s28 = scalar_lea.vmem %s3181_s29, 5120  ;;  %p2902_p1 = scmp.lt.s32.totalorder %s3181_s29, %s3181_s29 }
  0x22   : > { %p2895_p7 = scmp.ne.s32.totalorder %s3181_s29, %s2894_s28  ;;  %p2903_p4 = scmp.lt.s32.totalorder %s2894_s28, %s2894_s28 }
  0x24   : > { %p2897_p9 = pnand %p2895_p7, %p3203_p12  ;;  %p2904_p11 = por %p2903_p4, %p2902_p1 }
  0x26   : > { %p2898_p6 = pneg %p2897_p9 }
  0x28   : > { %p2905_p13 = pnand %p2904_p11, %p2898_p6 }
  0x2a   : > { %2908 = shalt.err (!%p2905_p13)
}
  0x2b   : > { %s3090_s5 = smov 64   ;;  %s3091_s7 = smov 4  }
  0x2c   : > { %2649 = dma.hbm_to_vmem [thread:$0]  (!%p3187_p10), %s3685_s1, 5120, %s3181_s29, [#allocation6], %s3090_s5, %s3090_s5, %s3091_s7  }
  0x2d   : > { %s2909_s13 = scalar_lea.hbm %s3686_s2, 16 }
  0x2e   : > { %p2910_p1 = scmp.ne.s32.totalorder %s3686_s2, %s2909_s13  ;;  %p2916_p0 = scmp.lt.u32.totalorder %s2909_s13, %s3686_s2 }
  0x30   : > { %p2912_p4 = pnand %p2910_p1, %p3203_p12 }
  0x32   : > { %p2913_p6 = pneg %p2912_p4 }
  0x34   : > { %p2918_p3 = pnand %p2916_p0, %p2913_p6 }
  0x36   : > { %2921 = shalt.err (!%p2918_p3)
}
  0x37   : > { %s2922_s29 = scalar_lea.vmem %s3191_s6, 16  ;;  %s2929_s5 = scalar_lea.vmem %s3191_s6, 32 }
  0x38   : > { %p2923_p5 = scmp.ne.s32.totalorder %s3191_s6, %s2922_s29  ;;  %p2930_p11 = scmp.lt.s32.totalorder %s3191_s6, %s3191_s6 }
  0x39   : > { %p2931_p13 = scmp.lt.s32.totalorder %s2929_s5, %s2922_s29 }
  0x3a   : > { %p2925_p7 = pnand %p2923_p5, %p3203_p12 }
  0x3b   : > { %p2932_p1 = por %p2931_p13, %p2930_p11 }
  0x3c   : > { %p2926_p9 = pneg %p2925_p7 }
  0x3e   : > { %p2933_p4 = pnand %p2932_p1, %p2926_p9 }
  0x40   : > { %2936 = shalt.err (!%p2933_p4)
}
  0x41   : > { %2652 = dma.hbm_to_vmem [thread:$0]  (!%p3187_p10), %s3686_s2, 16, %s3191_s6, [#allocation6]  }
  0x42   : > { %s2937_s11 = scalar_lea.hbm %s3687_s3, 16 }
  0x43   : > { %p2938_p6 = scmp.ne.s32.totalorder %s3687_s3, %s2937_s11  ;;  %p2944_p5 = scmp.lt.u32.totalorder %s2937_s11, %s3687_s3 }
  0x45   : > { %p2940_p0 = pnand %p2938_p6, %p3203_p12 }
  0x47   : > { %p2941_p3 = pneg %p2940_p0 }
  0x49   : > { %p2946_p7 = pnand %p2944_p5, %p2941_p3 }
  0x4b   : > { %2949 = shalt.err (!%p2946_p7)
}
  0x4c   : > { %s2950_s28 = scalar_lea.vmem %s215_s8, 16  ;;  %s2957_s6 = scalar_lea.vmem %s215_s8, 32 }
  0x4d   : > { %p2951_p9 = scmp.ne.s32.totalorder %s215_s8, %s2950_s28  ;;  %p2958_p1 = scmp.lt.s32.totalorder %s215_s8, %s215_s8 }
  0x4e   : > { %p2959_p4 = scmp.lt.s32.totalorder %s2957_s6, %s2950_s28 }
  0x4f   : > { %p2953_p11 = pnand %p2951_p9, %p3203_p12 }
  0x50   : > { %p2960_p8 = por %p2959_p4, %p2958_p1 }
  0x51   : > { %p2954_p13 = pneg %p2953_p11 }
  0x53   : > { %p2961_p2 = pnand %p2960_p8, %p2954_p13 }
  0x55   : > { %2964 = shalt.err (!%p2961_p2)
}
  0x56   : > { %2655 = dma.hbm_to_vmem [thread:$0]  (!%p3187_p10), %s3687_s3, 16, %s215_s8, [#allocation9]  }
  0x57   : > { %s41_s14 = sadd.s32 1, %s3073_s17  ;;  %s34_s26 = sadd.s32 1, %s3081_s19 }
  0x58   : > { %p48_p2 = scmp.ne.s32.totalorder %s3073_s17, %s3069_s16  ;;  %p36_p8 = scmp.ge.s32.totalorder %s34_s26, 3 }
  0x59   : > { %p49_p12 = scmp.eq.s32.totalorder %s3085_s20, 0  ;;  %p3702_p6 = scmp.ne.s32.totalorder %s3695_s24, 0 }
  0x5a   : > { %p2667_p3 = scmp.lt.s32.totalorder %s3085_s20, 3  ;;  %s3716_s26 = smov (%p36_p8, %s34_s26), 0 }
  0x5b   : > { %p3274_p0 = por %p3702_p6, %p48_p2  ;;  %p50_p5 = por %p49_p12, %p48_p2 }
  0x5c   : > { %s225_s7 = sand.u32 1, %s3073_s17   ;;  %s38_s9 = ssub.s32 %s3081_s19, %s3716_s26 }
  0x5d   : > { %p39_p7 = scmp.eq.s32.totalorder %s38_s9, 0  ;;  %s2627_s8 = smul.u32 640, %s225_s7 }
  0x5e   : > { %s2628_s10 = smul.u32 10240, %s3081_s19  ;;  %p3285_p10 = pnand %p2667_p3, %p50_p5 }
  0x5f   : > { %s3290_s24 = scalar_select %p39_p7, %s3073_s17, %s41_s14  }
  0x60   : > { %s3295_s21 = scalar_lea.hbm %s3684_s0, %s2628_s10  ;;  %s229_s22 = scalar_lea.vmem [#allocation2], %s2627_s8 }
  0x61   : > { %s237_s28 = sshll.u32 %s229_s22, 4  ;;  %s3299_s6 = scalar_lea.sflag [#allocation3], %s225_s7  ;;  %s3297_s28 = int_to_ptr.vmem [resolvable:$true] %s237_s28 }
  0x62   : > { %s2965_s29 = scalar_lea.hbm %s3295_s21, 10240  ;;  %p2967_p11 = pneg %p3285_p10 }
  0x63   : > { %p2966_p9 = scmp.ne.s32.totalorder %s3295_s21, %s2965_s29  ;;  %s2970_s9 = scalar_lea.hbm %s3684_s0, 30720 }
  0x64   : > { %p2971_p4 = scmp.lt.u32.totalorder %s3295_s21, %s3684_s0  ;;  %p2972_p2 = scmp.lt.u32.totalorder %s2970_s9, %s2965_s29 }
  0x65   : > { %p2968_p13 = pnand %p2967_p11, %p2966_p9  ;;  %p2974_p12 = scmp.lt.u32.totalorder %s2965_s29, %s3295_s21 }
  0x66   : > { %p2973_p8 = por %p2972_p2, %p2971_p4 }
  0x67   : > { %p2969_p1 = pneg %p2968_p13 }
  0x68   : > { %p2975_p6 = por %p2974_p12, %p2973_p8 }
  0x6a   : > { %p2976_p3 = pnand %p2975_p6, %p2969_p1 }
  0x6c   : > { %2979 = shalt.err (!%p2976_p3)
}
  0x6d   : > { %s2980_s7 = scalar_lea.vmem %s3297_s28, 10240  ;;  %s3092_s8 = smov [#allocation2]  }
  0x6e   : > { %p2981_p5 = scmp.ne.s32.totalorder %s3297_s28, %s2980_s7  ;;  %s2985_s13 = sshll.u32 %s3092_s8, 4  ;;  %s2986_s13 = int_to_ptr.vmem [resolvable:$false] %s2985_s13 }
  0x6f   : > { %s2987_s22 = scalar_lea.vmem %s2986_s13, 20480  ;;  %p2988_p13 = scmp.lt.s32.totalorder %s3297_s28, %s2986_s13 }
  0x70   : > { %p2983_p7 = pnand %p2981_p5, %p2967_p11  ;;  %p2989_p4 = scmp.lt.s32.totalorder %s2987_s22, %s2980_s7 }
  0x72   : > { %p2984_p9 = pneg %p2983_p7  ;;  %p2990_p2 = por %p2989_p4, %p2988_p13 }
  0x74   : > { %p2991_p8 = pnand %p2990_p2, %p2984_p9 }
  0x76   : > { %2994 = shalt.err (!%p2991_p8)
}
  0x77   : > { %s3093_s29 = smov 320   ;;  %s3094_s5 = smov 20  }
  0x78   : > { %2659 = dma.hbm_to_vmem [thread:$0]  (!%p3285_p10), %s3295_s21, 10240, %s3297_s28, %s3299_s6, %s3093_s29, %s3093_s29, %s3094_s5  }
  0x79   : > { %p3705_p11 = scmp.ne.s32.totalorder %s3699_s27, 0 }
  0x7a   : > { %s3330_s14 = sand.u32 (!%p3705_p11), 1, %s3069_s16   ;;  %p3706_p1 = scmp.ne.s32.totalorder (!%p3705_p11), %s3696_s25, 0 }
  0x7b   : > { %249 = sbr.rel (%p3705_p11) target bundleno = 565 (0x235), region = 36  ;;  %s252_s10 = scalar_lea.sflag (!%p3705_p11), [#allocation3], %s3330_s14 }
  0x7c   : > { %s2629_s9 = smul.u32 (!%p3705_p11), 640, %s3330_s14 }
  0x7e   : > { %s3334_s12 = scalar_lea.vmem (!%p3705_p11), [#allocation2], %s2629_s9 }
  0x82   : > { %3048 = dma.done.wait (%p3706_p1), %s252_s10, 10240  }
  0x83   : > { %3050 = vsyncadd (%p3706_p1), %s252_s10, 4294957056  ;;  %p3707_p10 = scmp.ne.s32.totalorder %s3694_s23, 0 }
  0x85   : > { %3052 = dma.done.wait (%p3707_p10), [#allocation6], 5136  }
  0x86   : > { %3054 = vsyncadd (%p3707_p10), [#allocation6], 4294962160 }
  0x87   : > { %3056 = dma.done.wait (%p3707_p10), [#allocation9], 16  }
  0x88   : > { %3058 = vsyncadd (%p3707_p10), [#allocation9], 4294967280  ;;  %v2729_v0 = vld [vmem:[#allocation5 + $0x40] sm:$0xff]   ;;  %v2731_v2 = vld [vmem:[#allocation5 + $0x48] sm:$0xff]   ;;  %s2027_s23 = sshll.u32 %s3330_s14, 7  ;;  %s2219_s27 = sshll.u32 %s3077_s18, 11 }
  0x89   : > { %v2730_v1 = vld [vmem:[#allocation5] sm:$0xff]   ;;  %2315 = vmatprep.subr.bf16.mxu0 %v2729_v0  ;;  %2611 = vmatprep.subr.bf16.mxu1 %v2729_v0  ;;  %v2732_v3 = vld [vmem:[#allocation5 + $0x8] sm:$0xff]   ;;  %v2733_v4 = vld [vmem:[#allocation5 + $0x50] sm:$0xff]   ;;  %s3521_s25 = scalar_lea.vmem [#allocation10], %s2027_s23  ;;  %s3633_s6 = scalar_lea.hbm %s3688_s4, %s2219_s27 }
  0x8a   : > { %2316 = vmatpush3.bf16.msra.mxu0 %v2730_v1  ;;  %2619 = vmatpush3.bf16.msra.mxu1 %v2730_v1  ;;  %v2734_v5 = vld [vmem:[#allocation5 + $0x10] sm:$0xff]   ;;  %v2735_v6 = vld [vmem:[#allocation5 + $0x58] sm:$0xff]   ;;  %v2737_v8 = vld [vmem:[#allocation5 + $0x60] sm:$0xff]   ;;  %s1895_s11 = sshll.u32 %s3521_s25, 4  ;;  %s1881_s7 = scalar_lea.sflag [#allocation4], %s3330_s14  ;;  %s3635_s11 = int_to_ptr.vmem [resolvable:$true] %s1895_s11 }
  0x8b   : > { %2317 = vmatprep.subr.bf16.mxu0 %v2731_v2  ;;  %2612 = vmatprep.subr.bf16.mxu1 %v2731_v2  ;;  %v2736_v7 = vld [vmem:[#allocation5 + $0x18] sm:$0xff]   ;;  %v2738_v9 = vld [vmem:[#allocation5 + $0x20] sm:$0xff]   ;;  %v2739_v10 = vld [vmem:[#allocation5 + $0x68] sm:$0xff]   ;;  %s2995_s8 = scalar_lea.vmem %s3635_s11, 2048  ;;  %s3095_s18 = smov [#allocation10]  }
  0x8c   : > { %v2747_v11 = vld [vmem:[%s3334_s12 + $0x4] ss:$20 sps:$4 sm:$0xff]   ;;  %v2740_v13 = vld [vmem:[#allocation5 + $0x28] sm:$0xff]   ;;  %v2741_v14 = vld [vmem:[#allocation5 + $0x70] sm:$0xff]   ;;  %p2996_p12 = scmp.ne.s32.totalorder %s3635_s11, %s2995_s8  ;;  %s2999_s13 = sshll.u32 %s3095_s18, 4  ;;  %s3000_s13 = int_to_ptr.vmem [resolvable:$false] %s2999_s13 }
  0x8d   : > { %v2750_v12 = vld [vmem:[%s3334_s12 + $0x1e4] ss:$20 sps:$4 sm:$0xff]   ;;  %1159 = vmatprep.mubr.bf16.mxu0 %v2747_v11  ;;  %v2742_v15 = vld [vmem:[#allocation5 + $0x30] sm:$0xff]   ;;  %v2753_v23 = vld [vmem:[#allocation5 + $0xc8] sm:$0xff]   ;;  %s3001_s22 = scalar_lea.vmem %s3000_s13, 4096  ;;  %p3002_p5 = scmp.lt.s32.totalorder %s3635_s11, %s3000_s13 }
  0x8e   : > { %2318 = vmatpush3.bf16.msra.mxu0 %v2732_v3  ;;  %2620 = vmatpush3.bf16.msra.mxu1 %v2732_v3  ;;  %v2743_v16 = vld [vmem:[#allocation5 + $0x78] sm:$0xff]   ;;  %v2751_v18 = vld [vmem:[#allocation5 + $0xc0] sm:$0xff]   ;;  %v2773_v26 = vld [vmem:[#allocation5 + $0x108] sm:$0xff]   ;;  %p2997_p6 = pnand %p2996_p12, %p3274_p0  ;;  %p3003_p7 = scmp.lt.s32.totalorder %s3001_s22, %s2995_s8 }
  0x8f   : > { %2319 = vmatprep.subr.bf16.mxu0 %v2733_v4  ;;  %2613 = vmatprep.subr.bf16.mxu1 %v2733_v4  ;;  %v2744_v17 = vld [vmem:[#allocation5 + $0x38] sm:$0xff]   ;;  %v2754_v19 = vld [vmem:[#allocation5 + $0x100] sm:$0xff]   ;;  %v2755_v27 = vld [vmem:[#allocation5 + $0x88] sm:$0xff]  }
  0x90   : > { %1255 = vmatprep.mubr.bf16.mxu1 %v2750_v12  ;;  %v2745_v20 = vld [vmem:[%s3334_s12] ss:$20 sps:$4 sm:$0xff]   ;;  %v2760_v28 = vld [vmem:[%s3334_s12 + $0x28] ss:$20 sps:$4 sm:$0xff]   ;;  %v2770_v37 = vld [vmem:[%s3334_s12 + $0x50] ss:$20 sps:$4 sm:$0xff]   ;;  %p2998_p3 = pneg %p2997_p6  ;;  %p3004_p9 = por %p3003_p7, %p3002_p5 }
  0x91   : > { %v2748_v21 = vld [vmem:[%s3334_s12 + $0x1e0] ss:$20 sps:$4 sm:$0xff]   ;;  %v2761_v30 = vld [vmem:[%s3334_s12 + $0x208] ss:$20 sps:$4 sm:$0xff]   ;;  %v2771_v39 = vld [vmem:[%s3334_s12 + $0x230] ss:$20 sps:$4 sm:$0xff]  }
  0x92   : > { %2320 = vmatpush3.bf16.msra.mxu0 %v2734_v5  ;;  %2621 = vmatpush3.bf16.msra.mxu1 %v2734_v5  ;;  %v2752_v22 = vld [vmem:[#allocation5 + $0x80] sm:$0xff]   ;;  %v2762_v29 = vld [vmem:[#allocation5 + $0xd0] sm:$0xff]   ;;  %v2764_v33 = vld [vmem:[#allocation5 + $0xd8] sm:$0xff]   ;;  %p3005_p13 = pnand %p3004_p9, %p2998_p3 }
  0x93   : > { %2321 = vmatprep.subr.bf16.mxu0 %v2735_v6  ;;  %2614 = vmatprep.subr.bf16.mxu1 %v2735_v6  ;;  %v2756_v24 = vld [vmem:[%s3334_s12 + $0x2c] ss:$20 sps:$4 sm:$0xff]   ;;  %v2763_v31 = vld [vmem:[#allocation5 + $0x90] sm:$0xff]   ;;  %v2765_v35 = vld [vmem:[#allocation5 + $0x98] sm:$0xff]  }
  0x94   : > { %v2758_v25 = vld [vmem:[%s3334_s12 + $0x20c] ss:$20 sps:$4 sm:$0xff]   ;;  %v2766_v32 = vld [vmem:[%s3334_s12 + $0x54] ss:$20 sps:$4 sm:$0xff]   ;;  %v2777_v42 = vld [vmem:[%s3334_s12 + $0x7c] ss:$20 sps:$4 sm:$0xff]  }
  0x95   : > { %v2768_v34 = vld [vmem:[%s3334_s12 + $0x234] ss:$20 sps:$4 sm:$0xff]   ;;  %v2772_v36 = vld [vmem:[#allocation5 + $0xe0] sm:$0xff]   ;;  %v2779_v43 = vld [vmem:[%s3334_s12 + $0x25c] ss:$20 sps:$4 sm:$0xff]  }
  0x96   : > { %2322 = vmatpush3.bf16.msra.mxu0 %v2736_v7  ;;  %2622 = vmatpush3.bf16.msra.mxu1 %v2736_v7  ;;  %v2786_v38 = vld [vmem:[#allocation5 + $0x110] sm:$0xff]   ;;  %v2774_v40 = vld [vmem:[#allocation5 + $0xa0] sm:$0xff]   ;;  %v2775_v41 = vld [vmem:[#allocation5 + $0xe8] sm:$0xff]  }
  0x97   : > { %2323 = vmatprep.subr.bf16.mxu0 %v2737_v8  ;;  %2615 = vmatprep.subr.bf16.mxu1 %v2737_v8  ;;  %v2776_v44 = vld [vmem:[#allocation5 + $0xa8] sm:$0xff]   ;;  %v2800_v45 = vld [vmem:[#allocation5 + $0x118] sm:$0xff]   ;;  %v2783_v48 = vld [vmem:[#allocation5 + $0xf0] sm:$0xff]  }
  0x98   : > { %v2781_v46 = vld [vmem:[%s3334_s12 + $0x78] ss:$20 sps:$4 sm:$0xff]   ;;  %v2784_v49 = vld [vmem:[#allocation5 + $0xb0] sm:$0xff]   ;;  %v2807_v52 = vld [vmem:[#allocation5 + $0x120] sm:$0xff]  }
  0x99   : > { %v2782_v47 = vld [vmem:[%s3334_s12 + $0x258] ss:$20 sps:$4 sm:$0xff]   ;;  %v2790_v55 = vld [vmem:[%s3334_s12 + $0x8] ss:$20 sps:$4 sm:$0xff]   ;;  %v2793_v56 = vld [vmem:[%s3334_s12 + $0xa0] ss:$20 sps:$4 sm:$0xff]  }
  0x9a   : > { %2324 = vmatpush3.bf16.msra.mxu0 %v2738_v9  ;;  %2623 = vmatpush3.bf16.msra.mxu1 %v2738_v9  ;;  %v2785_v50 = vld [vmem:[#allocation5 + $0xf8] sm:$0xff]   ;;  %v2792_v53 = vld [vmem:[%s3334_s12 + $0xc] ss:$20 sps:$4 sm:$0xff]   ;;  %v2796_v59 = vld [vmem:[%s3334_s12 + $0x34] ss:$20 sps:$4 sm:$0xff]  }
  0x9b   : > { %2325 = vmatprep.subr.bf16.mxu0 %v2739_v10  ;;  %2616 = vmatprep.subr.bf16.mxu1 %v2739_v10  ;;  %v2788_v51 = vld [vmem:[%s3334_s12 + $0xa4] ss:$20 sps:$4 sm:$0xff]   ;;  %v2820_v57 = vld [vmem:[#allocation5 + $0x128] sm:$0xff]   ;;  %v2827_v60 = vld [vmem:[#allocation5 + $0x130] sm:$0xff]  }
  0x9c   : > { %v2787_v54 = vld [vmem:[#allocation5 + $0xb8] sm:$0xff]   ;;  %v2794_v58 = vld [vmem:[%s3334_s12 + $0xcc] ss:$20 sps:$4 sm:$0xff]   ;;  %v2799_v62 = vld [vmem:[%s3334_s12 + $0x30] ss:$20 sps:$4 sm:$0xff]  }
  0x9d   : > { %v2798_v61 = vld [vmem:[%s3334_s12 + $0xc8] ss:$20 sps:$4 sm:$0xff]   ;;  %v2805_v2 = vld [vmem:[%s3334_s12 + $0xf0] ss:$20 sps:$4 sm:$0xff]   ;;  %v2806_v3 = vld [vmem:[%s3334_s12 + $0x58] ss:$20 sps:$4 sm:$0xff]  }
  0x9e   : > { %2326 = vmatpush3.bf16.msra.mxu0 %v2740_v13  ;;  %2624 = vmatpush3.bf16.msra.mxu1 %v2740_v13  ;;  %v2801_v63 = vld [vmem:[%s3334_s12 + $0xf4] ss:$20 sps:$4 sm:$0xff]   ;;  %v2803_v0 = vld [vmem:[%s3334_s12 + $0x5c] ss:$20 sps:$4 sm:$0xff]   ;;  %v2810_v5 = vld [vmem:[%s3334_s12 + $0x84] ss:$20 sps:$4 sm:$0xff]  }
  0x9f   : > { %2327 = vmatprep.subr.bf16.mxu0 %v2741_v14  ;;  %2617 = vmatprep.subr.bf16.mxu1 %v2741_v14  ;;  %v2840_v1 = vld [vmem:[#allocation5 + $0x138] sm:$0xff]   ;;  %v2813_v7 = vld [vmem:[%s3334_s12 + $0x80] ss:$20 sps:$4 sm:$0xff]  }
  0xa0   : > { %v2808_v4 = vld [vmem:[%s3334_s12 + $0x11c] ss:$20 sps:$4 sm:$0xff]   ;;  %v2812_v6 = vld [vmem:[%s3334_s12 + $0x118] ss:$20 sps:$4 sm:$0xff]   ;;  %v2818_v10 = vld [vmem:[%s3334_s12 + $0x140] ss:$20 sps:$4 sm:$0xff]  }
  0xa1   : > { %v2814_v8 = vld [vmem:[%s3334_s12 + $0x144] ss:$20 sps:$4 sm:$0xff]   ;;  %v2816_v9 = vld [vmem:[%s3334_s12 + $0xac] ss:$20 sps:$4 sm:$0xff]   ;;  %v2819_v11 = vld [vmem:[%s3334_s12 + $0xa8] ss:$20 sps:$4 sm:$0xff]  }
  0xa2   : > { %2328 = vmatpush3.bf16.msra.mxu0 %v2742_v15  ;;  %2625 = vmatpush3.bf16.msra.mxu1 %v2742_v15  ;;  %v2821_v12 = vld [vmem:[%s3334_s12 + $0x16c] ss:$20 sps:$4 sm:$0xff]   ;;  %v2823_v13 = vld [vmem:[%s3334_s12 + $0xd4] ss:$20 sps:$4 sm:$0xff]   ;;  %v2826_v15 = vld [vmem:[%s3334_s12 + $0xd0] ss:$20 sps:$4 sm:$0xff]  }
  0xa3   : > { %2329 = vmatprep.subr.bf16.mxu0 %v2743_v16  ;;  %2618 = vmatprep.subr.bf16.mxu1 %v2743_v16  ;;  %v2825_v14 = vld [vmem:[%s3334_s12 + $0x168] ss:$20 sps:$4 sm:$0xff]  }
  0xa4   : > { %v2828_v16 = vld [vmem:[%s3334_s12 + $0x194] ss:$20 sps:$4 sm:$0xff]  }
  0xa6   : > { %2330 = vmatpush3.bf16.msra.mxu0 %v2744_v17  ;;  %2626 = vmatpush3.bf16.msra.mxu1 %v2744_v17  ;;  %v2830_v17 = vld [vmem:[%s3334_s12 + $0xfc] ss:$20 sps:$4 sm:$0xff]  }
  0xa7   : > { %2427 = vmatprep.subr.bf16.mxu1 %v2751_v18  ;;  %2563 = vmatprep.subr.bf16.mxu0 %v2754_v19  ;;  %v2832_v18 = vld [vmem:[%s3334_s12 + $0x190] ss:$20 sps:$4 sm:$0xff]  }
  0xa9   : > { %1160 = vmatmul.mubr.bf16.vlgmr.msra.gmra.mrb[0].mxu0 %v2745_v20  ;;  %1256 = vmatmul.mubr.bf16.vlgmr.msra.gmra.mrb[0].mxu1 %v2748_v21  ;;  %v2834_v20 = vld [vmem:[%s3334_s12 + $0x1bc] ss:$20 sps:$4 sm:$0xff]   ;;  %v2836_v21 = vld [vmem:[%s3334_s12 + $0x124] ss:$20 sps:$4 sm:$0xff]  }
  0xaa   : > { %2428 = vmatpush3.bf16.msra.mxu1 %v2752_v22  ;;  %2564 = vmatpush3.bf16.msra.mxu0 %v2754_v19  ;;  %v2833_v19 = vld [vmem:[%s3334_s12 + $0xf8] ss:$20 sps:$4 sm:$0xff]  }
  0xab   : > { %2429 = vmatprep.subr.bf16.mxu1 %v2753_v23  ;;  %1167 = vmatprep.mubr.bf16.mxu0 %v2756_v24  ;;  %v2838_v22 = vld [vmem:[%s3334_s12 + $0x1b8] ss:$20 sps:$4 sm:$0xff]   ;;  %v2839_v23 = vld [vmem:[%s3334_s12 + $0x120] ss:$20 sps:$4 sm:$0xff]  }
  0xac   : > { %1263 = vmatprep.mubr.bf16.mxu1 %v2758_v25  ;;  %2565 = vmatprep.subr.bf16.mxu0 %v2773_v26  ;;  %v2841_v24 = vld [vmem:[%s3334_s12 + $0x14c] ss:$20 sps:$4 sm:$0xff]   ;;  %v2843_v25 = vld [vmem:[%s3334_s12 + $0x10] ss:$20 sps:$4 sm:$0xff]  }
  0xae   : > { %2430 = vmatpush3.bf16.msra.mxu1 %v2755_v27  ;;  %2566 = vmatpush3.bf16.msra.mxu0 %v2773_v26  ;;  %v2844_v26 = vld [vmem:[%s3334_s12 + $0x148] ss:$20 sps:$4 sm:$0xff]   ;;  %v2845_v27 = vld [vmem:[%s3334_s12 + $0x38] ss:$20 sps:$4 sm:$0xff]  }
  0xaf   : > { %2431 = vmatprep.subr.bf16.mxu1 %v2762_v29  ;;  %2567 = vmatprep.subr.bf16.mxu0 %v2786_v38  ;;  %v2848_v29 = vld [vmem:[%s3334_s12 + $0x60] ss:$20 sps:$4 sm:$0xff]  }
  0xb1   : > { %1168 = vmatmul.mubr.bf16.gmra.mrb[4].mxu0 %v2760_v28  ;;  %1264 = vmatmul.mubr.bf16.gmra.mrb[4].mxu1 %v2761_v30  ;;  %v2846_v28 = vld [vmem:[%s3334_s12 + $0x174] ss:$20 sps:$4 sm:$0xff]   ;;  %v2849_v30 = vld [vmem:[%s3334_s12 + $0x170] ss:$20 sps:$4 sm:$0xff]  }
  0xb2   : > { %2432 = vmatpush3.bf16.msra.mxu1 %v2763_v31  ;;  %1175 = vmatprep.mubr.bf16.mxu0 %v2766_v32  ;;  %v2850_v31 = vld [vmem:[%s3334_s12 + $0x88] ss:$20 sps:$4 sm:$0xff]  }
  0xb3   : > { %2433 = vmatprep.subr.bf16.mxu1 %v2764_v33  ;;  %1271 = vmatprep.mubr.bf16.mxu1 %v2768_v34  ;;  %v2851_v32 = vld [vmem:[%s3334_s12 + $0x19c] ss:$20 sps:$4 sm:$0xff]   ;;  %v2854_v34 = vld [vmem:[%s3334_s12 + $0x198] ss:$20 sps:$4 sm:$0xff]  }
  0xb4   : > { %2568 = vmatpush3.bf16.msra.mxu0 %v2786_v38  ;;  %v2853_v33 = vld [vmem:[%s3334_s12 + $0xb0] ss:$20 sps:$4 sm:$0xff]   ;;  %v2859_v38 = vld [vmem:[%s3334_s12 + $0x1c0] ss:$20 sps:$4 sm:$0xff]  }
  0xb5   : > { %2569 = vmatprep.subr.bf16.mxu0 %v2800_v45 }
  0xb6   : > { %2434 = vmatpush3.bf16.msra.mxu1 %v2765_v35  ;;  %v2855_v35 = vld [vmem:[%s3334_s12 + $0xd8] ss:$20 sps:$4 sm:$0xff]  }
  0xb7   : > { %2435 = vmatprep.subr.bf16.mxu1 %v2772_v36  ;;  %v2856_v36 = vld [vmem:[%s3334_s12 + $0x1c4] ss:$20 sps:$4 sm:$0xff]  }
  0xb8   : > { %2570 = vmatpush3.bf16.msra.mxu0 %v2800_v45  ;;  %v2868_v45 = vld [vmem:[%s3334_s12 + $0x1a0] ss:$20 sps:$4 sm:$0xff]  }
  0xb9   : > { %1176 = vmatmul.mubr.bf16.gmra.mrb[8].mxu0 %v2770_v37  ;;  %1272 = vmatmul.mubr.bf16.gmra.mrb[8].mxu1 %v2771_v39  ;;  %v2858_v37 = vld [vmem:[%s3334_s12 + $0x100] ss:$20 sps:$4 sm:$0xff]   ;;  %v2860_v39 = vld [vmem:[%s3334_s12 + $0x128] ss:$20 sps:$4 sm:$0xff]  }
  0xba   : > { %2436 = vmatpush3.bf16.msra.mxu1 %v2774_v40  ;;  %1183 = vmatprep.mubr.bf16.mxu0 %v2777_v42  ;;  %v2861_v40 = vld [vmem:[%s3334_s12 + $0x1ec] ss:$20 sps:$4 sm:$0xff]   ;;  %v2864_v42 = vld [vmem:[%s3334_s12 + $0x1e8] ss:$20 sps:$4 sm:$0xff]  }
  0xbb   : > { %2437 = vmatprep.subr.bf16.mxu1 %v2775_v41  ;;  %1279 = vmatprep.mubr.bf16.mxu1 %v2779_v43  ;;  %v2863_v41 = vld [vmem:[%s3334_s12 + $0x150] ss:$20 sps:$4 sm:$0xff]   ;;  %v2865_v43 = vld [vmem:[%s3334_s12 + $0x178] ss:$20 sps:$4 sm:$0xff]  }
  0xbc   : > { %2571 = vmatprep.subr.bf16.mxu0 %v2807_v52 }
  0xbd   : > { %2572 = vmatpush3.bf16.msra.mxu0 %v2807_v52  ;;  %v2876_v52 = vld [vmem:[%s3334_s12 + $0x264] ss:$20 sps:$4 sm:$0xff]  }
  0xbe   : > { %2438 = vmatpush3.bf16.msra.mxu1 %v2776_v44  ;;  %2573 = vmatprep.subr.bf16.mxu0 %v2820_v57  ;;  %v2866_v44 = vld [vmem:[%s3334_s12 + $0x214] ss:$20 sps:$4 sm:$0xff]  }
  0xbf   : > { %2439 = vmatprep.subr.bf16.mxu1 %v2783_v48  ;;  %v2871_v48 = vld [vmem:[%s3334_s12 + $0x23c] ss:$20 sps:$4 sm:$0xff]  }
  0xc1   : > { %1184 = vmatmul.mubr.bf16.gmra.mrb[12].mxu0 %v2781_v46  ;;  %1280 = vmatmul.mubr.bf16.gmra.mrb[12].mxu1 %v2782_v47  ;;  %v2869_v46 = vld [vmem:[%s3334_s12 + $0x210] ss:$20 sps:$4 sm:$0xff]   ;;  %v2870_v47 = vld [vmem:[%s3334_s12 + $0x1c8] ss:$20 sps:$4 sm:$0xff]  }
  0xc2   : > { %2440 = vmatpush3.bf16.msra.mxu1 %v2784_v49  ;;  %1191 = vmatprep.mubr.bf16.mxu0 %v2788_v51  ;;  %v2873_v49 = vld [vmem:[%s3334_s12 + $0x1f0] ss:$20 sps:$4 sm:$0xff]   ;;  %v2875_v51 = vld [vmem:[%s3334_s12 + $0x218] ss:$20 sps:$4 sm:$0xff]  }
  0xc3   : > { %2441 = vmatprep.subr.bf16.mxu1 %v2785_v50  ;;  %1320 = vmatprep.mubr.bf16.mxu1 %v2792_v53  ;;  %v2874_v50 = vld [vmem:[%s3334_s12 + $0x238] ss:$20 sps:$4 sm:$0xff]   ;;  %v2878_v53 = vld [vmem:[%s3334_s12 + $0x240] ss:$20 sps:$4 sm:$0xff]  }
  0xc4   : > { %2574 = vmatpush3.bf16.msra.mxu0 %v2820_v57 }
  0xc5   : > { %2575 = vmatprep.subr.bf16.mxu0 %v2827_v60 }
  0xc6   : > { %2442 = vmatpush3.bf16.msra.mxu1 %v2787_v54  ;;  %v2879_v54 = vld [vmem:[%s3334_s12 + $0x260] ss:$20 sps:$4 sm:$0xff]  }
  0xc8   : > { %2576 = vmatpush3.bf16.msra.mxu0 %v2827_v60 }
  0xc9   : > { %1192 = vmatmul.mubr.bf16.gmra.mrb[16].mxu0 %v2793_v56  ;;  %1321 = vmatmul.mubr.bf16.vlgmr.msra.gmra.mrb[16].mxu1 %v2790_v55  ;;  %v2880_v55 = vld [vmem:[%s3334_s12 + $0x268] ss:$20 sps:$4 sm:$0xff]  }
  0xca   : > { %1199 = vmatprep.mubr.bf16.mxu0 %v2794_v58  ;;  %1328 = vmatprep.mubr.bf16.mxu1 %v2796_v59 }
  0xcb   : > { %2577 = vmatprep.subr.bf16.mxu0 %v2840_v1 }
  0xcc   : > { %2578 = vmatpush3.bf16.msra.mxu0 %v2840_v1 }
  0xd1   : > { %1200 = vmatmul.mubr.bf16.gmra.mrb[20].mxu0 %v2798_v61  ;;  %1329 = vmatmul.mubr.bf16.gmra.mrb[20].mxu1 %v2799_v62 }
  0xd2   : > { %1207 = vmatprep.mubr.bf16.mxu0 %v2801_v63  ;;  %1336 = vmatprep.mubr.bf16.mxu1 %v2803_v0 }
  0xd9   : > { %1208 = vmatmul.mubr.bf16.gmra.mrb[24].mxu0 %v2805_v2  ;;  %1337 = vmatmul.mubr.bf16.gmra.mrb[24].mxu1 %v2806_v3 }
  0xda   : > { %1215 = vmatprep.mubr.bf16.mxu0 %v2808_v4  ;;  %1344 = vmatprep.mubr.bf16.mxu1 %v2810_v5 }
  0xe1   : > { %1216 = vmatmul.mubr.bf16.gmra.mrb[28].mxu0 %v2812_v6  ;;  %1345 = vmatmul.mubr.bf16.gmra.mrb[28].mxu1 %v2813_v7 }
  0xe2   : > { %1223 = vmatprep.mubr.bf16.mxu0 %v2814_v8  ;;  %1352 = vmatprep.mubr.bf16.mxu1 %v2816_v9 }
  0xe9   : > { %1224 = vmatmul.mubr.bf16.gmra.mrb[32].mxu0 %v2818_v10  ;;  %1353 = vmatmul.mubr.bf16.gmra.mrb[32].mxu1 %v2819_v11 }
  0xea   : > { %1231 = vmatprep.mubr.bf16.mxu0 %v2821_v12  ;;  %1360 = vmatprep.mubr.bf16.mxu1 %v2823_v13 }
  0xf1   : > { %1232 = vmatmul.mubr.bf16.gmra.mrb[36].mxu0 %v2825_v14  ;;  %1361 = vmatmul.mubr.bf16.gmra.mrb[36].mxu1 %v2826_v15 }
  0xf2   : > { %1239 = vmatprep.mubr.bf16.mxu0 %v2828_v16  ;;  %1368 = vmatprep.mubr.bf16.mxu1 %v2830_v17 }
  0xf9   : > { %1240 = vmatmul.mubr.bf16.gmra.mrb[40].mxu0 %v2832_v18  ;;  %1369 = vmatmul.mubr.bf16.gmra.mrb[40].mxu1 %v2833_v19 }
  0xfa   : > { %1247 = vmatprep.mubr.bf16.mxu0 %v2834_v20  ;;  %1376 = vmatprep.mubr.bf16.mxu1 %v2836_v21 }
 0x101   : > { %1248 = vmatmul.mubr.bf16.gmra.mrb[44].mxu0 %v2838_v22  ;;  %1377 = vmatmul.mubr.bf16.gmra.mrb[44].mxu1 %v2839_v23 }
 0x102   : > { %1384 = vmatprep.mubr.bf16.mxu1 %v2841_v24  ;;  %2579 = vmatprep.mubr.bf16.mxu0 %v2843_v25 }
 0x109   : > { %1385 = vmatmul.mubr.bf16.gmra.mrb[48].mxu1 %v2844_v26  ;;  %2580 = vmatmul.mubr.bf16.vlgmr.msra.gmra.mrb[48].mxu0 %v2845_v27 }
 0x10a   : > { %1392 = vmatprep.mubr.bf16.mxu1 %v2846_v28  ;;  %2583 = vmatprep.mubr.bf16.mxu0 %v2848_v29 }
 0x111   : > { %1393 = vmatmul.mubr.bf16.gmra.mrb[52].mxu1 %v2849_v30  ;;  %2584 = vmatmul.mubr.bf16.gmra.mrb[52].mxu0 %v2850_v31 }
 0x112   : > { %1400 = vmatprep.mubr.bf16.mxu1 %v2851_v32  ;;  %2587 = vmatprep.mubr.bf16.mxu0 %v2853_v33 }
 0x119   : > { %1401 = vmatmul.mubr.bf16.gmra.mrb[56].mxu1 %v2854_v34  ;;  %2588 = vmatmul.mubr.bf16.gmra.mrb[56].mxu0 %v2855_v35 }
 0x11a   : > { %1408 = vmatprep.mubr.bf16.mxu1 %v2856_v36  ;;  %2591 = vmatprep.mubr.bf16.mxu0 %v2858_v37 }
 0x121   : > { %1409 = vmatmul.mubr.bf16.gmra.mrb[60].mxu1 %v2859_v38  ;;  %2592 = vmatmul.mubr.bf16.gmra.mrb[60].mxu0 %v2860_v39 }
 0x122   : > { %1416 = vmatprep.mubr.bf16.mxu1 %v2861_v40  ;;  %2595 = vmatprep.mubr.bf16.mxu0 %v2863_v41 }
 0x129   : > { %1417 = vmatmul.mubr.bf16.gmra.mrb[64].mxu1 %v2864_v42  ;;  %2596 = vmatmul.mubr.bf16.gmra.mrb[64].mxu0 %v2865_v43 }
 0x12a   : > { %1424 = vmatprep.mubr.bf16.mxu1 %v2866_v44  ;;  %2599 = vmatprep.mubr.bf16.mxu0 %v2868_v45 }
 0x131   : > { %1425 = vmatmul.mubr.bf16.gmra.mrb[68].mxu1 %v2869_v46  ;;  %2600 = vmatmul.mubr.bf16.gmra.mrb[68].mxu0 %v2870_v47 }
 0x132   : > { %1432 = vmatprep.mubr.bf16.mxu1 %v2871_v48  ;;  %2603 = vmatprep.mubr.bf16.mxu0 %v2873_v49 }
 0x139   : > { %1433 = vmatmul.mubr.bf16.gmra.mrb[72].mxu1 %v2874_v50  ;;  %2604 = vmatmul.mubr.bf16.gmra.mrb[72].mxu0 %v2875_v51 }
 0x13a   : > { %1440 = vmatprep.mubr.bf16.mxu1 %v2876_v52  ;;  %2607 = vmatprep.mubr.bf16.mxu0 %v2878_v53 }
 0x141   : > { %1441 = vmatmul.mubr.bf16.gmra.mrb[76].mxu1 %v2879_v54  ;;  %2608 = vmatmul.mubr.bf16.gmra.mrb[76].mxu0 %v2880_v55 }
 0x17c   : > { %v2403_v56 = vpop.f32.mrb[0].mxu1  ;;  %v2331_v57 = vpop.f32.mrb[0].mxu0 }
 0x17d   : > { %v2404_v58 = vpop.f32.mrb[1].mxu1  ;;  %v2332_v59 = vpop.f32.mrb[1].mxu0 }
 0x17e   : > { %v3428_v60 = vadd.f32 %v2404_v58, %v2403_v56  ;;  %v2406_v61 = vpop.f32.mrb[2].mxu1  ;;  %v2333_v62 = vadd.f32 %v2332_v59, %v2331_v57  ;;  %v2334_v63 = vpop.f32.mrb[2].mxu0 }
 0x17f   : > { %v2407_v0 = vpop.f32.mrb[3].mxu1  ;;  %v2335_v1 = vpop.f32.mrb[3].mxu0 }
 0x180   : > { %v3430_v2 = vadd.f32 %v2407_v0, %v2406_v61  ;;  %v2336_v3 = vadd.f32 %v2335_v1, %v2334_v63 }
 0x184   : > { %v2409_v4 = vpop.f32.mrb[4].mxu1  ;;  %v2337_v5 = vpop.f32.mrb[4].mxu0 }
 0x185   : > { %v2410_v6 = vpop.f32.mrb[5].mxu1  ;;  %v2338_v7 = vpop.f32.mrb[5].mxu0 }
 0x186   : > { %v3432_v8 = vadd.f32 %v2410_v6, %v2409_v4  ;;  %v2412_v9 = vpop.f32.mrb[6].mxu1  ;;  %v2339_v10 = vadd.f32 %v2338_v7, %v2337_v5  ;;  %v2340_v11 = vpop.f32.mrb[6].mxu0 }
 0x187   : > { %v2413_v12 = vpop.f32.mrb[7].mxu1  ;;  %v2341_v13 = vpop.f32.mrb[7].mxu0 }
 0x188   : > { %v3434_v14 = vadd.f32 %v2413_v12, %v2412_v9  ;;  %v2342_v15 = vadd.f32 %v2341_v13, %v2340_v11 }
 0x18c   : > { %v2415_v16 = vpop.f32.mrb[8].mxu1  ;;  %v2343_v17 = vpop.f32.mrb[8].mxu0 }
 0x18d   : > { %v2416_v18 = vpop.f32.mrb[9].mxu1  ;;  %v2344_v19 = vpop.f32.mrb[9].mxu0 }
 0x18e   : > { %v3436_v20 = vadd.f32 %v2416_v18, %v2415_v16  ;;  %v2418_v21 = vpop.f32.mrb[10].mxu1  ;;  %v2345_v22 = vadd.f32 %v2344_v19, %v2343_v17  ;;  %v2346_v23 = vpop.f32.mrb[10].mxu0 }
 0x18f   : > { %v2419_v24 = vpop.f32.mrb[11].mxu1  ;;  %v2347_v25 = vpop.f32.mrb[11].mxu0 }
 0x190   : > { %v3438_v26 = vadd.f32 %v2419_v24, %v2418_v21  ;;  %v2348_v27 = vadd.f32 %v2347_v25, %v2346_v23 }
 0x194   : > { %v2421_v28 = vpop.f32.mrb[12].mxu1  ;;  %v2349_v29 = vpop.f32.mrb[12].mxu0 }
 0x195   : > { %v2422_v30 = vpop.f32.mrb[13].mxu1  ;;  %v2350_v31 = vpop.f32.mrb[13].mxu0 }
 0x196   : > { %v3440_v32 = vadd.f32 %v2422_v30, %v2421_v28  ;;  %v2424_v33 = vpop.f32.mrb[14].mxu1  ;;  %v2351_v34 = vadd.f32 %v2350_v31, %v2349_v29  ;;  %v2352_v35 = vpop.f32.mrb[14].mxu0 }
 0x197   : > { %v2425_v36 = vpop.f32.mrb[15].mxu1  ;;  %v2353_v37 = vpop.f32.mrb[15].mxu0 }
 0x198   : > { %v3442_v38 = vadd.f32 %v2425_v36, %v2424_v33  ;;  %v2354_v39 = vadd.f32 %v2353_v37, %v2352_v35 }
 0x19c   : > { %v2443_v40 = vpop.f32.mrb[16].mxu1  ;;  %v2355_v41 = vpop.f32.mrb[16].mxu0 }
 0x19d   : > { %v2444_v42 = vpop.f32.mrb[17].mxu1  ;;  %v2356_v43 = vpop.f32.mrb[17].mxu0 }
 0x19e   : > { %v2445_v44 = vadd.f32 %v2444_v42, %v2443_v40  ;;  %v2446_v45 = vpop.f32.mrb[18].mxu1  ;;  %v2357_v46 = vadd.f32 %v2356_v43, %v2355_v41  ;;  %v2358_v47 = vpop.f32.mrb[18].mxu0 }
 0x19f   : > { %v2447_v48 = vpop.f32.mrb[19].mxu1  ;;  %v2359_v49 = vpop.f32.mrb[19].mxu0 }
 0x1a0   : > { %v2448_v50 = vadd.f32 %v2447_v48, %v2446_v45  ;;  %v2360_v51 = vadd.f32 %v2359_v49, %v2358_v47  ;;  %v3444_v52 = vadd.f32 %v2445_v44, %v2333_v62 }
 0x1a2   : > { %v3446_v53 = vadd.f32 %v2448_v50, %v2336_v3 }
 0x1a4   : > { %v2449_v54 = vpop.f32.mrb[20].mxu1  ;;  %v2361_v55 = vpop.f32.mrb[20].mxu0 }
 0x1a5   : > { %v2450_v56 = vpop.f32.mrb[21].mxu1  ;;  %v2362_v57 = vpop.f32.mrb[21].mxu0 }
 0x1a6   : > { %v2451_v58 = vadd.f32 %v2450_v56, %v2449_v54  ;;  %v2452_v59 = vpop.f32.mrb[22].mxu1  ;;  %v2363_v61 = vadd.f32 %v2362_v57, %v2361_v55  ;;  %v2364_v63 = vpop.f32.mrb[22].mxu0 }
 0x1a7   : > { %v2453_v0 = vpop.f32.mrb[23].mxu1  ;;  %v2365_v1 = vpop.f32.mrb[23].mxu0 }
 0x1a8   : > { %v2454_v4 = vadd.f32 %v2453_v0, %v2452_v59  ;;  %v2366_v5 = vadd.f32 %v2365_v1, %v2364_v63  ;;  %v3448_v6 = vadd.f32 %v2451_v58, %v2339_v10 }
 0x1aa   : > { %v3450_v7 = vadd.f32 %v2454_v4, %v2342_v15 }
 0x1ac   : > { %v2455_v62 = vpop.f32.mrb[24].mxu1  ;;  %v2367_v9 = vpop.f32.mrb[24].mxu0 }
 0x1ad   : > { %v2456_v3 = vpop.f32.mrb[25].mxu1  ;;  %v2368_v11 = vpop.f32.mrb[25].mxu0 }
 0x1ae   : > { %v2457_v12 = vadd.f32 %v2456_v3, %v2455_v62  ;;  %v2458_v13 = vpop.f32.mrb[26].mxu1  ;;  %v2369_v16 = vadd.f32 %v2368_v11, %v2367_v9  ;;  %v2370_v17 = vpop.f32.mrb[26].mxu0 }
 0x1af   : > { %v2459_v18 = vpop.f32.mrb[27].mxu1  ;;  %v2371_v19 = vpop.f32.mrb[27].mxu0 }
 0x1b0   : > { %v2460_v21 = vadd.f32 %v2459_v18, %v2458_v13  ;;  %v2372_v23 = vadd.f32 %v2371_v19, %v2370_v17  ;;  %v3452_v24 = vadd.f32 %v2457_v12, %v2345_v22 }
 0x1b2   : > { %v3454_v25 = vadd.f32 %v2460_v21, %v2348_v27 }
 0x1b4   : > { %v2461_v10 = vpop.f32.mrb[28].mxu1  ;;  %v2373_v28 = vpop.f32.mrb[28].mxu0 }
 0x1b5   : > { %v2462_v15 = vpop.f32.mrb[29].mxu1  ;;  %v2374_v29 = vpop.f32.mrb[29].mxu0 }
 0x1b6   : > { %v2463_v30 = vadd.f32 %v2462_v15, %v2461_v10  ;;  %v2464_v31 = vpop.f32.mrb[30].mxu1  ;;  %v2375_v33 = vadd.f32 %v2374_v29, %v2373_v28  ;;  %v2376_v35 = vpop.f32.mrb[30].mxu0 }
 0x1b7   : > { %v2465_v36 = vpop.f32.mrb[31].mxu1  ;;  %v2377_v37 = vpop.f32.mrb[31].mxu0 }
 0x1b8   : > { %v2466_v40 = vadd.f32 %v2465_v36, %v2464_v31  ;;  %v2378_v41 = vadd.f32 %v2377_v37, %v2376_v35  ;;  %v3456_v42 = vadd.f32 %v2463_v30, %v2351_v34 }
 0x1ba   : > { %v3458_v43 = vadd.f32 %v2466_v40, %v2354_v39 }
 0x1bc   : > { %v2467_v22 = vpop.f32.mrb[32].mxu1  ;;  %v2379_v44 = vpop.f32.mrb[32].mxu0 }
 0x1bd   : > { %v2468_v27 = vpop.f32.mrb[33].mxu1  ;;  %v2380_v45 = vpop.f32.mrb[33].mxu0 }
 0x1be   : > { %v2469_v47 = vadd.f32 %v2468_v27, %v2467_v22  ;;  %v2470_v48 = vpop.f32.mrb[34].mxu1  ;;  %v3460_v49 = vadd.f32 %v2380_v45, %v2379_v44  ;;  %v2382_v50 = vpop.f32.mrb[34].mxu0 }
 0x1bf   : > { %v2471_v54 = vpop.f32.mrb[35].mxu1  ;;  %v2383_v55 = vpop.f32.mrb[35].mxu0 }
 0x1c0   : > { %v2472_v56 = vadd.f32 %v2471_v54, %v2470_v48  ;;  %v3462_v57 = vadd.f32 %v2383_v55, %v2382_v50  ;;  %v3464_v58 = vadd.f32 %v2469_v47, %v2357_v46 }
 0x1c2   : > { %v3466_v34 = vadd.f32 %v2472_v56, %v2360_v51 }
 0x1c4   : > { %v2473_v39 = vpop.f32.mrb[36].mxu1  ;;  %v2385_v59 = vpop.f32.mrb[36].mxu0 }
 0x1c5   : > { %v2474_v63 = vpop.f32.mrb[37].mxu1  ;;  %v2386_v0 = vpop.f32.mrb[37].mxu0 }
 0x1c6   : > { %v2475_v1 = vadd.f32 %v2474_v63, %v2473_v39  ;;  %v2476_v4 = vpop.f32.mrb[38].mxu1  ;;  %v3468_v62 = vadd.f32 %v2386_v0, %v2385_v59  ;;  %v2388_v9 = vpop.f32.mrb[38].mxu0  ;;  %v3492_v63 = vld [vmem:[#allocation7] ss:$0 sm:$0xff] }
 0x1c7   : > { %v2477_v3 = vpop.f32.mrb[39].mxu1  ;;  %v2389_v11 = vpop.f32.mrb[39].mxu0 }
 0x1c8   : > { %v2478_v12 = vadd.f32 %v2477_v3, %v2476_v4  ;;  %v3470_v13 = vadd.f32 %v2389_v11, %v2388_v9  ;;  %v3472_v17 = vadd.f32 %v2475_v1, %v2363_v61  ;;  %v3495_v9 = vld [vmem:[#allocation8] ss:$0 sm:$0xff] }
 0x1ca   : > { %v3474_v46 = vadd.f32 %v2478_v12, %v2366_v5 }
 0x1cc   : > { %v2479_v51 = vpop.f32.mrb[40].mxu1  ;;  %v2391_v18 = vpop.f32.mrb[40].mxu0 }
 0x1cd   : > { %v2480_v19 = vpop.f32.mrb[41].mxu1  ;;  %v2392_v21 = vpop.f32.mrb[41].mxu0 }
 0x1ce   : > { %v2481_v10 = vadd.f32 %v2480_v19, %v2479_v51  ;;  %v2482_v28 = vpop.f32.mrb[42].mxu1  ;;  %v3476_v15 = vadd.f32 %v2392_v21, %v2391_v18  ;;  %v2394_v29 = vpop.f32.mrb[42].mxu0 }
 0x1cf   : > { %v2483_v30 = vpop.f32.mrb[43].mxu1  ;;  %v2395_v31 = vpop.f32.mrb[43].mxu0 }
 0x1d0   : > { %v2484_v35 = vadd.f32 %v2483_v30, %v2482_v28  ;;  %v3478_v36 = vadd.f32 %v2395_v31, %v2394_v29  ;;  %v3480_v37 = vadd.f32 %v2481_v10, %v2369_v16 }
 0x1d2   : > { %v3482_v61 = vadd.f32 %v2484_v35, %v2372_v23 }
 0x1d4   : > { %v2485_v5 = vpop.f32.mrb[44].mxu1  ;;  %v2397_v40 = vpop.f32.mrb[44].mxu0 }
 0x1d5   : > { %v2486_v22 = vpop.f32.mrb[45].mxu1  ;;  %v2398_v44 = vpop.f32.mrb[45].mxu0 }
 0x1d6   : > { %v2487_v27 = vadd.f32 %v2486_v22, %v2485_v5  ;;  %v2488_v45 = vpop.f32.mrb[46].mxu1  ;;  %v3484_v47 = vadd.f32 %v2398_v44, %v2397_v40  ;;  %v2400_v48 = vpop.f32.mrb[46].mxu0 }
 0x1d7   : > { %v2489_v50 = vpop.f32.mrb[47].mxu1  ;;  %v2401_v54 = vpop.f32.mrb[47].mxu0 }
 0x1d8   : > { %v2490_v55 = vadd.f32 %v2489_v50, %v2488_v45  ;;  %v3486_v56 = vadd.f32 %v2401_v54, %v2400_v48  ;;  %v3488_v39 = vadd.f32 %v2487_v27, %v2375_v33 }
 0x1da   : > { %v3490_v16 = vadd.f32 %v2490_v55, %v2378_v41 }
 0x1dc   : > { %v2491_v23 = vpop.f32.mrb[48].mxu1  ;;  %v2581_v59 = vpop.f32.mrb[48].mxu0 }
 0x1dd   : > { %v1492_v0 = vadd.f32 %v2581_v59, %v3448_v6  ;;  %v2492_v1 = vpop.f32.mrb[49].mxu1  ;;  %v1483_v4 = vpop.f32.mrb[49].mxu0 }
 0x1de   : > { %v2493_v3 = vadd.f32 %v2492_v1, %v2491_v23  ;;  %v1484_v11 = vadd.f32 %v1483_v4, %v3444_v52  ;;  %v2494_v12 = vpop.f32.mrb[50].mxu1  ;;  %v2582_v51 = vpop.f32.mrb[50].mxu0 }
 0x1df   : > { %v1619_v33 = vmul.f32 %v3492_v63, %v1492_v0  ;;  %v1495_v41 = vadd.f32 %v2582_v51, %v3450_v7  ;;  %v2495_v18 = vpop.f32.mrb[51].mxu1  ;;  %v1486_v19 = vpop.f32.mrb[51].mxu0 }
 0x1e0   : > { %v1617_v21 = vmul.f32 %v3492_v63, %v1484_v11  ;;  %v2496_v10 = vadd.f32 %v2495_v18, %v2494_v12  ;;  %v1487_v6 = vadd.f32 %v1486_v19, %v3446_v53  ;;  %v3503_v28 = vadd.f32 %v2493_v3, %v3460_v49 }
 0x1e1   : > { %v1658_v29 = vadd.f32 %v3495_v9, %v1619_v33  ;;  %v1620_v52 = vmul.f32 %v3492_v63, %v1495_v41 }
 0x1e2   : > { %v1656_v30 = vadd.f32 %v3495_v9, %v1617_v21  ;;  %v1618_v31 = vmul.f32 %v3492_v63, %v1487_v6  ;;  %v3510_v7 = vadd.f32 %v2496_v10, %v3462_v57 }
 0x1e3   : > { %v1659_v35 = vadd.f32 %v3495_v9, %v1620_v52  ;;  %v1690_v49 = vmax.f32 %v1658_v29, 0.0 }
 0x1e4   : > { %v1657_v5 = vadd.f32 %v3495_v9, %v1618_v31  ;;  %v2497_v53 = vpop.f32.mrb[52].mxu1  ;;  %v2585_v40 = vpop.f32.mrb[52].mxu0  ;;  %v1688_v48 = vmax.f32 %v1656_v30, 0.0 }
 0x1e5   : > { %v1691_v22 = vmax.f32 %v1659_v35, 0.0  ;;  %v1508_v44 = vadd.f32 %v2585_v40, %v3456_v42  ;;  %v2498_v27 = vpop.f32.mrb[53].mxu1  ;;  %v1499_v45 = vpop.f32.mrb[53].mxu0 }
 0x1e6   : > { %v1689_v50 = vmax.f32 %v1657_v5, 0.0  ;;  %v2499_v54 = vadd.f32 %v2498_v27, %v2497_v53  ;;  %v1500_v55 = vadd.f32 %v1499_v45, %v3452_v24  ;;  %v2500_v57 = vpop.f32.mrb[54].mxu1  ;;  %v2586_v23 = vpop.f32.mrb[54].mxu0 }
 0x1e7   : > { %v2228_v59 = vpack.c.bf16 %v1691_v22, %v1690_v49  ;;  %v1623_v0 = vmul.f32 %v3492_v63, %v1508_v44  ;;  %v1511_v1 = vadd.f32 %v2586_v23, %v3458_v43  ;;  %v2501_v4 = vpop.f32.mrb[55].mxu1  ;;  %v1502_v3 = vpop.f32.mrb[55].mxu0 }
 0x1e8   : > { %v2223_v11 = vpack.c.bf16 %v1689_v50, %v1688_v48  ;;  %v1621_v12 = vmul.f32 %v3492_v63, %v1500_v55  ;;  %v2502_v42 = vadd.f32 %v2501_v4, %v2500_v57  ;;  %v1503_v51 = vadd.f32 %v1502_v3, %v3454_v25 }
 0x1e9   : > { %2300 = vst [vmem:[%s3521_s25 + $0x8] sm:$0xff] %v2228_v59   ;;  %v1662_v24 = vadd.f32 %v3495_v9, %v1623_v0  ;;  %v1624_v33 = vmul.f32 %v3492_v63, %v1511_v1  ;;  %v3527_v41 = vadd.f32 %v2499_v54, %v3468_v62 }
 0x1ea   : > { %2224 = vst [vmem:[%s3521_s25] sm:$0xff] %v2223_v11   ;;  %v1660_v43 = vadd.f32 %v3495_v9, %v1621_v12  ;;  %v1622_v18 = vmul.f32 %v3492_v63, %v1503_v51  ;;  %v3533_v19 = vadd.f32 %v2502_v42, %v3470_v13 }
 0x1eb   : > { %v1663_v25 = vadd.f32 %v3495_v9, %v1624_v33  ;;  %v1694_v29 = vmax.f32 %v1662_v24, 0.0 }
 0x1ec   : > { %v1661_v21 = vadd.f32 %v3495_v9, %v1622_v18  ;;  %v2503_v10 = vpop.f32.mrb[56].mxu1  ;;  %v2589_v6 = vpop.f32.mrb[56].mxu0  ;;  %v1692_v35 = vmax.f32 %v1660_v43, 0.0 }
 0x1ed   : > { %v1695_v52 = vmax.f32 %v1663_v25, 0.0  ;;  %v1524_v30 = vadd.f32 %v2589_v6, %v3472_v17  ;;  %v2504_v62 = vpop.f32.mrb[57].mxu1  ;;  %v1515_v31 = vpop.f32.mrb[57].mxu0 }
 0x1ee   : > { %v1693_v5 = vmax.f32 %v1661_v21, 0.0  ;;  %v2505_v53 = vadd.f32 %v2504_v62, %v2503_v10  ;;  %v1516_v40 = vadd.f32 %v1515_v31, %v3464_v58  ;;  %v2506_v13 = vpop.f32.mrb[58].mxu1  ;;  %v2590_v49 = vpop.f32.mrb[58].mxu0 }
 0x1ef   : > { %v2238_v22 = vpack.c.bf16 %v1695_v52, %v1694_v29  ;;  %v1627_v44 = vmul.f32 %v3492_v63, %v1524_v30  ;;  %v1527_v27 = vadd.f32 %v2590_v49, %v3474_v46  ;;  %v2507_v45 = vpop.f32.mrb[59].mxu1  ;;  %v1518_v48 = vpop.f32.mrb[59].mxu0 }
 0x1f0   : > { %v2233_v50 = vpack.c.bf16 %v1693_v5, %v1692_v35  ;;  %v1625_v17 = vmul.f32 %v3492_v63, %v1516_v40  ;;  %v2508_v54 = vadd.f32 %v2507_v45, %v2506_v13  ;;  %v1519_v55 = vadd.f32 %v1518_v48, %v3466_v34 }
 0x1f1   : > { %2302 = vst [vmem:[%s3521_s25 + $0x18] sm:$0xff] %v2238_v22   ;;  %v1666_v57 = vadd.f32 %v3495_v9, %v1627_v44  ;;  %v1628_v58 = vmul.f32 %v3492_v63, %v1527_v27  ;;  %v3547_v23 = vadd.f32 %v2505_v53, %v3476_v15 }
 0x1f2   : > { %2301 = vst [vmem:[%s3521_s25 + $0x10] sm:$0xff] %v2233_v50   ;;  %v1664_v59 = vadd.f32 %v3495_v9, %v1625_v17  ;;  %v1626_v46 = vmul.f32 %v3492_v63, %v1519_v55  ;;  %v3553_v0 = vadd.f32 %v2508_v54, %v3478_v36 }
 0x1f3   : > { %v1667_v1 = vadd.f32 %v3495_v9, %v1628_v58  ;;  %v1698_v11 = vmax.f32 %v1666_v57, 0.0 }
 0x1f4   : > { %v1665_v34 = vadd.f32 %v3495_v9, %v1626_v46  ;;  %v2509_v4 = vpop.f32.mrb[60].mxu1  ;;  %v2593_v3 = vpop.f32.mrb[60].mxu0  ;;  %v1696_v24 = vmax.f32 %v1664_v59, 0.0 }
 0x1f5   : > { %v1699_v12 = vmax.f32 %v1667_v1, 0.0  ;;  %v1540_v42 = vadd.f32 %v2593_v3, %v3488_v39  ;;  %v2510_v15 = vpop.f32.mrb[61].mxu1  ;;  %v1531_v51 = vpop.f32.mrb[61].mxu0 }
 0x1f6   : > { %v1697_v33 = vmax.f32 %v1665_v34, 0.0  ;;  %v2511_v43 = vadd.f32 %v2510_v15, %v2509_v4  ;;  %v1532_v18 = vadd.f32 %v1531_v51, %v3480_v37  ;;  %v2512_v36 = vpop.f32.mrb[62].mxu1  ;;  %v2594_v25 = vpop.f32.mrb[62].mxu0 }
 0x1f7   : > { %v2248_v21 = vpack.c.bf16 %v1699_v12, %v1698_v11  ;;  %v1631_v10 = vmul.f32 %v3492_v63, %v1540_v42  ;;  %v1543_v6 = vadd.f32 %v2594_v25, %v3490_v16  ;;  %v2513_v29 = vpop.f32.mrb[63].mxu1  ;;  %v1534_v52 = vpop.f32.mrb[63].mxu0 }
 0x1f8   : > { %v2243_v30 = vpack.c.bf16 %v1697_v33, %v1696_v24  ;;  %v1629_v39 = vmul.f32 %v3492_v63, %v1532_v18  ;;  %v2514_v62 = vadd.f32 %v2513_v29, %v2512_v36  ;;  %v1535_v31 = vadd.f32 %v1534_v52, %v3482_v61 }
 0x1f9   : > { %2304 = vst [vmem:[%s3521_s25 + $0x28] sm:$0xff] %v2248_v21   ;;  %v1670_v35 = vadd.f32 %v3495_v9, %v1631_v10  ;;  %v1632_v37 = vmul.f32 %v3492_v63, %v1543_v6  ;;  %v1411_v5 = vadd.f32 %v2511_v43, %v3484_v47 }
 0x1fa   : > { %2303 = vst [vmem:[%s3521_s25 + $0x20] sm:$0xff] %v2243_v30   ;;  %v1668_v53 = vadd.f32 %v3495_v9, %v1629_v39  ;;  %v1630_v16 = vmul.f32 %v3492_v63, %v1535_v31  ;;  %v1414_v40 = vadd.f32 %v2514_v62, %v3486_v56 }
 0x1fb   : > { %v1671_v13 = vadd.f32 %v3495_v9, %v1632_v37  ;;  %v1702_v44 = vmax.f32 %v1670_v35, 0.0 }
 0x1fc   : > { %v1669_v49 = vadd.f32 %v3495_v9, %v1630_v16  ;;  %v2515_v22 = vpop.f32.mrb[64].mxu1  ;;  %v2597_v61 = vpop.f32.mrb[64].mxu0  ;;  %v1700_v47 = vmax.f32 %v1668_v53, 0.0 }
 0x1fd   : > { %v1703_v27 = vmax.f32 %v1671_v13, 0.0  ;;  %v1556_v45 = vadd.f32 %v2597_v61, %v3527_v41  ;;  %v2516_v48 = vpop.f32.mrb[65].mxu1  ;;  %v1547_v50 = vpop.f32.mrb[65].mxu0 }
 0x1fe   : > { %v1701_v17 = vmax.f32 %v1669_v49, 0.0  ;;  %v2517_v54 = vadd.f32 %v2516_v48, %v2515_v22  ;;  %v1548_v55 = vadd.f32 %v1547_v50, %v3503_v28  ;;  %v2518_v56 = vpop.f32.mrb[66].mxu1  ;;  %v2598_v57 = vpop.f32.mrb[66].mxu0 }
 0x1ff   : > { %v2258_v58 = vpack.c.bf16 %v1703_v27, %v1702_v44  ;;  %v1635_v59 = vmul.f32 %v3492_v63, %v1556_v45  ;;  %v1559_v46 = vadd.f32 %v2598_v57, %v3533_v19  ;;  %v2519_v1 = vpop.f32.mrb[67].mxu1  ;;  %v1550_v34 = vpop.f32.mrb[67].mxu0 }
 0x200   : > { %v2253_v4 = vpack.c.bf16 %v1701_v17, %v1700_v47  ;;  %v1633_v41 = vmul.f32 %v3492_v63, %v1548_v55  ;;  %v2520_v3 = vadd.f32 %v2519_v1, %v2518_v56  ;;  %v1551_v11 = vadd.f32 %v1550_v34, %v3510_v7 }
 0x201   : > { %2306 = vst [vmem:[%s3521_s25 + $0x38] sm:$0xff] %v2258_v58   ;;  %v1674_v12 = vadd.f32 %v3495_v9, %v1635_v59  ;;  %v1636_v28 = vmul.f32 %v3492_v63, %v1559_v46  ;;  %v1419_v42 = vadd.f32 %v2517_v54, %v3428_v60 }
 0x202   : > { %2305 = vst [vmem:[%s3521_s25 + $0x30] sm:$0xff] %v2253_v4   ;;  %v1672_v15 = vadd.f32 %v3495_v9, %v1633_v41  ;;  %v1634_v19 = vmul.f32 %v3492_v63, %v1551_v11  ;;  %v1422_v51 = vadd.f32 %v2520_v3, %v3430_v2 }
 0x203   : > { %v1675_v24 = vadd.f32 %v3495_v9, %v1636_v28  ;;  %v1706_v18 = vmax.f32 %v1674_v12, 0.0 }
 0x204   : > { %v1673_v33 = vadd.f32 %v3495_v9, %v1634_v19  ;;  %v2521_v43 = vpop.f32.mrb[68].mxu1  ;;  %v2601_v7 = vpop.f32.mrb[68].mxu0  ;;  %v1704_v60 = vmax.f32 %v1672_v15, 0.0 }
 0x205   : > { %v1707_v36 = vmax.f32 %v1675_v24, 0.0  ;;  %v1572_v25 = vadd.f32 %v2601_v7, %v1411_v5  ;;  %v2522_v21 = vpop.f32.mrb[69].mxu1  ;;  %v1563_v10 = vpop.f32.mrb[69].mxu0 }
 0x206   : > { %v1705_v6 = vmax.f32 %v1673_v33, 0.0  ;;  %v2523_v29 = vadd.f32 %v2522_v21, %v2521_v43  ;;  %v1564_v52 = vadd.f32 %v1563_v10, %v3547_v23  ;;  %v2524_v30 = vpop.f32.mrb[70].mxu1  ;;  %v2602_v2 = vpop.f32.mrb[70].mxu0 }
 0x207   : > { %v2268_v39 = vpack.c.bf16 %v1707_v36, %v1706_v18  ;;  %v1639_v62 = vmul.f32 %v3492_v63, %v1572_v25  ;;  %v1575_v31 = vadd.f32 %v2602_v2, %v1414_v40  ;;  %v2525_v35 = vpop.f32.mrb[71].mxu1  ;;  %v1566_v37 = vpop.f32.mrb[71].mxu0 }
 0x208   : > { %v2263_v53 = vpack.c.bf16 %v1705_v6, %v1704_v60  ;;  %v1637_v5 = vmul.f32 %v3492_v63, %v1564_v52  ;;  %v2526_v16 = vadd.f32 %v2525_v35, %v2524_v30  ;;  %v1567_v13 = vadd.f32 %v1566_v37, %v3553_v0 }
 0x209   : > { %2308 = vst [vmem:[%s3521_s25 + $0x48] sm:$0xff] %v2268_v39   ;;  %v1678_v49 = vadd.f32 %v3495_v9, %v1639_v62  ;;  %v1640_v23 = vmul.f32 %v3492_v63, %v1575_v31  ;;  %v1427_v22 = vadd.f32 %v2523_v29, %v3432_v8 }
 0x20a   : > { %2307 = vst [vmem:[%s3521_s25 + $0x40] sm:$0xff] %v2263_v53   ;;  %v1676_v61 = vadd.f32 %v3495_v9, %v1637_v5  ;;  %v1638_v40 = vmul.f32 %v3492_v63, %v1567_v13  ;;  %v1430_v44 = vadd.f32 %v2526_v16, %v3434_v14 }
 0x20b   : > { %v1679_v27 = vadd.f32 %v3495_v9, %v1640_v23  ;;  %v1710_v50 = vmax.f32 %v1678_v49, 0.0 }
 0x20c   : > { %v1677_v45 = vadd.f32 %v3495_v9, %v1638_v40  ;;  %v2527_v48 = vpop.f32.mrb[72].mxu1  ;;  %v2605_v0 = vpop.f32.mrb[72].mxu0  ;;  %v1708_v8 = vmax.f32 %v1676_v61, 0.0 }
 0x20d   : > { %v1711_v47 = vmax.f32 %v1679_v27, 0.0  ;;  %v1588_v17 = vadd.f32 %v2605_v0, %v1427_v22  ;;  %v2528_v54 = vpop.f32.mrb[73].mxu1  ;;  %v1579_v55 = vpop.f32.mrb[73].mxu0 }
 0x20e   : > { %v1709_v56 = vmax.f32 %v1677_v45, 0.0  ;;  %v2529_v57 = vadd.f32 %v2528_v54, %v2527_v48  ;;  %v1580_v58 = vadd.f32 %v1579_v55, %v1419_v42  ;;  %v2530_v59 = vpop.f32.mrb[74].mxu1  ;;  %v2606_v46 = vpop.f32.mrb[74].mxu0 }
 0x20f   : > { %v2278_v14 = vpack.c.bf16 %v1711_v47, %v1710_v50  ;;  %v1643_v1 = vmul.f32 %v3492_v63, %v1588_v17  ;;  %v1591_v34 = vadd.f32 %v2606_v46, %v1430_v44  ;;  %v2531_v4 = vpop.f32.mrb[75].mxu1  ;;  %v1582_v41 = vpop.f32.mrb[75].mxu0 }
 0x210   : > { %v2273_v3 = vpack.c.bf16 %v1709_v56, %v1708_v8  ;;  %v1641_v11 = vmul.f32 %v3492_v63, %v1580_v58  ;;  %v2532_v12 = vadd.f32 %v2531_v4, %v2530_v59  ;;  %v1583_v28 = vadd.f32 %v1582_v41, %v1422_v51 }
 0x211   : > { %2310 = vst [vmem:[%s3521_s25 + $0x58] sm:$0xff] %v2278_v14   ;;  %v1682_v15 = vadd.f32 %v3495_v9, %v1643_v1  ;;  %v1644_v19 = vmul.f32 %v3492_v63, %v1591_v34  ;;  %v1435_v42 = vadd.f32 %v2529_v57, %v3436_v20 }
 0x212   : > { %2309 = vst [vmem:[%s3521_s25 + $0x50] sm:$0xff] %v2273_v3   ;;  %v1680_v24 = vadd.f32 %v3495_v9, %v1641_v11  ;;  %v1642_v33 = vmul.f32 %v3492_v63, %v1583_v28  ;;  %v1438_v43 = vadd.f32 %v2532_v12, %v3438_v26 }
 0x213   : > { %v1683_v7 = vadd.f32 %v3495_v9, %v1644_v19  ;;  %v1714_v25 = vmax.f32 %v1682_v15, 0.0 }
 0x214   : > { %v1681_v18 = vadd.f32 %v3495_v9, %v1642_v33  ;;  %v2533_v36 = vpop.f32.mrb[76].mxu1  ;;  %v2609_v51 = vpop.f32.mrb[76].mxu0  ;;  %v1712_v20 = vmax.f32 %v1680_v24, 0.0 }
 0x215   : > { %v1715_v21 = vmax.f32 %v1683_v7, 0.0  ;;  %v2534_v10 = vpop.f32.mrb[77].mxu1  ;;  %v1595_v60 = vpop.f32.mrb[77].mxu0 }
 0x216   : > { %v1713_v6 = vmax.f32 %v1681_v18, 0.0  ;;  %v2535_v29 = vadd.f32 %v2534_v10, %v2533_v36  ;;  %v1596_v52 = vadd.f32 %v1595_v60, %v1435_v42  ;;  %v2536_v30 = vpop.f32.mrb[78].mxu1  ;;  %v2610_v2 = vpop.f32.mrb[78].mxu0 }
 0x217   : > { %v2288_v39 = vpack.c.bf16 %v1715_v21, %v1714_v25  ;;  %v2537_v26 = vpop.f32.mrb[79].mxu1  ;;  %v1598_v62 = vpop.f32.mrb[79].mxu0 }
 0x218   : > { %v2283_v31 = vpack.c.bf16 %v1713_v6, %v1712_v20  ;;  %v1443_v35 = vadd.f32 %v2535_v29, %v3440_v32  ;;  %v1645_v37 = vmul.f32 %v3492_v63, %v1596_v52  ;;  %v2538_v53 = vadd.f32 %v2537_v26, %v2536_v30 }
 0x219   : > { %2312 = vst [vmem:[%s3521_s25 + $0x68] sm:$0xff] %v2288_v39   ;;  %v1599_v5 = vadd.f32 %v1598_v62, %v1438_v43 }
 0x21a   : > { %2311 = vst [vmem:[%s3521_s25 + $0x60] sm:$0xff] %v2283_v31   ;;  %v1604_v16 = vadd.f32 %v2609_v51, %v1443_v35  ;;  %v1446_v13 = vadd.f32 %v2538_v53, %v3442_v38  ;;  %v1684_v49 = vadd.f32 %v3495_v9, %v1645_v37 }
 0x21b   : > { %v1646_v23 = vmul.f32 %v3492_v63, %v1599_v5 }
 0x21c   : > { %v1647_v22 = vmul.f32 %v3492_v63, %v1604_v16  ;;  %v1607_v61 = vadd.f32 %v2610_v2, %v1446_v13  ;;  %v1716_v27 = vmax.f32 %v1684_v49, 0.0 }
 0x21d   : > { %v1685_v32 = vadd.f32 %v3495_v9, %v1646_v23 }
 0x21e   : > { %v1686_v40 = vadd.f32 %v3495_v9, %v1647_v22  ;;  %v1648_v44 = vmul.f32 %v3492_v63, %v1607_v61 }
 0x21f   : > { %v1717_v45 = vmax.f32 %v1685_v32, 0.0 }
 0x220   : > { %v1687_v38 = vadd.f32 %v3495_v9, %v1648_v44  ;;  %v1718_v0 = vmax.f32 %v1686_v40, 0.0 }
 0x221   : > { %v2293_v48 = vpack.c.bf16 %v1717_v45, %v1716_v27 }
 0x222   : > { %v1719_v50 = vmax.f32 %v1687_v38, 0.0 }
 0x223   : > { %2313 = vst [vmem:[%s3521_s25 + $0x70] sm:$0xff] %v2293_v48  }
 0x224   : > { %v2298_v63 = vpack.c.bf16 %v1719_v50, %v1718_v0 }
 0x226   : > { %2314 = vst [vmem:[%s3521_s25 + $0x78] sm:$0xff] %v2298_v63  }
 0x227   : > { %3008 = shalt.err (!%p3005_p13)
}
 0x228   : > { %s3009_s29 = scalar_lea.hbm %s3633_s6, 2048  ;;  %s3013_s10 = scalar_lea.hbm %s3688_s4, 6144 }
 0x229   : > { %p3010_p4 = scmp.ne.s32.totalorder %s3633_s6, %s3009_s29  ;;  %p3014_p11 = scmp.lt.u32.totalorder %s3633_s6, %s3688_s4 }
 0x22a   : > { %p3015_p1 = scmp.lt.u32.totalorder %s3013_s10, %s3009_s29  ;;  %p3017_p12 = scmp.lt.u32.totalorder %s3009_s29, %s3633_s6 }
 0x22b   : > { %p3011_p2 = pnand %p3010_p4, %p3274_p0 }
 0x22c   : > { %p3016_p10 = por %p3015_p1, %p3014_p11 }
 0x22d   : > { %p3012_p8 = pneg %p3011_p2 }
 0x22e   : > { %p3018_p6 = por %p3017_p12, %p3016_p10 }
 0x230   : > { %p3019_p3 = pnand %p3018_p6, %p3012_p8 }
 0x232   : > { %3022 = shalt.err (!%p3019_p3)
}
 0x233   : > { %s3096_s25 = smov 64   ;;  %s3097_s27 = smov 4  }
 0x234   : > { %2644 = dma.vmem_to_hbm [thread:$0]  (%p3274_p0), %s3635_s11, 2048, %s3633_s6, %s1881_s7, %s3096_s25, %s3096_s25, %s3097_s27  }
 0x235 PF: > { %s3708_s21 = sld [smem:[#allocation15_spill]]  ;;  %p2671_p5 = scmp.ge.s32.totalorder %s3085_s20, 2 }
 0x236   : > { %s1910_s28 = sand.u32 1, %s3065_s15  }
 0x237   : > { %s1911_s8 = scalar_lea.sflag [#allocation4], %s1910_s28 }
 0x23b   : > { %p3709_p7 = scmp.ne.s32.totalorder %s3708_s21, 0 }
 0x23d   : > { %p2661_p9 = pnand %p2671_p5, %p3709_p7 }
 0x23f   : > { %3060 = dma.done.wait (!%p2661_p9), %s1911_s8, 2048  }
 0x240   : > { %3062 = vsyncadd (!%p2661_p9), %s1911_s8, 4294965248  ;;  %s22_s20 = sadd.s32 1, %s3085_s20   ;;  %s3710_s15 = smov %s3069_s16 }
 0x241   : > { %p19_p13 = scmp.ge.s32.totalorder %s22_s20, 5   ;;  %s3711_s16 = smov %s3073_s17 }
 0x242   : > { %s3712_s17 = smov %s3290_s24  ;;  %s3713_s18 = smov %s3081_s19 }
 0x243   : > { %s3714_s19 = smov %s3716_s26  ;;  %21 = sbr.rel (!%p19_p13) target bundleno = 8 (0x8), region = 96 }
 0x24a   :  { %1916 = vsyncpa [#allocation3], 1 }
 0x24b   :  { %1918 = vsyncpa [#allocation3 + $0x1], 1 }
 0x24c   :  { %1919 = vsyncpa [#allocation6], 1 }
 0x24d   :  { %1920 = vsyncpa [#allocation9], 1 }
 0x24e   :  { %1921 = vsyncpa [#allocation4], 1 }
 0x24f   :  { %1923 = vsyncpa [#allocation4 + $0x1], 1 }

// kernel: _lambda_.8
= control target key start
LH: loop header
LB: loop body
LE: loop exit
PB: predicated region body
PF: predicated region fallthrough
CT: control target
= control target key end

     0   :  { %9 = vsyncpa [#allocation3], 0  ;;  %s2169_s0 = inlined_call_operand.hbm [shape: bf16[128,896], index: 0, kind: input, shape index: {}]   ;;  %s2170_s1 = inlined_call_operand.hbm [shape: bf16[896,128], index: 1, kind: input, shape index: {}]   ;;  %s2171_s2 = inlined_call_operand.hbm [shape: f32[1,128], index: 2, kind: input, shape index: {}]   ;;  %s2172_s3 = inlined_call_operand.hbm [shape: f32[1,128], index: 3, kind: input, shape index: {}]   ;;  %s2173_s4 = inlined_call_operand.hbm [shape: f32[128,128], index: 4, kind: output, shape index: {}]  }
   0x1   :  { %10 = vsyncpa [#allocation6], 0 }
   0x2   :  { %11 = vsyncpa [#allocation9], 0 }
   0x3   :  { %12 = vsyncpa [#allocation4], 0  ;;  %s1974_s15 = smov [#allocation5]   ;;  %s1856_s19 = scalar_lea.hbm %s2170_s1, 7168 }
   0x4   :  { %s30_s16 = sshll.u32 %s1974_s15, 4  ;;  %p1857_p0 = scmp.ne.s32.totalorder %s2170_s1, %s1856_s19  ;;  %s31_s16 = int_to_ptr.vmem [resolvable:$true] %s30_s16 }
   0x5   :  { %p1860_p1 = scmp.lt.u32.totalorder %s1856_s19, %s2170_s1 }
   0x7   :  { %p1862_p2 = pnand %p1860_p1, %p1857_p0 }
   0x9   :  { %1865 = shalt.err (!%p1862_p2)
}
   0xa   :  { %s1866_s24 = scalar_lea.vmem %s31_s16, 7168  ;;  %p1871_p4 = scmp.lt.s32.totalorder %s31_s16, %s31_s16 }
   0xb   :  { %p1867_p3 = scmp.ne.s32.totalorder %s31_s16, %s1866_s24  ;;  %p1872_p5 = scmp.lt.s32.totalorder %s1866_s24, %s1866_s24 }
   0xd   :  { %p1873_p6 = por %p1872_p5, %p1871_p4 }
   0xf   :  { %p1874_p7 = pnand %p1873_p6, %p1867_p3 }
  0x11   :  { %1877 = shalt.err (!%p1874_p7)
}
  0x12   :  { %s1975_s25 = smov 64   ;;  %s1976_s26 = smov 4  }
  0x13   :  { %36 = dma.hbm_to_vmem [thread:$0]  %s2170_s1, 7168, %s31_s16, [#allocation6], %s1975_s25, %s1975_s25, %s1976_s26  }
  0x14   :  { %s1977_s29 = smov [#allocation2]   ;;  %s1878_s7 = scalar_lea.hbm %s2169_s0, 7168 }
  0x15   :  { %s18_s30 = sshll.u32 %s1977_s29, 4  ;;  %p1879_p8 = scmp.ne.s32.totalorder %s2169_s0, %s1878_s7  ;;  %s19_s30 = int_to_ptr.vmem [resolvable:$true] %s18_s30 }
  0x16   :  { %p1882_p9 = scmp.lt.u32.totalorder %s1878_s7, %s2169_s0 }
  0x18   :  { %p1884_p10 = pnand %p1882_p9, %p1879_p8 }
  0x1a   :  { %1887 = shalt.err (!%p1884_p10)
}
  0x1b   :  { %s1888_s12 = scalar_lea.vmem %s19_s30, 7168  ;;  %p1893_p12 = scmp.lt.s32.totalorder %s19_s30, %s19_s30 }
  0x1c   :  { %p1889_p11 = scmp.ne.s32.totalorder %s19_s30, %s1888_s12  ;;  %p1894_p13 = scmp.lt.s32.totalorder %s1888_s12, %s1888_s12 }
  0x1e   :  { %p1895_p0 = por %p1894_p13, %p1893_p12 }
  0x20   :  { %p1896_p1 = pnand %p1895_p0, %p1889_p11 }
  0x22   :  { %1899 = shalt.err (!%p1896_p1)
}
  0x23   :  { %s1978_s1 = smov 448   ;;  %s1979_s13 = smov 28  }
  0x24   :  { %24 = dma.hbm_to_vmem [thread:$0]  %s2169_s0, 7168, %s19_s30, [#allocation3], %s1978_s1, %s1978_s1, %s1979_s13  }
  0x25   :  { %s1980_s16 = smov [#allocation7]   ;;  %s1981_s18 = smov [#allocation8]  }
  0x26   :  { %s43_s17 = sshll.u32 %s1980_s16, 4  ;;  %s53_s19 = sshll.u32 %s1981_s18, 4  ;;  %s44_s17 = int_to_ptr.vmem [resolvable:$true] %s43_s17  ;;  %s54_s19 = int_to_ptr.vmem [resolvable:$true] %s53_s19 }
  0x27   :  { %s1900_s22 = scalar_lea.hbm %s2171_s2, 16 }
  0x28   :  { %p1901_p2 = scmp.ne.s32.totalorder %s2171_s2, %s1900_s22  ;;  %p1904_p3 = scmp.lt.u32.totalorder %s1900_s22, %s2171_s2 }
  0x2a   :  { %p1906_p4 = pnand %p1904_p3, %p1901_p2 }
  0x2c   :  { %1909 = shalt.err (!%p1906_p4)
}
  0x2d   :  { %s1910_s0 = scalar_lea.vmem %s44_s17, 16  ;;  %s1914_s27 = scalar_lea.vmem %s44_s17, 32 }
  0x2e   :  { %p1911_p5 = scmp.ne.s32.totalorder %s44_s17, %s1910_s0  ;;  %p1915_p6 = scmp.lt.s32.totalorder %s44_s17, %s44_s17 }
  0x2f   :  { %p1916_p7 = scmp.lt.s32.totalorder %s1914_s27, %s1910_s0 }
  0x31   :  { %p1917_p8 = por %p1916_p7, %p1915_p6 }
  0x33   :  { %p1918_p9 = pnand %p1917_p8, %p1911_p5 }
  0x35   :  { %1921 = shalt.err (!%p1918_p9)
}
  0x36   :  { %46 = dma.hbm_to_vmem [thread:$0]  %s2171_s2, 16, %s44_s17, [#allocation6]  }
  0x37   :  { %s1922_s6 = scalar_lea.hbm %s2172_s3, 16 }
  0x38   :  { %p1923_p10 = scmp.ne.s32.totalorder %s2172_s3, %s1922_s6  ;;  %p1926_p11 = scmp.lt.u32.totalorder %s1922_s6, %s2172_s3 }
  0x3a   :  { %p1928_p12 = pnand %p1926_p11, %p1923_p10 }
  0x3c   :  { %1931 = shalt.err (!%p1928_p12)
}
  0x3d   :  { %s1932_s11 = scalar_lea.vmem %s54_s19, 16  ;;  %s1936_s12 = scalar_lea.vmem %s54_s19, 32 }
  0x3e   :  { %p1933_p13 = scmp.ne.s32.totalorder %s54_s19, %s1932_s11  ;;  %p1937_p0 = scmp.lt.s32.totalorder %s54_s19, %s54_s19 }
  0x3f   :  { %p1938_p1 = scmp.lt.s32.totalorder %s1936_s12, %s1932_s11 }
  0x41   :  { %p1939_p2 = por %p1938_p1, %p1937_p0 }
  0x43   :  { %p1940_p3 = pnand %p1939_p2, %p1933_p13 }
  0x45   :  { %1943 = shalt.err (!%p1940_p3)
}
  0x46   :  { %56 = dma.hbm_to_vmem [thread:$0]  %s2172_s3, 16, %s54_s19, [#allocation9]  }
  0x47   :  { %1966 = dma.done.wait [#allocation3], 7168  }
  0x48   :  { %1967 = vsyncadd [#allocation3], 4294960128 }
  0x49   :  { %1968 = dma.done.wait [#allocation6], 7184  }
  0x4a   :  { %1969 = vsyncadd [#allocation6], 4294960112 }
  0x4b   :  { %1970 = dma.done.wait [#allocation9], 16  }
  0x4c   :  { %1971 = vsyncadd [#allocation9], 4294967280  ;;  %v1720_v0 = vld [vmem:[#allocation5 + $0x40] sm:$0xff]   ;;  %v1724_v4 = vld [vmem:[#allocation5 + $0x48] sm:$0xff]   ;;  %s1982_s3 = smov [#allocation10]  }
  0x4d   :  { %v1721_v1 = vld [vmem:[#allocation5 + $0xc0] sm:$0xff]   ;;  %1469 = vmatprep.subr.bf16.mxu0 %v1720_v0  ;;  %v1725_v5 = vld [vmem:[#allocation5 + $0xc8] sm:$0xff]   ;;  %v1728_v8 = vld [vmem:[#allocation5 + $0x50] sm:$0xff]   ;;  %s1341_s13 = sshll.u32 %s1982_s3, 4  ;;  %s1342_s13 = int_to_ptr.vmem [resolvable:$true] %s1341_s13 }
  0x4e   :  { %v1722_v2 = vld [vmem:[#allocation5] sm:$0xff]   ;;  %1533 = vmatprep.subr.bf16.mxu1 %v1721_v1  ;;  %v1726_v6 = vld [vmem:[#allocation5 + $0x8] sm:$0xff]   ;;  %v1729_v9 = vld [vmem:[#allocation5 + $0xd0] sm:$0xff]   ;;  %s1944_s14 = scalar_lea.vmem %s1342_s13, 2048  ;;  %p1949_p5 = scmp.lt.s32.totalorder %s1342_s13, %s1342_s13 }
  0x4f   :  { %v1723_v3 = vld [vmem:[#allocation5 + $0x80] sm:$0xff]   ;;  %1470 = vmatpush3.bf16.msra.mxu0 %v1722_v2  ;;  %v1727_v7 = vld [vmem:[#allocation5 + $0x88] sm:$0xff]   ;;  %v1730_v10 = vld [vmem:[#allocation5 + $0x10] sm:$0xff]   ;;  %p1945_p4 = scmp.ne.s32.totalorder %s1342_s13, %s1944_s14  ;;  %p1950_p6 = scmp.lt.s32.totalorder %s1944_s14, %s1944_s14 }
  0x50   :  { %1534 = vmatpush3.bf16.msra.mxu1 %v1723_v3  ;;  %1471 = vmatprep.subr.bf16.mxu0 %v1724_v4  ;;  %v1731_v11 = vld [vmem:[#allocation5 + $0x90] sm:$0xff]   ;;  %v1732_v12 = vld [vmem:[#allocation5 + $0x58] sm:$0xff]   ;;  %v1736_v16 = vld [vmem:[#allocation5 + $0x60] sm:$0xff]  }
  0x51   :  { %1535 = vmatprep.subr.bf16.mxu1 %v1725_v5  ;;  %v1733_v13 = vld [vmem:[#allocation5 + $0xd8] sm:$0xff]   ;;  %v1737_v17 = vld [vmem:[#allocation5 + $0xe0] sm:$0xff]   ;;  %v1740_v20 = vld [vmem:[#allocation5 + $0x68] sm:$0xff]   ;;  %p1951_p7 = por %p1950_p6, %p1949_p5 }
  0x52   :  { %v1734_v14 = vld [vmem:[#allocation5 + $0x18] sm:$0xff]   ;;  %v1738_v18 = vld [vmem:[#allocation5 + $0x20] sm:$0xff]   ;;  %v1741_v21 = vld [vmem:[#allocation5 + $0xe8] sm:$0xff]  }
  0x53   :  { %1472 = vmatpush3.bf16.msra.mxu0 %v1726_v6  ;;  %v1735_v15 = vld [vmem:[#allocation5 + $0x98] sm:$0xff]   ;;  %v1739_v19 = vld [vmem:[#allocation5 + $0xa0] sm:$0xff]   ;;  %v1742_v22 = vld [vmem:[#allocation5 + $0x28] sm:$0xff]   ;;  %p1952_p8 = pnand %p1951_p7, %p1945_p4 }
  0x54   :  { %1536 = vmatpush3.bf16.msra.mxu1 %v1727_v7  ;;  %1473 = vmatprep.subr.bf16.mxu0 %v1728_v8  ;;  %v1743_v23 = vld [vmem:[#allocation5 + $0xa8] sm:$0xff]   ;;  %v1744_v24 = vld [vmem:[#allocation5 + $0x70] sm:$0xff]   ;;  %v1748_v28 = vld [vmem:[#allocation5 + $0x78] sm:$0xff]  }
  0x55   :  { %1537 = vmatprep.subr.bf16.mxu1 %v1729_v9  ;;  %v1745_v25 = vld [vmem:[#allocation5 + $0xf0] sm:$0xff]   ;;  %v1749_v29 = vld [vmem:[#allocation5 + $0xf8] sm:$0xff]   ;;  %v1754_v33 = vld [vmem:[#allocation2 + $0x4] ss:$28 sps:$4 sm:$0xff]  }
  0x56   :  { %v1746_v26 = vld [vmem:[#allocation5 + $0x30] sm:$0xff]   ;;  %v1750_v30 = vld [vmem:[#allocation5 + $0x38] sm:$0xff]   ;;  %v1755_v34 = vld [vmem:[#allocation2 + $0x8] ss:$28 sps:$4 sm:$0xff]   ;;  %902 = vmatprep.mubr.bf16.mxu0 %v1754_v33 }
  0x57   :  { %1474 = vmatpush3.bf16.msra.mxu0 %v1730_v10  ;;  %v1747_v27 = vld [vmem:[#allocation5 + $0xb0] sm:$0xff]   ;;  %v1751_v31 = vld [vmem:[#allocation5 + $0xb8] sm:$0xff]   ;;  %v1757_v35 = vld [vmem:[#allocation2 + $0xc] ss:$28 sps:$4 sm:$0xff]  }
  0x58   :  { %1538 = vmatpush3.bf16.msra.mxu1 %v1731_v11  ;;  %1475 = vmatprep.subr.bf16.mxu0 %v1732_v12  ;;  %v1752_v32 = vld [vmem:[#allocation2] ss:$28 sps:$4 sm:$0xff]   ;;  %v1764_v40 = vld [vmem:[#allocation2 + $0x38] ss:$28 sps:$4 sm:$0xff]   ;;  %v1766_v42 = vld [vmem:[#allocation5 + $0x148] sm:$0xff]  }
  0x59   :  { %1539 = vmatprep.subr.bf16.mxu1 %v1733_v13  ;;  %v1758_v36 = vld [vmem:[#allocation5 + $0x140] sm:$0xff]   ;;  %999 = vmatprep.mubr.bf16.mxu1 %v1757_v35  ;;  %v1760_v38 = vld [vmem:[#allocation2 + $0x3c] ss:$28 sps:$4 sm:$0xff]   ;;  %v1767_v43 = vld [vmem:[#allocation5 + $0x108] sm:$0xff]  }
  0x5a   :  { %v1759_v37 = vld [vmem:[#allocation5 + $0x100] sm:$0xff]   ;;  %v1768_v44 = vld [vmem:[#allocation2 + $0x74] ss:$28 sps:$4 sm:$0xff]   ;;  %v1770_v45 = vld [vmem:[#allocation2 + $0x7c] ss:$28 sps:$4 sm:$0xff]  }
  0x5b   :  { %1476 = vmatpush3.bf16.msra.mxu0 %v1734_v14  ;;  %v1762_v39 = vld [vmem:[#allocation2 + $0x44] ss:$28 sps:$4 sm:$0xff]   ;;  %v1774_v46 = vld [vmem:[#allocation5 + $0x150] sm:$0xff]   ;;  %v1776_v50 = vld [vmem:[#allocation2 + $0xac] ss:$28 sps:$4 sm:$0xff]  }
  0x5c   :  { %1540 = vmatpush3.bf16.msra.mxu1 %v1735_v15  ;;  %1477 = vmatprep.subr.bf16.mxu0 %v1736_v16  ;;  %v1765_v41 = vld [vmem:[#allocation2 + $0x40] ss:$28 sps:$4 sm:$0xff]   ;;  %v1775_v47 = vld [vmem:[#allocation5 + $0x110] sm:$0xff]   ;;  %v1780_v54 = vld [vmem:[#allocation2 + $0xa8] ss:$28 sps:$4 sm:$0xff]  }
  0x5d   :  { %1541 = vmatprep.subr.bf16.mxu1 %v1737_v17  ;;  %v1772_v48 = vld [vmem:[#allocation2 + $0x70] ss:$28 sps:$4 sm:$0xff]   ;;  %v1773_v49 = vld [vmem:[#allocation2 + $0x78] ss:$28 sps:$4 sm:$0xff]   ;;  %v1790_v55 = vld [vmem:[#allocation5 + $0x160] sm:$0xff]  }
  0x5e   :  { %v1778_v51 = vld [vmem:[#allocation2 + $0xb4] ss:$28 sps:$4 sm:$0xff]   ;;  %v1782_v52 = vld [vmem:[#allocation5 + $0x158] sm:$0xff]   ;;  %v1791_v57 = vld [vmem:[#allocation5 + $0x120] sm:$0xff]  }
  0x5f   :  { %1478 = vmatpush3.bf16.msra.mxu0 %v1738_v18  ;;  %v1783_v53 = vld [vmem:[#allocation5 + $0x118] sm:$0xff]   ;;  %v1781_v56 = vld [vmem:[#allocation2 + $0xb0] ss:$28 sps:$4 sm:$0xff]   ;;  %v1792_v58 = vld [vmem:[#allocation5 + $0x180] sm:$0xff]  }
  0x60   :  { %1542 = vmatpush3.bf16.msra.mxu1 %v1739_v19  ;;  %1479 = vmatprep.subr.bf16.mxu0 %v1740_v20  ;;  %v1784_v59 = vld [vmem:[#allocation2 + $0xe4] ss:$28 sps:$4 sm:$0xff]   ;;  %v1786_v60 = vld [vmem:[#allocation2 + $0xec] ss:$28 sps:$4 sm:$0xff]   ;;  %v1802_v0 = vld [vmem:[#allocation5 + $0x190] sm:$0xff]  }
  0x61   :  { %1543 = vmatprep.subr.bf16.mxu1 %v1741_v21  ;;  %v1799_v61 = vld [vmem:[#allocation5 + $0x168] sm:$0xff]   ;;  %v1788_v1 = vld [vmem:[#allocation2 + $0xe0] ss:$28 sps:$4 sm:$0xff]   ;;  %v1809_v5 = vld [vmem:[#allocation5 + $0x170] sm:$0xff]  }
  0x62   :  { %v1800_v62 = vld [vmem:[#allocation5 + $0x188] sm:$0xff]   ;;  %v1793_v3 = vld [vmem:[#allocation2 + $0x11c] ss:$28 sps:$4 sm:$0xff]   ;;  %v1795_v4 = vld [vmem:[#allocation2 + $0x124] ss:$28 sps:$4 sm:$0xff]  }
  0x63   :  { %1480 = vmatpush3.bf16.msra.mxu0 %v1742_v22  ;;  %v1801_v63 = vld [vmem:[#allocation5 + $0x128] sm:$0xff]   ;;  %v1810_v6 = vld [vmem:[#allocation5 + $0x198] sm:$0xff]   ;;  %v1811_v7 = vld [vmem:[#allocation5 + $0x130] sm:$0xff]  }
  0x64   :  { %1544 = vmatpush3.bf16.msra.mxu1 %v1743_v23  ;;  %1481 = vmatprep.subr.bf16.mxu0 %v1744_v24  ;;  %v1789_v2 = vld [vmem:[#allocation2 + $0xe8] ss:$28 sps:$4 sm:$0xff]   ;;  %v1797_v9 = vld [vmem:[#allocation2 + $0x118] ss:$28 sps:$4 sm:$0xff]   ;;  %v1798_v10 = vld [vmem:[#allocation2 + $0x120] ss:$28 sps:$4 sm:$0xff]  }
  0x65   :  { %1545 = vmatprep.subr.bf16.mxu1 %v1745_v25  ;;  %v1812_v8 = vld [vmem:[#allocation5 + $0x1a0] sm:$0xff]   ;;  %v1803_v11 = vld [vmem:[#allocation2 + $0x154] ss:$28 sps:$4 sm:$0xff]   ;;  %v1805_v12 = vld [vmem:[#allocation2 + $0x15c] ss:$28 sps:$4 sm:$0xff]  }
  0x66   :  { %v1819_v13 = vld [vmem:[#allocation5 + $0x178] sm:$0xff]   ;;  %v1820_v14 = vld [vmem:[#allocation5 + $0x1a8] sm:$0xff]   ;;  %v1822_v16 = vld [vmem:[#allocation5 + $0x1b0] sm:$0xff]  }
  0x67   :  { %1482 = vmatpush3.bf16.msra.mxu0 %v1746_v26  ;;  %v1821_v15 = vld [vmem:[#allocation5 + $0x138] sm:$0xff]   ;;  %v1807_v17 = vld [vmem:[#allocation2 + $0x150] ss:$28 sps:$4 sm:$0xff]   ;;  %v1817_v22 = vld [vmem:[#allocation2 + $0x188] ss:$28 sps:$4 sm:$0xff]  }
  0x68   :  { %1546 = vmatpush3.bf16.msra.mxu1 %v1747_v27  ;;  %1483 = vmatprep.subr.bf16.mxu0 %v1748_v28  ;;  %v1808_v18 = vld [vmem:[#allocation2 + $0x158] ss:$28 sps:$4 sm:$0xff]   ;;  %v1813_v19 = vld [vmem:[#allocation2 + $0x18c] ss:$28 sps:$4 sm:$0xff]  }
  0x69   :  { %1547 = vmatprep.subr.bf16.mxu1 %v1749_v29  ;;  %v1815_v20 = vld [vmem:[#allocation2 + $0x194] ss:$28 sps:$4 sm:$0xff]   ;;  %v1826_v21 = vld [vmem:[#allocation5 + $0x1b8] sm:$0xff]   ;;  %v1829_v28 = vld [vmem:[#allocation2 + $0x4c] ss:$28 sps:$4 sm:$0xff]  }
  0x6a   :  { %v1818_v23 = vld [vmem:[#allocation2 + $0x190] ss:$28 sps:$4 sm:$0xff]   ;;  %v1827_v25 = vld [vmem:[#allocation2 + $0x18] ss:$28 sps:$4 sm:$0xff]   ;;  %v1835_v29 = vld [vmem:[#allocation2 + $0x88] ss:$28 sps:$4 sm:$0xff]  }
  0x6b   :  { %1484 = vmatpush3.bf16.msra.mxu0 %v1750_v30  ;;  %v1825_v24 = vld [vmem:[#allocation2 + $0x14] ss:$28 sps:$4 sm:$0xff]   ;;  %v1831_v30 = vld [vmem:[#allocation2 + $0x48] ss:$28 sps:$4 sm:$0xff]   ;;  %v1837_v35 = vld [vmem:[#allocation2 + $0xbc] ss:$28 sps:$4 sm:$0xff]  }
  0x6c   :  { %1548 = vmatpush3.bf16.msra.mxu1 %v1751_v31  ;;  %1597 = vmatprep.subr.bf16.mxu0 %v1758_v36  ;;  %v1823_v26 = vld [vmem:[#allocation2 + $0x10] ss:$28 sps:$4 sm:$0xff]   ;;  %v1832_v31 = vld [vmem:[#allocation2 + $0x84] ss:$28 sps:$4 sm:$0xff]   ;;  %v1843_v33 = vld [vmem:[#allocation2 + $0xf8] ss:$28 sps:$4 sm:$0xff]  }
  0x6d   :  { %1677 = vmatprep.subr.bf16.mxu1 %v1792_v58  ;;  %v1828_v27 = vld [vmem:[#allocation2 + $0x50] ss:$28 sps:$4 sm:$0xff]  }
  0x6e   :  { %903 = vmatmul.mubr.bf16.vlgmr.msra.gmra.mrb[0].mxu0 %v1752_v32  ;;  %v1836_v32 = vld [vmem:[#allocation2 + $0xc0] ss:$28 sps:$4 sm:$0xff]   ;;  %v1844_v36 = vld [vmem:[#allocation2 + $0x130] ss:$28 sps:$4 sm:$0xff]  }
  0x6f   :  { %1000 = vmatmul.mubr.bf16.vlgmr.msra.gmra.mrb[0].mxu1 %v1755_v34  ;;  %1598 = vmatpush3.bf16.msra.mxu0 %v1759_v37  ;;  %v1834_v34 = vld [vmem:[#allocation2 + $0x80] ss:$28 sps:$4 sm:$0xff]   ;;  %v1851_v37 = vld [vmem:[#allocation2 + $0x168] ss:$28 sps:$4 sm:$0xff]  }
  0x70   :  { %910 = vmatprep.mubr.bf16.mxu0 %v1760_v38  ;;  %1007 = vmatprep.mubr.bf16.mxu1 %v1762_v39  ;;  %v1839_v38 = vld [vmem:[#allocation2 + $0xb8] ss:$28 sps:$4 sm:$0xff]  }
  0x71   :  { %1599 = vmatprep.subr.bf16.mxu0 %v1766_v42  ;;  %1678 = vmatpush3.bf16.msra.mxu1 %v1792_v58  ;;  %v1840_v39 = vld [vmem:[#allocation2 + $0xf4] ss:$28 sps:$4 sm:$0xff]   ;;  %v1845_v42 = vld [vmem:[#allocation2 + $0x12c] ss:$28 sps:$4 sm:$0xff]  }
  0x72   :  { %1679 = vmatprep.subr.bf16.mxu1 %v1800_v62 }
  0x73   :  { %1600 = vmatpush3.bf16.msra.mxu0 %v1767_v43  ;;  %v1847_v43 = vld [vmem:[#allocation2 + $0x128] ss:$28 sps:$4 sm:$0xff]  }
  0x74   :  { %1601 = vmatprep.subr.bf16.mxu0 %v1774_v46  ;;  %v1853_v46 = vld [vmem:[#allocation2 + $0x19c] ss:$28 sps:$4 sm:$0xff]  }
  0x75   :  { %1680 = vmatpush3.bf16.msra.mxu1 %v1800_v62 }
  0x76   :  { %911 = vmatmul.mubr.bf16.gmra.mrb[4].mxu0 %v1764_v40  ;;  %1681 = vmatprep.subr.bf16.mxu1 %v1802_v0  ;;  %v1852_v40 = vld [vmem:[#allocation2 + $0x1a0] ss:$28 sps:$4 sm:$0xff]  }
  0x77   :  { %1008 = vmatmul.mubr.bf16.gmra.mrb[4].mxu1 %v1765_v41  ;;  %918 = vmatprep.mubr.bf16.mxu0 %v1768_v44  ;;  %v1842_v41 = vld [vmem:[#allocation2 + $0xf0] ss:$28 sps:$4 sm:$0xff]   ;;  %v1848_v44 = vld [vmem:[#allocation2 + $0x164] ss:$28 sps:$4 sm:$0xff]  }
  0x78   :  { %1015 = vmatprep.mubr.bf16.mxu1 %v1770_v45  ;;  %1602 = vmatpush3.bf16.msra.mxu0 %v1775_v47  ;;  %v1850_v45 = vld [vmem:[#allocation2 + $0x160] ss:$28 sps:$4 sm:$0xff]   ;;  %v1855_v47 = vld [vmem:[#allocation2 + $0x198] ss:$28 sps:$4 sm:$0xff]  }
  0x79   :  { %1603 = vmatprep.subr.bf16.mxu0 %v1782_v52  ;;  %1682 = vmatpush3.bf16.msra.mxu1 %v1802_v0 }
  0x7a   :  { %1683 = vmatprep.subr.bf16.mxu1 %v1810_v6 }
  0x7c   :  { %1604 = vmatpush3.bf16.msra.mxu0 %v1783_v53 }
  0x7d   :  { %1605 = vmatprep.subr.bf16.mxu0 %v1790_v55  ;;  %1684 = vmatpush3.bf16.msra.mxu1 %v1810_v6 }
  0x7e   :  { %919 = vmatmul.mubr.bf16.gmra.mrb[8].mxu0 %v1772_v48  ;;  %1685 = vmatprep.subr.bf16.mxu1 %v1812_v8 }
  0x7f   :  { %1016 = vmatmul.mubr.bf16.gmra.mrb[8].mxu1 %v1773_v49  ;;  %926 = vmatprep.mubr.bf16.mxu0 %v1776_v50 }
  0x80   :  { %1023 = vmatprep.mubr.bf16.mxu1 %v1778_v51  ;;  %1606 = vmatpush3.bf16.msra.mxu0 %v1791_v57 }
  0x81   :  { %1607 = vmatprep.subr.bf16.mxu0 %v1799_v61  ;;  %1686 = vmatpush3.bf16.msra.mxu1 %v1812_v8 }
  0x82   :  { %1687 = vmatprep.subr.bf16.mxu1 %v1820_v14 }
  0x84   :  { %1608 = vmatpush3.bf16.msra.mxu0 %v1801_v63 }
  0x85   :  { %1609 = vmatprep.subr.bf16.mxu0 %v1809_v5  ;;  %1688 = vmatpush3.bf16.msra.mxu1 %v1820_v14 }
  0x86   :  { %927 = vmatmul.mubr.bf16.gmra.mrb[12].mxu0 %v1780_v54  ;;  %1689 = vmatprep.subr.bf16.mxu1 %v1822_v16 }
  0x87   :  { %1024 = vmatmul.mubr.bf16.gmra.mrb[12].mxu1 %v1781_v56  ;;  %934 = vmatprep.mubr.bf16.mxu0 %v1784_v59 }
  0x88   :  { %1031 = vmatprep.mubr.bf16.mxu1 %v1786_v60  ;;  %1610 = vmatpush3.bf16.msra.mxu0 %v1811_v7 }
  0x89   :  { %1611 = vmatprep.subr.bf16.mxu0 %v1819_v13  ;;  %1690 = vmatpush3.bf16.msra.mxu1 %v1822_v16 }
  0x8a   :  { %1691 = vmatprep.subr.bf16.mxu1 %v1826_v21 }
  0x8c   :  { %1612 = vmatpush3.bf16.msra.mxu0 %v1821_v15 }
  0x8d   :  { %1692 = vmatpush3.bf16.msra.mxu1 %v1826_v21 }
  0x8e   :  { %935 = vmatmul.mubr.bf16.gmra.mrb[16].mxu0 %v1788_v1 }
  0x8f   :  { %1032 = vmatmul.mubr.bf16.gmra.mrb[16].mxu1 %v1789_v2  ;;  %942 = vmatprep.mubr.bf16.mxu0 %v1793_v3 }
  0x90   :  { %1039 = vmatprep.mubr.bf16.mxu1 %v1795_v4 }
  0x96   :  { %943 = vmatmul.mubr.bf16.gmra.mrb[20].mxu0 %v1797_v9 }
  0x97   :  { %1040 = vmatmul.mubr.bf16.gmra.mrb[20].mxu1 %v1798_v10  ;;  %950 = vmatprep.mubr.bf16.mxu0 %v1803_v11 }
  0x98   :  { %1047 = vmatprep.mubr.bf16.mxu1 %v1805_v12 }
  0x9e   :  { %951 = vmatmul.mubr.bf16.gmra.mrb[24].mxu0 %v1807_v17 }
  0x9f   :  { %1048 = vmatmul.mubr.bf16.gmra.mrb[24].mxu1 %v1808_v18  ;;  %958 = vmatprep.mubr.bf16.mxu0 %v1813_v19 }
  0xa0   :  { %1055 = vmatprep.mubr.bf16.mxu1 %v1815_v20 }
  0xa6   :  { %959 = vmatmul.mubr.bf16.gmra.mrb[28].mxu0 %v1817_v22 }
  0xa7   :  { %1056 = vmatmul.mubr.bf16.gmra.mrb[28].mxu1 %v1818_v23  ;;  %1096 = vmatprep.mubr.bf16.mxu0 %v1825_v24 }
  0xa8   :  { %1693 = vmatprep.mubr.bf16.mxu1 %v1827_v25 }
  0xae   :  { %1097 = vmatmul.mubr.bf16.vlgmr.msra.gmra.mrb[32].mxu0 %v1823_v26 }
  0xaf   :  { %1694 = vmatmul.mubr.bf16.vlgmr.msra.gmra.mrb[32].mxu1 %v1828_v27  ;;  %1104 = vmatprep.mubr.bf16.mxu0 %v1829_v28 }
  0xb0   :  { %1697 = vmatprep.mubr.bf16.mxu1 %v1835_v29 }
  0xb6   :  { %1105 = vmatmul.mubr.bf16.gmra.mrb[36].mxu0 %v1831_v30 }
  0xb7   :  { %1112 = vmatprep.mubr.bf16.mxu0 %v1832_v31  ;;  %1698 = vmatmul.mubr.bf16.gmra.mrb[36].mxu1 %v1836_v32 }
  0xb8   :  { %1701 = vmatprep.mubr.bf16.mxu1 %v1843_v33 }
  0xbe   :  { %1113 = vmatmul.mubr.bf16.gmra.mrb[40].mxu0 %v1834_v34 }
  0xbf   :  { %1120 = vmatprep.mubr.bf16.mxu0 %v1837_v35  ;;  %1702 = vmatmul.mubr.bf16.gmra.mrb[40].mxu1 %v1844_v36 }
  0xc0   :  { %1705 = vmatprep.mubr.bf16.mxu1 %v1851_v37 }
  0xc6   :  { %1121 = vmatmul.mubr.bf16.gmra.mrb[44].mxu0 %v1839_v38 }
  0xc7   :  { %1128 = vmatprep.mubr.bf16.mxu0 %v1840_v39  ;;  %1706 = vmatmul.mubr.bf16.gmra.mrb[44].mxu1 %v1852_v40 }
  0xce   :  { %1129 = vmatmul.mubr.bf16.gmra.mrb[48].mxu0 %v1842_v41 }
  0xcf   :  { %1136 = vmatprep.mubr.bf16.mxu0 %v1845_v42 }
  0xd6   :  { %1137 = vmatmul.mubr.bf16.gmra.mrb[52].mxu0 %v1847_v43 }
  0xd7   :  { %1144 = vmatprep.mubr.bf16.mxu0 %v1848_v44 }
  0xde   :  { %1145 = vmatmul.mubr.bf16.gmra.mrb[56].mxu0 %v1850_v45 }
  0xdf   :  { %1152 = vmatprep.mubr.bf16.mxu0 %v1853_v46 }
  0xe6   :  { %1153 = vmatmul.mubr.bf16.gmra.mrb[60].mxu0 %v1855_v47 }
 0x141   :  { %v1485_v48 = vpop.f32.mrb[0].mxu0 }
 0x142   :  { %v1549_v49 = vpop.f32.mrb[0].mxu1  ;;  %v1486_v50 = vpop.f32.mrb[1].mxu0 }
 0x143   :  { %v1487_v51 = vadd.f32 %v1486_v50, %v1485_v48  ;;  %v1550_v52 = vpop.f32.mrb[1].mxu1  ;;  %v1488_v53 = vpop.f32.mrb[2].mxu0 }
 0x144   :  { %v1551_v54 = vadd.f32 %v1550_v52, %v1549_v49  ;;  %v1552_v55 = vpop.f32.mrb[2].mxu1  ;;  %v1489_v56 = vpop.f32.mrb[3].mxu0 }
 0x145   :  { %v1490_v57 = vadd.f32 %v1489_v56, %v1488_v53  ;;  %v1553_v58 = vpop.f32.mrb[3].mxu1 }
 0x146   :  { %v2058_v59 = vadd.f32 %v1551_v54, %v1487_v51  ;;  %v1554_v60 = vadd.f32 %v1553_v58, %v1552_v55 }
 0x148   :  { %v2060_v61 = vadd.f32 %v1554_v60, %v1490_v57 }
 0x149   :  { %v1491_v62 = vpop.f32.mrb[4].mxu0 }
 0x14a   :  { %v1555_v63 = vpop.f32.mrb[4].mxu1  ;;  %v1492_v0 = vpop.f32.mrb[5].mxu0 }
 0x14b   :  { %v1493_v1 = vadd.f32 %v1492_v0, %v1491_v62  ;;  %v1556_v2 = vpop.f32.mrb[5].mxu1  ;;  %v1494_v3 = vpop.f32.mrb[6].mxu0 }
 0x14c   :  { %v1557_v4 = vadd.f32 %v1556_v2, %v1555_v63  ;;  %v1558_v5 = vpop.f32.mrb[6].mxu1  ;;  %v1495_v6 = vpop.f32.mrb[7].mxu0 }
 0x14d   :  { %v1496_v7 = vadd.f32 %v1495_v6, %v1494_v3  ;;  %v1559_v8 = vpop.f32.mrb[7].mxu1 }
 0x14e   :  { %v2062_v9 = vadd.f32 %v1557_v4, %v1493_v1  ;;  %v1560_v10 = vadd.f32 %v1559_v8, %v1558_v5 }
 0x150   :  { %v2064_v11 = vadd.f32 %v1560_v10, %v1496_v7 }
 0x151   :  { %v1497_v12 = vpop.f32.mrb[8].mxu0 }
 0x152   :  { %v1561_v13 = vpop.f32.mrb[8].mxu1  ;;  %v1498_v14 = vpop.f32.mrb[9].mxu0 }
 0x153   :  { %v1499_v15 = vadd.f32 %v1498_v14, %v1497_v12  ;;  %v1562_v16 = vpop.f32.mrb[9].mxu1  ;;  %v1500_v17 = vpop.f32.mrb[10].mxu0 }
 0x154   :  { %v1563_v18 = vadd.f32 %v1562_v16, %v1561_v13  ;;  %v1564_v19 = vpop.f32.mrb[10].mxu1  ;;  %v1501_v20 = vpop.f32.mrb[11].mxu0 }
 0x155   :  { %v1502_v21 = vadd.f32 %v1501_v20, %v1500_v17  ;;  %v1565_v22 = vpop.f32.mrb[11].mxu1 }
 0x156   :  { %v2066_v23 = vadd.f32 %v1563_v18, %v1499_v15  ;;  %v1566_v24 = vadd.f32 %v1565_v22, %v1564_v19 }
 0x158   :  { %v2068_v25 = vadd.f32 %v1566_v24, %v1502_v21 }
 0x159   :  { %v1503_v26 = vpop.f32.mrb[12].mxu0 }
 0x15a   :  { %v1567_v27 = vpop.f32.mrb[12].mxu1  ;;  %v1504_v28 = vpop.f32.mrb[13].mxu0 }
 0x15b   :  { %v1505_v29 = vadd.f32 %v1504_v28, %v1503_v26  ;;  %v1568_v30 = vpop.f32.mrb[13].mxu1  ;;  %v1506_v31 = vpop.f32.mrb[14].mxu0 }
 0x15c   :  { %v1569_v32 = vadd.f32 %v1568_v30, %v1567_v27  ;;  %v1570_v33 = vpop.f32.mrb[14].mxu1  ;;  %v1507_v34 = vpop.f32.mrb[15].mxu0 }
 0x15d   :  { %v1508_v35 = vadd.f32 %v1507_v34, %v1506_v31  ;;  %v1571_v36 = vpop.f32.mrb[15].mxu1 }
 0x15e   :  { %v2070_v37 = vadd.f32 %v1569_v32, %v1505_v29  ;;  %v1572_v38 = vadd.f32 %v1571_v36, %v1570_v33 }
 0x160   :  { %v2072_v39 = vadd.f32 %v1572_v38, %v1508_v35 }
 0x161   :  { %v1509_v40 = vpop.f32.mrb[16].mxu0 }
 0x162   :  { %v1573_v41 = vpop.f32.mrb[16].mxu1  ;;  %v1510_v42 = vpop.f32.mrb[17].mxu0 }
 0x163   :  { %v1511_v43 = vadd.f32 %v1510_v42, %v1509_v40  ;;  %v1574_v44 = vpop.f32.mrb[17].mxu1  ;;  %v1512_v45 = vpop.f32.mrb[18].mxu0 }
 0x164   :  { %v1575_v46 = vadd.f32 %v1574_v44, %v1573_v41  ;;  %v1576_v47 = vpop.f32.mrb[18].mxu1  ;;  %v1513_v48 = vpop.f32.mrb[19].mxu0 }
 0x165   :  { %v1514_v49 = vadd.f32 %v1513_v48, %v1512_v45  ;;  %v1577_v50 = vpop.f32.mrb[19].mxu1 }
 0x166   :  { %v2074_v51 = vadd.f32 %v1575_v46, %v1511_v43  ;;  %v1578_v52 = vadd.f32 %v1577_v50, %v1576_v47 }
 0x168   :  { %v2076_v53 = vadd.f32 %v1578_v52, %v1514_v49  ;;  %v2091_v52 = vld [vmem:[#allocation7] ss:$0 sm:$0xff] }
 0x169   :  { %v1515_v54 = vpop.f32.mrb[20].mxu0 }
 0x16a   :  { %v1579_v55 = vpop.f32.mrb[20].mxu1  ;;  %v1516_v56 = vpop.f32.mrb[21].mxu0 }
 0x16b   :  { %v1517_v57 = vadd.f32 %v1516_v56, %v1515_v54  ;;  %v1580_v58 = vpop.f32.mrb[21].mxu1  ;;  %v1518_v60 = vpop.f32.mrb[22].mxu0  ;;  %v2094_v56 = vld [vmem:[#allocation8] ss:$0 sm:$0xff] }
 0x16c   :  { %v1581_v62 = vadd.f32 %v1580_v58, %v1579_v55  ;;  %v1582_v63 = vpop.f32.mrb[22].mxu1  ;;  %v1519_v0 = vpop.f32.mrb[23].mxu0 }
 0x16d   :  { %v1520_v1 = vadd.f32 %v1519_v0, %v1518_v60  ;;  %v1583_v2 = vpop.f32.mrb[23].mxu1 }
 0x16e   :  { %v2078_v3 = vadd.f32 %v1581_v62, %v1517_v57  ;;  %v1584_v4 = vadd.f32 %v1583_v2, %v1582_v63 }
 0x170   :  { %v2080_v5 = vadd.f32 %v1584_v4, %v1520_v1 }
 0x171   :  { %v1521_v6 = vpop.f32.mrb[24].mxu0 }
 0x172   :  { %v1585_v7 = vpop.f32.mrb[24].mxu1  ;;  %v1522_v8 = vpop.f32.mrb[25].mxu0 }
 0x173   :  { %v1523_v10 = vadd.f32 %v1522_v8, %v1521_v6  ;;  %v1586_v12 = vpop.f32.mrb[25].mxu1  ;;  %v1524_v13 = vpop.f32.mrb[26].mxu0 }
 0x174   :  { %v1587_v14 = vadd.f32 %v1586_v12, %v1585_v7  ;;  %v1588_v15 = vpop.f32.mrb[26].mxu1  ;;  %v1525_v16 = vpop.f32.mrb[27].mxu0 }
 0x175   :  { %v1526_v17 = vadd.f32 %v1525_v16, %v1524_v13  ;;  %v1589_v18 = vpop.f32.mrb[27].mxu1 }
 0x176   :  { %v2082_v19 = vadd.f32 %v1587_v14, %v1523_v10  ;;  %v1590_v20 = vadd.f32 %v1589_v18, %v1588_v15 }
 0x178   :  { %v2084_v21 = vadd.f32 %v1590_v20, %v1526_v17 }
 0x179   :  { %v1527_v22 = vpop.f32.mrb[28].mxu0 }
 0x17a   :  { %v1591_v24 = vpop.f32.mrb[28].mxu1  ;;  %v1528_v26 = vpop.f32.mrb[29].mxu0 }
 0x17b   :  { %v1529_v27 = vadd.f32 %v1528_v26, %v1527_v22  ;;  %v1592_v28 = vpop.f32.mrb[29].mxu1  ;;  %v1530_v29 = vpop.f32.mrb[30].mxu0 }
 0x17c   :  { %v1593_v30 = vadd.f32 %v1592_v28, %v1591_v24  ;;  %v1594_v31 = vpop.f32.mrb[30].mxu1  ;;  %v1531_v32 = vpop.f32.mrb[31].mxu0 }
 0x17d   :  { %v1532_v33 = vadd.f32 %v1531_v32, %v1530_v29  ;;  %v1595_v34 = vpop.f32.mrb[31].mxu1 }
 0x17e   :  { %v2086_v35 = vadd.f32 %v1593_v30, %v1529_v27  ;;  %v1596_v36 = vadd.f32 %v1595_v34, %v1594_v31 }
 0x180   :  { %v2088_v38 = vadd.f32 %v1596_v36, %v1532_v33 }
 0x181   :  { %v1613_v40 = vpop.f32.mrb[32].mxu0 }
 0x182   :  { %v1614_v41 = vpop.f32.mrb[33].mxu0  ;;  %v1695_v42 = vpop.f32.mrb[32].mxu1 }
 0x183   :  { %v1615_v43 = vadd.f32 %v1614_v41, %v1613_v40  ;;  %v1616_v44 = vpop.f32.mrb[34].mxu0  ;;  %v1195_v45 = vpop.f32.mrb[33].mxu1 }
 0x184   :  { %v1617_v46 = vpop.f32.mrb[35].mxu0  ;;  %v1696_v47 = vpop.f32.mrb[34].mxu1 }
 0x185   :  { %v1618_v48 = vadd.f32 %v1617_v46, %v1616_v44  ;;  %v1099_v49 = vadd.f32 %v1615_v43, %v2058_v59  ;;  %v1198_v50 = vpop.f32.mrb[35].mxu1 }
 0x187   :  { %v1196_v54 = vadd.f32 %v1195_v45, %v1099_v49  ;;  %v1102_v55 = vadd.f32 %v1618_v48, %v2060_v61 }
 0x189   :  { %v1265_v57 = vmul.f32 %v2091_v52, %v1196_v54  ;;  %v1199_v58 = vadd.f32 %v1198_v50, %v1102_v55  ;;  %v1619_v60 = vpop.f32.mrb[36].mxu0 }
 0x18a   :  { %v1620_v62 = vpop.f32.mrb[37].mxu0  ;;  %v1699_v63 = vpop.f32.mrb[36].mxu1 }
 0x18b   :  { %v1288_v0 = vadd.f32 %v2094_v56, %v1265_v57  ;;  %v1266_v1 = vmul.f32 %v2091_v52, %v1199_v58  ;;  %v1621_v2 = vadd.f32 %v1620_v62, %v1619_v60  ;;  %v1622_v59 = vpop.f32.mrb[38].mxu0  ;;  %v1211_v4 = vpop.f32.mrb[37].mxu1 }
 0x18c   :  { %v1623_v6 = vpop.f32.mrb[39].mxu0  ;;  %v1700_v7 = vpop.f32.mrb[38].mxu1 }
 0x18d   :  { %v1304_v8 = vmax.f32 %v1288_v0, 0.0  ;;  %v1289_v61 = vadd.f32 %v2094_v56, %v1266_v1  ;;  %v1107_v10 = vadd.f32 %v1621_v2, %v2062_v9  ;;  %v1624_v12 = vadd.f32 %v1623_v6, %v1622_v59  ;;  %v1214_v13 = vpop.f32.mrb[39].mxu1 }
 0x18f   :  { %1320 = vst [vmem:[#allocation10] sm:$0xff] %v1304_v8  ;;  %v1305_v14 = vmax.f32 %v1289_v61, 0.0  ;;  %v1204_v15 = vadd.f32 %v1695_v42, %v1107_v10  ;;  %v1110_v16 = vadd.f32 %v1624_v12, %v2064_v11 }
 0x191   :  { %1321 = vst [vmem:[#allocation10 + $0x8] sm:$0xff] %v1305_v14  ;;  %v1267_v17 = vmul.f32 %v2091_v52, %v1204_v15  ;;  %v1207_v18 = vadd.f32 %v1696_v47, %v1110_v16  ;;  %v1625_v20 = vpop.f32.mrb[40].mxu0 }
 0x192   :  { %v1626_v22 = vpop.f32.mrb[41].mxu0  ;;  %v2103_v24 = vpop.f32.mrb[40].mxu1 }
 0x193   :  { %v1290_v26 = vadd.f32 %v2094_v56, %v1267_v17  ;;  %v1268_v27 = vmul.f32 %v2091_v52, %v1207_v18  ;;  %v1627_v9 = vadd.f32 %v1626_v22, %v1625_v20  ;;  %v1628_v28 = vpop.f32.mrb[42].mxu0  ;;  %v1227_v29 = vpop.f32.mrb[41].mxu1 }
 0x194   :  { %v1629_v30 = vpop.f32.mrb[43].mxu0  ;;  %v2107_v31 = vpop.f32.mrb[42].mxu1 }
 0x195   :  { %v1306_v32 = vmax.f32 %v1290_v26, 0.0  ;;  %v1291_v11 = vadd.f32 %v2094_v56, %v1268_v27  ;;  %v1630_v33 = vadd.f32 %v1629_v30, %v1628_v28  ;;  %v1115_v34 = vadd.f32 %v1627_v9, %v2066_v23  ;;  %v1230_v36 = vpop.f32.mrb[43].mxu1 }
 0x197   :  { %1322 = vst [vmem:[#allocation10 + $0x10] sm:$0xff] %v1306_v32  ;;  %v1307_v40 = vmax.f32 %v1291_v11, 0.0  ;;  %v1212_v41 = vadd.f32 %v1211_v4, %v1115_v34  ;;  %v1118_v42 = vadd.f32 %v1630_v33, %v2068_v25 }
 0x199   :  { %1323 = vst [vmem:[#allocation10 + $0x18] sm:$0xff] %v1307_v40  ;;  %v1269_v43 = vmul.f32 %v2091_v52, %v1212_v41  ;;  %v1215_v44 = vadd.f32 %v1214_v13, %v1118_v42  ;;  %v1631_v45 = vpop.f32.mrb[44].mxu0 }
 0x19a   :  { %v1632_v46 = vpop.f32.mrb[45].mxu0  ;;  %v2113_v47 = vpop.f32.mrb[44].mxu1 }
 0x19b   :  { %v1292_v48 = vadd.f32 %v2094_v56, %v1269_v43  ;;  %v1270_v49 = vmul.f32 %v2091_v52, %v1215_v44  ;;  %v1633_v50 = vadd.f32 %v1632_v46, %v1631_v45  ;;  %v1634_v23 = vpop.f32.mrb[46].mxu0  ;;  %v2117_v54 = vpop.f32.mrb[45].mxu1 }
 0x19c   :  { %v1635_v55 = vpop.f32.mrb[47].mxu0  ;;  %v2119_v57 = vpop.f32.mrb[46].mxu1 }
 0x19d   :  { %v1308_v25 = vmax.f32 %v1292_v48, 0.0  ;;  %v1293_v58 = vadd.f32 %v2094_v56, %v1270_v49  ;;  %v1123_v60 = vadd.f32 %v1633_v50, %v2070_v37  ;;  %v1636_v62 = vadd.f32 %v1635_v55, %v1634_v23  ;;  %v1246_v0 = vpop.f32.mrb[47].mxu1 }
 0x19f   :  { %1324 = vst [vmem:[#allocation10 + $0x20] sm:$0xff] %v1308_v25  ;;  %v1309_v1 = vmax.f32 %v1293_v58, 0.0  ;;  %v1220_v2 = vadd.f32 %v1699_v63, %v1123_v60  ;;  %v1126_v59 = vadd.f32 %v1636_v62, %v2072_v39 }
 0x1a1   :  { %1325 = vst [vmem:[#allocation10 + $0x28] sm:$0xff] %v1309_v1  ;;  %v1271_v4 = vmul.f32 %v2091_v52, %v1220_v2  ;;  %v1223_v6 = vadd.f32 %v1700_v7, %v1126_v59  ;;  %v1637_v8 = vpop.f32.mrb[48].mxu0 }
 0x1a2   :  { %v1638_v61 = vpop.f32.mrb[49].mxu0 }
 0x1a3   :  { %v1294_v10 = vadd.f32 %v2094_v56, %v1271_v4  ;;  %v1272_v12 = vmul.f32 %v2091_v52, %v1223_v6  ;;  %v1639_v13 = vadd.f32 %v1638_v61, %v1637_v8  ;;  %v1640_v14 = vpop.f32.mrb[50].mxu0 }
 0x1a4   :  { %v1641_v37 = vpop.f32.mrb[51].mxu0 }
 0x1a5   :  { %v1310_v15 = vmax.f32 %v1294_v10, 0.0  ;;  %v1295_v16 = vadd.f32 %v2094_v56, %v1272_v12  ;;  %v1642_v17 = vadd.f32 %v1641_v37, %v1640_v14  ;;  %v1131_v63 = vadd.f32 %v1639_v13, %v2074_v51 }
 0x1a7   :  { %1326 = vst [vmem:[#allocation10 + $0x30] sm:$0xff] %v1310_v15  ;;  %v1311_v39 = vmax.f32 %v1295_v16, 0.0  ;;  %v1228_v18 = vadd.f32 %v1227_v29, %v1131_v63  ;;  %v1134_v7 = vadd.f32 %v1642_v17, %v2076_v53 }
 0x1a9   :  { %1327 = vst [vmem:[#allocation10 + $0x38] sm:$0xff] %v1311_v39  ;;  %v1273_v20 = vmul.f32 %v2091_v52, %v1228_v18  ;;  %v1231_v22 = vadd.f32 %v1230_v36, %v1134_v7  ;;  %v1643_v26 = vpop.f32.mrb[52].mxu0 }
 0x1aa   :  { %v1644_v27 = vpop.f32.mrb[53].mxu0 }
 0x1ab   :  { %v1296_v9 = vadd.f32 %v2094_v56, %v1273_v20  ;;  %v1274_v28 = vmul.f32 %v2091_v52, %v1231_v22  ;;  %v1645_v30 = vadd.f32 %v1644_v27, %v1643_v26  ;;  %v1646_v32 = vpop.f32.mrb[54].mxu0 }
 0x1ac   :  { %v1647_v11 = vpop.f32.mrb[55].mxu0 }
 0x1ad   :  { %v1312_v33 = vmax.f32 %v1296_v9, 0.0  ;;  %v1297_v51 = vadd.f32 %v2094_v56, %v1274_v28  ;;  %v1139_v29 = vadd.f32 %v1645_v30, %v2078_v3  ;;  %v1648_v34 = vadd.f32 %v1647_v11, %v1646_v32 }
 0x1af   :  { %1328 = vst [vmem:[#allocation10 + $0x40] sm:$0xff] %v1312_v33  ;;  %v1313_v53 = vmax.f32 %v1297_v51, 0.0  ;;  %v1236_v40 = vadd.f32 %v2103_v24, %v1139_v29  ;;  %v1142_v36 = vadd.f32 %v1648_v34, %v2080_v5 }
 0x1b1   :  { %1329 = vst [vmem:[#allocation10 + $0x48] sm:$0xff] %v1313_v53  ;;  %v1275_v41 = vmul.f32 %v2091_v52, %v1236_v40  ;;  %v1239_v42 = vadd.f32 %v2107_v31, %v1142_v36  ;;  %v1649_v43 = vpop.f32.mrb[56].mxu0 }
 0x1b2   :  { %v1650_v44 = vpop.f32.mrb[57].mxu0 }
 0x1b3   :  { %v1298_v45 = vadd.f32 %v2094_v56, %v1275_v41  ;;  %v1276_v46 = vmul.f32 %v2091_v52, %v1239_v42  ;;  %v1651_v48 = vadd.f32 %v1650_v44, %v1649_v43  ;;  %v1652_v3 = vpop.f32.mrb[58].mxu0 }
 0x1b4   :  { %v1653_v49 = vpop.f32.mrb[59].mxu0 }
 0x1b5   :  { %v1314_v50 = vmax.f32 %v1298_v45, 0.0  ;;  %v1299_v23 = vadd.f32 %v2094_v56, %v1276_v46  ;;  %v1654_v24 = vadd.f32 %v1653_v49, %v1652_v3  ;;  %v1147_v5 = vadd.f32 %v1651_v48, %v2082_v19 }
 0x1b7   :  { %1330 = vst [vmem:[#allocation10 + $0x50] sm:$0xff] %v1314_v50  ;;  %v1315_v55 = vmax.f32 %v1299_v23, 0.0  ;;  %v1244_v25 = vadd.f32 %v2117_v54, %v1147_v5  ;;  %v1150_v31 = vadd.f32 %v1654_v24, %v2084_v21 }
 0x1b9   :  { %1331 = vst [vmem:[#allocation10 + $0x58] sm:$0xff] %v1315_v55  ;;  %v1277_v58 = vmul.f32 %v2091_v52, %v1244_v25  ;;  %v1247_v60 = vadd.f32 %v1246_v0, %v1150_v31  ;;  %v1655_v62 = vpop.f32.mrb[60].mxu0 }
 0x1ba   :  { %v1656_v1 = vpop.f32.mrb[61].mxu0 }
 0x1bb   :  { %v1300_v2 = vadd.f32 %v2094_v56, %v1277_v58  ;;  %v1278_v59 = vmul.f32 %v2091_v52, %v1247_v60  ;;  %v1657_v4 = vadd.f32 %v1656_v1, %v1655_v62  ;;  %v1658_v6 = vpop.f32.mrb[62].mxu0 }
 0x1bc   :  { %v1659_v8 = vpop.f32.mrb[63].mxu0 }
 0x1bd   :  { %v1316_v19 = vmax.f32 %v1300_v2, 0.0  ;;  %v1301_v61 = vadd.f32 %v2094_v56, %v1278_v59  ;;  %v1155_v54 = vadd.f32 %v1657_v4, %v2086_v35  ;;  %v1660_v10 = vadd.f32 %v1659_v8, %v1658_v6 }
 0x1bf   :  { %1332 = vst [vmem:[#allocation10 + $0x60] sm:$0xff] %v1316_v19  ;;  %v1317_v21 = vmax.f32 %v1301_v61, 0.0  ;;  %v1252_v12 = vadd.f32 %v2113_v47, %v1155_v54  ;;  %v1158_v0 = vadd.f32 %v1660_v10, %v2088_v38 }
 0x1c1   :  { %1333 = vst [vmem:[#allocation10 + $0x68] sm:$0xff] %v1317_v21  ;;  %v1279_v13 = vmul.f32 %v2091_v52, %v1252_v12  ;;  %v1255_v14 = vadd.f32 %v2119_v57, %v1158_v0 }
 0x1c3   :  { %v1302_v37 = vadd.f32 %v2094_v56, %v1279_v13  ;;  %v1280_v15 = vmul.f32 %v2091_v52, %v1255_v14 }
 0x1c5   :  { %v1318_v16 = vmax.f32 %v1302_v37, 0.0  ;;  %v1303_v35 = vadd.f32 %v2094_v56, %v1280_v15 }
 0x1c7   :  { %1334 = vst [vmem:[#allocation10 + $0x70] sm:$0xff] %v1318_v16  ;;  %v1319_v17 = vmax.f32 %v1303_v35, 0.0 }
 0x1c9   :  { %1335 = vst [vmem:[#allocation10 + $0x78] sm:$0xff] %v1319_v17 }
 0x1ca   :  { %1955 = shalt.err (!%p1952_p8)
}
 0x1cb   :  { %s1956_s17 = scalar_lea.hbm %s2173_s4, 2048 }
 0x1cc   :  { %p1957_p9 = scmp.ne.s32.totalorder %s2173_s4, %s1956_s17  ;;  %p1960_p10 = scmp.lt.u32.totalorder %s1956_s17, %s2173_s4 }
 0x1ce   :  { %p1962_p11 = pnand %p1960_p10, %p1957_p9 }
 0x1d0   :  { %1965 = shalt.err (!%p1962_p11)
}
 0x1d1   :  { %s1983_s22 = smov 128   ;;  %s1984_s23 = smov 8  }
 0x1d2   :  { %1347 = dma.vmem_to_hbm [thread:$0]  %s1342_s13, 2048, %s2173_s4, [#allocation4], %s1983_s22, %s1983_s22, %s1984_s23  }
 0x1d3   :  { %1972 = dma.done.wait [#allocation4], 2048  }
 0x1d4   :  { %1973 = vsyncadd [#allocation4], 4294965248 }
 0x1d5   :  { %1351 = vsyncpa [#allocation3], 1 }
 0x1d6   :  { %1352 = vsyncpa [#allocation6], 1 }
 0x1d7   :  { %1353 = vsyncpa [#allocation9], 1 }
 0x1d8   :  { %1354 = vsyncpa [#allocation4], 1 }

</bundles_post_ra>
